<compile_context>
chip_gen: v6e
topology: v6e:2x2x1
jax: 0.10.0
libtpu: 0.0.40
codegen_flags: <defaults>
</compile_context>

<pallas_src>
import functools

import jax
import jax.numpy as jnp
import numpy as np
from jax.experimental import pallas as pl
from jax.experimental.pallas import tpu as pltpu


# ----------------------------------------------------------------------------- kernel
def lstm_gru_atten_kernel(
    ids_ref, att_b_ref,                     # SMEM: [B0, T] int32 token ids, [T, 1] att bias
    table_ref,                              # VMEM: [VOCAB, E] embedding table
    lWi_ref, lb_ref, lWh_f_ref, lWh_b_ref,  # LSTM: [E, 8H], [1, 8H], [H, 4H], [H, 4H]
    gWi_ref, gbi_ref, gbh_f_ref, gbh_b_ref, gWh_f_ref, gWh_b_ref,
                                            # GRU:  [2H,6H],[1,6H],[1,3H],[1,3H],[H,3H],[H,3H]
    att_w_ref,                              # [1, 2H]
    W12_ref, b12_ref,                       # [6H, 12H], [1, 12H]
    Whead_ref, Whead2_ref, bhead_ref,       # [6H, 1+A], [12H, 1+A], [1, 1+A]
    out_ref,                                # [B, 1+A]
    emb_x, lgi_s, seq1_s, ggi_s, h2_s,      # VMEM scratch
    *, H, T, B, B0):
    f32 = jnp.float32
    E = table_ref.shape[1]
    H2, H3, H4, H6, H8 = 2 * H, 3 * H, 4 * H, 6 * H, 8 * H

    # -------------------- embedding gather (time-major, row = t*B + b) ----------------
    if B > B0:
        emb_x[...] = jnp.zeros((T * B, E), f32)     # padded batch rows stay zero
    for b in range(B0):
        for t in range(T):
            idx = ids_ref[b, t]                     # scalar from SMEM
            emb_x[pl.ds(t * B + b, 1), :] = table_ref[pl.ds(idx, 1), :]

    # -------------------- bidirectional LSTM (gate order [i, f, o, g]) ----------------
    # Hoisted input projection for both directions / all timesteps, bias folded in.
    lgi_s[...] = (jnp.dot(emb_x[...], lWi_ref[...], preferred_element_type=f32)
                  + lb_ref[...])                                     # [T*B, 8H]
    lWh_f = lWh_f_ref[...]                                           # [H, 4H]
    lWh_b = lWh_b_ref[...]

    def lstm_cell(g, c):                                             # g: [B, 4H] = [i,f,o,g]
        sfo = jax.nn.sigmoid(g[:, 0:H3])                             # one contiguous sigmoid
        gg = jnp.tanh(g[:, H3:H4])
        c = sfo[:, H:H2] * c + sfo[:, 0:H] * gg
        return sfo[:, H2:H3] * jnp.tanh(c), c

    zero = jnp.zeros((B, H), f32)
    h_f, c_f, h_b, c_b = zero, zero, zero, zero
    for i in range(T):                                               # fully unrolled (T=8)
        tf, tb = i, T - 1 - i
        g_f = lgi_s[pl.ds(tf * B, B), pl.ds(0, H4)]
        g_b = lgi_s[pl.ds(tb * B, B), pl.ds(H4, H4)]
        if i > 0:                                                    # two independent chains
            g_f = g_f + jnp.dot(h_f, lWh_f, preferred_element_type=f32)
            g_b = g_b + jnp.dot(h_b, lWh_b, preferred_element_type=f32)
        h_f, c_f = lstm_cell(g_f, c_f)
        h_b, c_b = lstm_cell(g_b, c_b)
        seq1_s[pl.ds(tf * B, B), pl.ds(0, H)] = h_f                  # static aligned stores
        seq1_s[pl.ds(tb * B, B), pl.ds(H, H)] = h_b

    # -------------------- bidirectional GRU (gate order [r, z, n]) --------------------
    ggi_s[...] = (jnp.dot(seq1_s[...], gWi_ref[...], preferred_element_type=f32)
                  + gbi_ref[...])                                    # [T*B, 6H]
    gWh_f = gWh_f_ref[...]
    gWh_b = gWh_b_ref[...]
    gbh_f = jnp.broadcast_to(gbh_f_ref[...], (B, H3))                # hoisted broadcasts
    gbh_b = jnp.broadcast_to(gbh_b_ref[...], (B, H3))

    def gru_cell(gi, gh, h):                                         # gi, gh: [B, 3H]
        rz = jax.nn.sigmoid(gi[:, 0:H2] + gh[:, 0:H2])
        n = jnp.tanh(gi[:, H2:H3] + rz[:, 0:H] * gh[:, H2:H3])
        z = rz[:, H:H2]
        return (1.0 - z) * n + z * h

    h_f, h_b = zero, zero
    for i in range(T):                                               # fully unrolled
        tf, tb = i, T - 1 - i
        gi_f = ggi_s[pl.ds(tf * B, B), pl.ds(0, H3)]
        gi_b = ggi_s[pl.ds(tb * B, B), pl.ds(H3, H3)]
        if i == 0:
            gh_f, gh_b = gbh_f, gbh_b
        else:
            gh_f = jnp.dot(h_f, gWh_f, preferred_element_type=f32) + gbh_f
            gh_b = jnp.dot(h_b, gWh_b, preferred_element_type=f32) + gbh_b
        h_f = gru_cell(gi_f, gh_f, h_f)
        h_b = gru_cell(gi_b, gh_b, h_b)
        h2_s[pl.ds(tf * B, B), pl.ds(0, H)] = h_f
        h2_s[pl.ds(tb * B, B), pl.ds(H, H)] = h_b

    # -------------------- attention + avg/max pooling (single pass over T) ------------
    att_w = att_w_ref[...]                                           # [1, 2H]
    pool_sum = jnp.zeros((B, H2), f32)
    pool_max = jnp.full((B, H2), -jnp.inf, f32)
    att_un = jnp.zeros((B, H2), f32)
    denom = jnp.zeros((B, 1), f32)
    for t in range(T):
        h2t = h2_s[pl.ds(t * B, B), :]                               # [B, 2H]
        pool_sum = pool_sum + h2t
        pool_max = jnp.maximum(pool_max, h2t)
        e = jnp.tanh(jnp.sum(h2t * att_w, axis=-1, keepdims=True) + att_b_ref[t, 0])
        a = jnp.exp(e)                                               # tanh-bounded -> safe
        denom = denom + a
        att_un = att_un + h2t * a
    att = att_un * pl.reciprocal(denom + 1e-10, approx=True)         # EUP reciprocal
    avg_pool = pool_sum * (1.0 / T)
    h_conc = jnp.concatenate([pool_max, avg_pool, att], axis=-1)     # [B, 6H]

    # -------------------- fused dense head (residual distributed through Whead) -------
    l12 = jax.nn.relu(jnp.dot(h_conc, W12_ref[...], preferred_element_type=f32)
                      + b12_ref[...])                                # [B, 12H] = [l1 | l2]
    out_ref[...] = (jnp.dot(h_conc, Whead_ref[...], preferred_element_type=f32)
                    + jnp.dot(l12, Whead2_ref[...], preferred_element_type=f32)
                    + bhead_ref[...])


# ----------------------------------------------------------------------------- weight prep
def prepare_fused_params(p, H):
    """One-time fusion of weights (runs at init, NOT on the per-call jitted path)."""
    def reorder(W):  # LSTM gate columns i,f,g,o -> i,f,o,g (sigmoid block contiguous)
        return jnp.concatenate([W[:, :2 * H], W[:, 3 * H:], W[:, 2 * H:3 * H]], axis=1)

    Whead = jnp.concatenate([p["W_out"], p["W_aux"]], axis=1)        # [6H, 1+A]
    fused = dict(
        embedding=p["embedding"].astype(jnp.float32),
        lWi=jnp.concatenate([reorder(p["lstm_Wi_f"]), reorder(p["lstm_Wi_b"])], axis=1),
        lb=jnp.concatenate([reorder(p["lstm_b_f"]), reorder(p["lstm_b_b"])], axis=1),
        lWh_f=reorder(p["lstm_Wh_f"]),
        lWh_b=reorder(p["lstm_Wh_b"]),
        gWi=jnp.concatenate([p["gru_Wi_f"], p["gru_Wi_b"]], axis=1),
        gbi=jnp.concatenate([p["gru_bi_f"], p["gru_bi_b"]], axis=1),
        gbh_f=p["gru_bh_f"],
        gbh_b=p["gru_bh_b"],
        gWh_f=p["gru_Wh_f"],
        gWh_b=p["gru_Wh_b"],
        att_w=p["att_w"],
        att_b=p["att_b"],
        W12=jnp.concatenate([p["W1"], p["W2"]], axis=1),
        b12=jnp.concatenate([p["b1"], p["b2"]], axis=1),
        Whead=Whead,
        Whead2=jnp.concatenate([Whead, Whead], axis=0),              # [12H, 1+A]
        bhead=jnp.concatenate([p["b_out"], p["b_aux"]], axis=1),
    )
    return jax.tree_util.tree_map(lambda x: jnp.asarray(x, jnp.float32), fused)


# ----------------------------------------------------------------------------- wrapper
def lstm_gru_atten_forward(token_ids, fp, *, lstm_units):
    H = lstm_units
    B0, T = token_ids.shape
    B = ((B0 + 7) // 8) * 8                                          # fill f32 sublanes
    E = fp["embedding"].shape[1]
    num_out = fp["bhead"].shape[-1]

    vmem = pl.BlockSpec(memory_space=pltpu.MemorySpace.VMEM)
    smem = pl.BlockSpec(memory_space=pltpu.MemorySpace.SMEM)
    args = (token_ids, fp["att_b"],
            fp["embedding"], fp["lWi"], fp["lb"], fp["lWh_f"], fp["lWh_b"],
            fp["gWi"], fp["gbi"], fp["gbh_f"], fp["gbh_b"], fp["gWh_f"], fp["gWh_b"],
            fp["att_w"], fp["W12"], fp["b12"], fp["Whead"], fp["Whead2"], fp["bhead"])

    out = pl.pallas_call(
        functools.partial(lstm_gru_atten_kernel, H=H, T=T, B=B, B0=B0),
        out_shape=jax.ShapeDtypeStruct((B, num_out), jnp.float32),
        in_specs=[smem, smem] + [vmem] * (len(args) - 2),
        out_specs=vmem,
        scratch_shapes=[
            pltpu.VMEM((T * B, E), jnp.float32),        # gathered embeddings (time-major)
            pltpu.VMEM((T * B, 8 * H), jnp.float32),    # hoisted LSTM input projection
            pltpu.VMEM((T * B, 2 * H), jnp.float32),    # BiLSTM outputs
            pltpu.VMEM((T * B, 6 * H), jnp.float32),    # hoisted GRU input projection
            pltpu.VMEM((T * B, 2 * H), jnp.float32),    # BiGRU outputs
        ],
    )(*args)
    return out[:B0]


# ----------------------------------------------------------------------------- params
def init_params(key, vocab, E, H, T, num_aux):
    keys = jax.random.split(key, 24)
    w = lambda i, shape, s=0.1: jax.random.normal(keys[i], shape, jnp.float32) * s
    return dict(
        embedding=w(0, (vocab, E), 1.0),
        lstm_Wi_f=w(1, (E, 4 * H)), lstm_Wh_f=w(2, (H, 4 * H)), lstm_b_f=w(3, (1, 4 * H)),
        lstm_Wi_b=w(4, (E, 4 * H)), lstm_Wh_b=w(5, (H, 4 * H)), lstm_b_b=w(6, (1, 4 * H)),
        gru_Wi_f=w(7, (2 * H, 3 * H)), gru_Wh_f=w(8, (H, 3 * H)),
        gru_bi_f=w(9, (1, 3 * H)), gru_bh_f=w(10, (1, 3 * H)),
        gru_Wi_b=w(11, (2 * H, 3 * H)), gru_Wh_b=w(12, (H, 3 * H)),
        gru_bi_b=w(13, (1, 3 * H)), gru_bh_b=w(14, (1, 3 * H)),
        att_w=w(15, (1, 2 * H)), att_b=jnp.zeros((T, 1), jnp.float32),
        W1=w(16, (6 * H, 6 * H)), b1=w(17, (1, 6 * H)),
        W2=w(18, (6 * H, 6 * H)), b2=w(19, (1, 6 * H)),
        W_out=w(20, (6 * H, 1)), b_out=w(21, (1, 1)),
        W_aux=w(22, (6 * H, num_aux)), b_aux=w(23, (1, num_aux)),
    )


# ----------------------------------------------------------------------------- reference
def reference_forward(token_ids, p, H):
    emb = p["embedding"][token_ids].astype(jnp.float32)              # [B, T, E]
    B, T, _ = emb.shape

    def run_lstm(xs, Wi, Wh, b, reverse):
        h = jnp.zeros((B, H), jnp.float32)
        c = jnp.zeros((B, H), jnp.float32)
        outs = [None] * T
        for t in (range(T - 1, -1, -1) if reverse else range(T)):
            g = xs[:, t, :] @ Wi + h @ Wh + b[0]
            c = jax.nn.sigmoid(g[:, H:2 * H]) * c + jax.nn.sigmoid(g[:, :H]) * jnp.tanh(g[:, 2 * H:3 * H])
            h = jax.nn.sigmoid(g[:, 3 * H:]) * jnp.tanh(c)
            outs[t] = h
        return jnp.stack(outs, axis=1)

    def run_gru(xs, Wi, Wh, bi, bh, reverse):
        h = jnp.zeros((B, H), jnp.float32)
        outs = [None] * T
        for t in (range(T - 1, -1, -1) if reverse else range(T)):
            gi = xs[:, t, :] @ Wi + bi[0]
            gh = h @ Wh + bh[0]
            r = jax.nn.sigmoid(gi[:, :H] + gh[:, :H])
            z = jax.nn.sigmoid(gi[:, H:2 * H] + gh[:, H:2 * H])
            n = jnp.tanh(gi[:, 2 * H:] + r * gh[:, 2 * H:])
            h = (1 - z) * n + z * h
            outs[t] = h
        return jnp.stack(outs, axis=1)

    h1 = jnp.concatenate(
        [run_lstm(emb, p["lstm_Wi_f"], p["lstm_Wh_f"], p["lstm_b_f"], False),
         run_lstm(emb, p["lstm_Wi_b"], p["lstm_Wh_b"], p["lstm_b_b"], True)], -1)
    h2 = jnp.concatenate(
        [run_gru(h1, p["gru_Wi_f"], p["gru_Wh_f"], p["gru_bi_f"], p["gru_bh_f"], False),
         run_gru(h1, p["gru_Wi_b"], p["gru_Wh_b"], p["gru_bi_b"], p["gru_bh_b"], True)], -1)
    eij = jnp.tanh(jnp.einsum("btf,f->bt", h2, p["att_w"][0]) + p["att_b"][:, 0][None, :])
    a = jnp.exp(eij)
    a = a / (a.sum(1, keepdims=True) + 1e-10)
    att = (h2 * a[:, :, None]).sum(1)
    h_conc = jnp.concatenate([h2.max(1), h2.mean(1), att], -1)
    l1 = jax.nn.relu(h_conc @ p["W1"] + p["b1"][0])
    l2 = jax.nn.relu(h_conc @ p["W2"] + p["b2"][0])
    hidden = h_conc + l1 + l2
    return jnp.concatenate([hidden @ p["W_out"] + p["b_out"][0],
                            hidden @ p["W_aux"] + p["b_aux"][0]], -1)


# ----------------------------------------------------------------------------- main
if __name__ == "__main__":
    VOCAB, E, H, T, B0, NUM_AUX = 50, 32, 32, 8, 2, 5

    key = jax.random.PRNGKey(0)
    kp, kx = jax.random.split(key)
    params = init_params(kp, VOCAB, E, H, T, NUM_AUX)
    fused = prepare_fused_params(params, H)            # one-time weight fusion at init
    token_ids = jax.random.randint(kx, (B0, T), 0, VOCAB, dtype=jnp.int32)

    fwd = jax.jit(functools.partial(lstm_gru_atten_forward, lstm_units=H))
    out = jax.block_until_ready(fwd(token_ids, fused))

    ref = jax.block_until_ready(reference_forward(token_ids, params, H))
    assert out.shape == (B0, 1 + NUM_AUX)
    np.testing.assert_allclose(np.asarray(out), np.asarray(ref), rtol=2e-2, atol=2e-2)
    print("KERNEL_OK")
</pallas_src>

<mosaic_0001>
module attributes {stable_mosaic.version = 11 : i64} {
  func.func @lstm_gru_atten_kernel(%arg0: memref<2x8xi32, #tpu.memory_space<smem>>, %arg1: memref<8x1xf32, #tpu.memory_space<smem>>, %arg2: memref<50x32xf32, #tpu.memory_space<vmem>>, %arg3: memref<32x256xf32, #tpu.memory_space<vmem>>, %arg4: memref<1x256xf32, #tpu.memory_space<vmem>>, %arg5: memref<32x128xf32, #tpu.memory_space<vmem>>, %arg6: memref<32x128xf32, #tpu.memory_space<vmem>>, %arg7: memref<64x192xf32, #tpu.memory_space<vmem>>, %arg8: memref<1x192xf32, #tpu.memory_space<vmem>>, %arg9: memref<1x96xf32, #tpu.memory_space<vmem>>, %arg10: memref<1x96xf32, #tpu.memory_space<vmem>>, %arg11: memref<32x96xf32, #tpu.memory_space<vmem>>, %arg12: memref<32x96xf32, #tpu.memory_space<vmem>>, %arg13: memref<1x64xf32, #tpu.memory_space<vmem>>, %arg14: memref<192x384xf32, #tpu.memory_space<vmem>>, %arg15: memref<1x384xf32, #tpu.memory_space<vmem>>, %arg16: memref<192x6xf32, #tpu.memory_space<vmem>>, %arg17: memref<384x6xf32, #tpu.memory_space<vmem>>, %arg18: memref<1x6xf32, #tpu.memory_space<vmem>>, %arg19: memref<8x6xf32, #tpu.memory_space<vmem>>, %arg20: memref<64x32xf32, #tpu.memory_space<vmem>>, %arg21: memref<64x256xf32, #tpu.memory_space<vmem>>, %arg22: memref<64x64xf32, #tpu.memory_space<vmem>>, %arg23: memref<64x192xf32, #tpu.memory_space<vmem>>, %arg24: memref<64x64xf32, #tpu.memory_space<vmem>>) attributes {dimension_semantics = [], scalar_prefetch = 0 : i64, scratch_operands = 5 : i64, tpu.core_type = #tpu.core_type<tc>} {
    %cst = arith.constant 0.000000e+00 : f32
    %0 = vector.broadcast %cst : f32 to vector<64x32xf32>
    %c0 = arith.constant 0 : index
    %c0_0 = arith.constant 0 : index
    %1 = vector.load %arg20[%c0, %c0_0] : memref<64x32xf32, #tpu.memory_space<vmem>>, vector<64x32xf32>
    tpu.vector_store %arg20[%c0, %c0_0], %0 {strides = array<i32>} : memref<64x32xf32, #tpu.memory_space<vmem>>, vector<64x32xf32>,
    %c0_1 = arith.constant 0 : index
    %c0_2 = arith.constant 0 : index
    %2 = memref.load %arg0[%c0_1, %c0_2] : memref<2x8xi32, #tpu.memory_space<smem>>
    %3 = arith.index_cast %2 : i32 to index
    %c0_3 = arith.constant 0 : index
    %4 = vector.load %arg2[%3, %c0_3] : memref<50x32xf32, #tpu.memory_space<vmem>>, vector<1x32xf32>
    %c0_4 = arith.constant 0 : index
    %c0_5 = arith.constant 0 : index
    %5 = vector.load %arg20[%c0_4, %c0_5] : memref<64x32xf32, #tpu.memory_space<vmem>>, vector<1x32xf32>
    tpu.vector_store %arg20[%c0_4, %c0_5], %4 {strides = array<i32>} : memref<64x32xf32, #tpu.memory_space<vmem>>, vector<1x32xf32>,
    %c0_6 = arith.constant 0 : index
    %c1 = arith.constant 1 : index
    %6 = memref.load %arg0[%c0_6, %c1] : memref<2x8xi32, #tpu.memory_space<smem>>
    %7 = arith.index_cast %6 : i32 to index
    %c0_7 = arith.constant 0 : index
    %8 = vector.load %arg2[%7, %c0_7] : memref<50x32xf32, #tpu.memory_space<vmem>>, vector<1x32xf32>
    %c8 = arith.constant 8 : index
    %c0_8 = arith.constant 0 : index
    %9 = vector.load %arg20[%c8, %c0_8] : memref<64x32xf32, #tpu.memory_space<vmem>>, vector<1x32xf32>
    tpu.vector_store %arg20[%c8, %c0_8], %8 {strides = array<i32>} : memref<64x32xf32, #tpu.memory_space<vmem>>, vector<1x32xf32>,
    %c0_9 = arith.constant 0 : index
    %c2 = arith.constant 2 : index
    %10 = memref.load %arg0[%c0_9, %c2] : memref<2x8xi32, #tpu.memory_space<smem>>
    %11 = arith.index_cast %10 : i32 to index
    %c0_10 = arith.constant 0 : index
    %12 = vector.load %arg2[%11, %c0_10] : memref<50x32xf32, #tpu.memory_space<vmem>>, vector<1x32xf32>
    %c16 = arith.constant 16 : index
    %c0_11 = arith.constant 0 : index
    %13 = vector.load %arg20[%c16, %c0_11] : memref<64x32xf32, #tpu.memory_space<vmem>>, vector<1x32xf32>
    tpu.vector_store %arg20[%c16, %c0_11], %12 {strides = array<i32>} : memref<64x32xf32, #tpu.memory_space<vmem>>, vector<1x32xf32>,
    %c0_12 = arith.constant 0 : index
    %c3 = arith.constant 3 : index
    %14 = memref.load %arg0[%c0_12, %c3] : memref<2x8xi32, #tpu.memory_space<smem>>
    %15 = arith.index_cast %14 : i32 to index
    %c0_13 = arith.constant 0 : index
    %16 = vector.load %arg2[%15, %c0_13] : memref<50x32xf32, #tpu.memory_space<vmem>>, vector<1x32xf32>
    %c24 = arith.constant 24 : index
    %c0_14 = arith.constant 0 : index
    %17 = vector.load %arg20[%c24, %c0_14] : memref<64x32xf32, #tpu.memory_space<vmem>>, vector<1x32xf32>
    tpu.vector_store %arg20[%c24, %c0_14], %16 {strides = array<i32>} : memref<64x32xf32, #tpu.memory_space<vmem>>, vector<1x32xf32>,
    %c0_15 = arith.constant 0 : index
    %c4 = arith.constant 4 : index
    %18 = memref.load %arg0[%c0_15, %c4] : memref<2x8xi32, #tpu.memory_space<smem>>
    %19 = arith.index_cast %18 : i32 to index
    %c0_16 = arith.constant 0 : index
    %20 = vector.load %arg2[%19, %c0_16] : memref<50x32xf32, #tpu.memory_space<vmem>>, vector<1x32xf32>
    %c32 = arith.constant 32 : index
    %c0_17 = arith.constant 0 : index
    %21 = vector.load %arg20[%c32, %c0_17] : memref<64x32xf32, #tpu.memory_space<vmem>>, vector<1x32xf32>
    tpu.vector_store %arg20[%c32, %c0_17], %20 {strides = array<i32>} : memref<64x32xf32, #tpu.memory_space<vmem>>, vector<1x32xf32>,
    %c0_18 = arith.constant 0 : index
    %c5 = arith.constant 5 : index
    %22 = memref.load %arg0[%c0_18, %c5] : memref<2x8xi32, #tpu.memory_space<smem>>
    %23 = arith.index_cast %22 : i32 to index
    %c0_19 = arith.constant 0 : index
    %24 = vector.load %arg2[%23, %c0_19] : memref<50x32xf32, #tpu.memory_space<vmem>>, vector<1x32xf32>
    %c40 = arith.constant 40 : index
    %c0_20 = arith.constant 0 : index
    %25 = vector.load %arg20[%c40, %c0_20] : memref<64x32xf32, #tpu.memory_space<vmem>>, vector<1x32xf32>
    tpu.vector_store %arg20[%c40, %c0_20], %24 {strides = array<i32>} : memref<64x32xf32, #tpu.memory_space<vmem>>, vector<1x32xf32>,
    %c0_21 = arith.constant 0 : index
    %c6 = arith.constant 6 : index
    %26 = memref.load %arg0[%c0_21, %c6] : memref<2x8xi32, #tpu.memory_space<smem>>
    %27 = arith.index_cast %26 : i32 to index
    %c0_22 = arith.constant 0 : index
    %28 = vector.load %arg2[%27, %c0_22] : memref<50x32xf32, #tpu.memory_space<vmem>>, vector<1x32xf32>
    %c48 = arith.constant 48 : index
    %c0_23 = arith.constant 0 : index
    %29 = vector.load %arg20[%c48, %c0_23] : memref<64x32xf32, #tpu.memory_space<vmem>>, vector<1x32xf32>
    tpu.vector_store %arg20[%c48, %c0_23], %28 {strides = array<i32>} : memref<64x32xf32, #tpu.memory_space<vmem>>, vector<1x32xf32>,
    %c0_24 = arith.constant 0 : index
    %c7 = arith.constant 7 : index
    %30 = memref.load %arg0[%c0_24, %c7] : memref<2x8xi32, #tpu.memory_space<smem>>
    %31 = arith.index_cast %30 : i32 to index
    %c0_25 = arith.constant 0 : index
    %32 = vector.load %arg2[%31, %c0_25] : memref<50x32xf32, #tpu.memory_space<vmem>>, vector<1x32xf32>
    %c56 = arith.constant 56 : index
    %c0_26 = arith.constant 0 : index
    %33 = vector.load %arg20[%c56, %c0_26] : memref<64x32xf32, #tpu.memory_space<vmem>>, vector<1x32xf32>
    tpu.vector_store %arg20[%c56, %c0_26], %32 {strides = array<i32>} : memref<64x32xf32, #tpu.memory_space<vmem>>, vector<1x32xf32>,
    %c1_27 = arith.constant 1 : index
    %c0_28 = arith.constant 0 : index
    %34 = memref.load %arg0[%c1_27, %c0_28] : memref<2x8xi32, #tpu.memory_space<smem>>
    %35 = arith.index_cast %34 : i32 to index
    %c0_29 = arith.constant 0 : index
    %36 = vector.load %arg2[%35, %c0_29] : memref<50x32xf32, #tpu.memory_space<vmem>>, vector<1x32xf32>
    %c1_30 = arith.constant 1 : index
    %c0_31 = arith.constant 0 : index
    %37 = vector.load %arg20[%c1_30, %c0_31] : memref<64x32xf32, #tpu.memory_space<vmem>>, vector<1x32xf32>
    tpu.vector_store %arg20[%c1_30, %c0_31], %36 {strides = array<i32>} : memref<64x32xf32, #tpu.memory_space<vmem>>, vector<1x32xf32>,
    %c1_32 = arith.constant 1 : index
    %c1_33 = arith.constant 1 : index
    %38 = memref.load %arg0[%c1_32, %c1_33] : memref<2x8xi32, #tpu.memory_space<smem>>
    %39 = arith.index_cast %38 : i32 to index
    %c0_34 = arith.constant 0 : index
    %40 = vector.load %arg2[%39, %c0_34] : memref<50x32xf32, #tpu.memory_space<vmem>>, vector<1x32xf32>
    %c9 = arith.constant 9 : index
    %c0_35 = arith.constant 0 : index
    %41 = vector.load %arg20[%c9, %c0_35] : memref<64x32xf32, #tpu.memory_space<vmem>>, vector<1x32xf32>
    tpu.vector_store %arg20[%c9, %c0_35], %40 {strides = array<i32>} : memref<64x32xf32, #tpu.memory_space<vmem>>, vector<1x32xf32>,
    %c1_36 = arith.constant 1 : index
    %c2_37 = arith.constant 2 : index
    %42 = memref.load %arg0[%c1_36, %c2_37] : memref<2x8xi32, #tpu.memory_space<smem>>
    %43 = arith.index_cast %42 : i32 to index
    %c0_38 = arith.constant 0 : index
    %44 = vector.load %arg2[%43, %c0_38] : memref<50x32xf32, #tpu.memory_space<vmem>>, vector<1x32xf32>
    %c17 = arith.constant 17 : index
    %c0_39 = arith.constant 0 : index
    %45 = vector.load %arg20[%c17, %c0_39] : memref<64x32xf32, #tpu.memory_space<vmem>>, vector<1x32xf32>
    tpu.vector_store %arg20[%c17, %c0_39], %44 {strides = array<i32>} : memref<64x32xf32, #tpu.memory_space<vmem>>, vector<1x32xf32>,
    %c1_40 = arith.constant 1 : index
    %c3_41 = arith.constant 3 : index
    %46 = memref.load %arg0[%c1_40, %c3_41] : memref<2x8xi32, #tpu.memory_space<smem>>
    %47 = arith.index_cast %46 : i32 to index
    %c0_42 = arith.constant 0 : index
    %48 = vector.load %arg2[%47, %c0_42] : memref<50x32xf32, #tpu.memory_space<vmem>>, vector<1x32xf32>
    %c25 = arith.constant 25 : index
    %c0_43 = arith.constant 0 : index
    %49 = vector.load %arg20[%c25, %c0_43] : memref<64x32xf32, #tpu.memory_space<vmem>>, vector<1x32xf32>
    tpu.vector_store %arg20[%c25, %c0_43], %48 {strides = array<i32>} : memref<64x32xf32, #tpu.memory_space<vmem>>, vector<1x32xf32>,
    %c1_44 = arith.constant 1 : index
    %c4_45 = arith.constant 4 : index
    %50 = memref.load %arg0[%c1_44, %c4_45] : memref<2x8xi32, #tpu.memory_space<smem>>
    %51 = arith.index_cast %50 : i32 to index
    %c0_46 = arith.constant 0 : index
    %52 = vector.load %arg2[%51, %c0_46] : memref<50x32xf32, #tpu.memory_space<vmem>>, vector<1x32xf32>
    %c33 = arith.constant 33 : index
    %c0_47 = arith.constant 0 : index
    %53 = vector.load %arg20[%c33, %c0_47] : memref<64x32xf32, #tpu.memory_space<vmem>>, vector<1x32xf32>
    tpu.vector_store %arg20[%c33, %c0_47], %52 {strides = array<i32>} : memref<64x32xf32, #tpu.memory_space<vmem>>, vector<1x32xf32>,
    %c1_48 = arith.constant 1 : index
    %c5_49 = arith.constant 5 : index
    %54 = memref.load %arg0[%c1_48, %c5_49] : memref<2x8xi32, #tpu.memory_space<smem>>
    %55 = arith.index_cast %54 : i32 to index
    %c0_50 = arith.constant 0 : index
    %56 = vector.load %arg2[%55, %c0_50] : memref<50x32xf32, #tpu.memory_space<vmem>>, vector<1x32xf32>
    %c41 = arith.constant 41 : index
    %c0_51 = arith.constant 0 : index
    %57 = vector.load %arg20[%c41, %c0_51] : memref<64x32xf32, #tpu.memory_space<vmem>>, vector<1x32xf32>
    tpu.vector_store %arg20[%c41, %c0_51], %56 {strides = array<i32>} : memref<64x32xf32, #tpu.memory_space<vmem>>, vector<1x32xf32>,
    %c1_52 = arith.constant 1 : index
    %c6_53 = arith.constant 6 : index
    %58 = memref.load %arg0[%c1_52, %c6_53] : memref<2x8xi32, #tpu.memory_space<smem>>
    %59 = arith.index_cast %58 : i32 to index
    %c0_54 = arith.constant 0 : index
    %60 = vector.load %arg2[%59, %c0_54] : memref<50x32xf32, #tpu.memory_space<vmem>>, vector<1x32xf32>
    %c49 = arith.constant 49 : index
    %c0_55 = arith.constant 0 : index
    %61 = vector.load %arg20[%c49, %c0_55] : memref<64x32xf32, #tpu.memory_space<vmem>>, vector<1x32xf32>
    tpu.vector_store %arg20[%c49, %c0_55], %60 {strides = array<i32>} : memref<64x32xf32, #tpu.memory_space<vmem>>, vector<1x32xf32>,
    %c1_56 = arith.constant 1 : index
    %c7_57 = arith.constant 7 : index
    %62 = memref.load %arg0[%c1_56, %c7_57] : memref<2x8xi32, #tpu.memory_space<smem>>
    %63 = arith.index_cast %62 : i32 to index
    %c0_58 = arith.constant 0 : index
    %64 = vector.load %arg2[%63, %c0_58] : memref<50x32xf32, #tpu.memory_space<vmem>>, vector<1x32xf32>
    %c57 = arith.constant 57 : index
    %c0_59 = arith.constant 0 : index
    %65 = vector.load %arg20[%c57, %c0_59] : memref<64x32xf32, #tpu.memory_space<vmem>>, vector<1x32xf32>
    tpu.vector_store %arg20[%c57, %c0_59], %64 {strides = array<i32>} : memref<64x32xf32, #tpu.memory_space<vmem>>, vector<1x32xf32>,
    %c0_60 = arith.constant 0 : index
    %c0_61 = arith.constant 0 : index
    %66 = vector.load %arg20[%c0_60, %c0_61] : memref<64x32xf32, #tpu.memory_space<vmem>>, vector<64x32xf32>
    %c0_62 = arith.constant 0 : index
    %c0_63 = arith.constant 0 : index
    %67 = vector.load %arg3[%c0_62, %c0_63] : memref<32x256xf32, #tpu.memory_space<vmem>>, vector<32x256xf32>
    %cst_64 = arith.constant dense<0.000000e+00> : vector<64x256xf32>
    %68 = tpu.matmul %66, %67, %cst_64 {dimension_numbers = #tpu.dot_dimension_numbers<[1], [0], [0], [1], [0, 0, 1, 1], [], []>} : vector<64x32xf32>, vector<32x256xf32>, vector<64x256xf32> -> vector<64x256xf32>
    %c0_65 = arith.constant 0 : index
    %c0_66 = arith.constant 0 : index
    %69 = vector.load %arg4[%c0_65, %c0_66] : memref<1x256xf32, #tpu.memory_space<vmem>>, vector<1x256xf32>
    %70 = vector.broadcast %69 : vector<1x256xf32> to vector<64x256xf32>
    %71 = arith.addf %68, %70 : vector<64x256xf32>
    %c0_67 = arith.constant 0 : index
    %c0_68 = arith.constant 0 : index
    %72 = vector.load %arg21[%c0_67, %c0_68] : memref<64x256xf32, #tpu.memory_space<vmem>>, vector<64x256xf32>
    tpu.vector_store %arg21[%c0_67, %c0_68], %71 {strides = array<i32>} : memref<64x256xf32, #tpu.memory_space<vmem>>, vector<64x256xf32>,
    %c0_69 = arith.constant 0 : index
    %c0_70 = arith.constant 0 : index
    %73 = vector.load %arg5[%c0_69, %c0_70] : memref<32x128xf32, #tpu.memory_space<vmem>>, vector<32x128xf32>
    %c0_71 = arith.constant 0 : index
    %c0_72 = arith.constant 0 : index
    %74 = vector.load %arg6[%c0_71, %c0_72] : memref<32x128xf32, #tpu.memory_space<vmem>>, vector<32x128xf32>
    %cst_73 = arith.constant 0.000000e+00 : f32
    %75 = vector.broadcast %cst_73 : f32 to vector<8x32xf32>
    %c0_74 = arith.constant 0 : index
    %c0_75 = arith.constant 0 : index
    %76 = vector.load %arg21[%c0_74, %c0_75] : memref<64x256xf32, #tpu.memory_space<vmem>>, vector<8x128xf32>
    %c56_76 = arith.constant 56 : index
    %c128 = arith.constant 128 : index
    %77 = vector.load %arg21[%c56_76, %c128] : memref<64x256xf32, #tpu.memory_space<vmem>>, vector<8x128xf32>
    %78 = vector.extract_strided_slice %76 {offsets = [0, 0], sizes = [8, 96], strides = [1, 1]} : vector<8x128xf32> to vector<8x96xf32>
    %79 = arith.negf %78 : vector<8x96xf32>
    %80 = math.exp %79 : vector<8x96xf32>
    %cst_77 = arith.constant 1.000000e+00 : f32
    %81 = vector.broadcast %cst_77 : f32 to vector<8x96xf32>
    %82 = arith.addf %81, %80 : vector<8x96xf32>
    %83 = arith.divf %81, %82 : vector<8x96xf32>
    %84 = vector.extract_strided_slice %76 {offsets = [0, 96], sizes = [8, 32], strides = [1, 1]} : vector<8x128xf32> to vector<8x32xf32>
    %85 = math.tanh %84 : vector<8x32xf32>
    %86 = vector.extract_strided_slice %83 {offsets = [0, 32], sizes = [8, 32], strides = [1, 1]} : vector<8x96xf32> to vector<8x32xf32>
    %87 = arith.mulf %86, %75 : vector<8x32xf32>
    %88 = vector.extract_strided_slice %83 {offsets = [0, 0], sizes = [8, 32], strides = [1, 1]} : vector<8x96xf32> to vector<8x32xf32>
    %89 = arith.mulf %88, %85 : vector<8x32xf32>
    %90 = arith.addf %87, %89 : vector<8x32xf32>
    %91 = vector.extract_strided_slice %83 {offsets = [0, 64], sizes = [8, 32], strides = [1, 1]} : vector<8x96xf32> to vector<8x32xf32>
    %92 = math.tanh %90 : vector<8x32xf32>
    %93 = arith.mulf %91, %92 : vector<8x32xf32>
    %94 = vector.extract_strided_slice %77 {offsets = [0, 0], sizes = [8, 96], strides = [1, 1]} : vector<8x128xf32> to vector<8x96xf32>
    %95 = arith.negf %94 : vector<8x96xf32>
    %96 = math.exp %95 : vector<8x96xf32>
    %cst_78 = arith.constant 1.000000e+00 : f32
    %97 = vector.broadcast %cst_78 : f32 to vector<8x96xf32>
    %98 = arith.addf %97, %96 : vector<8x96xf32>
    %99 = arith.divf %97, %98 : vector<8x96xf32>
    %100 = vector.extract_strided_slice %77 {offsets = [0, 96], sizes = [8, 32], strides = [1, 1]} : vector<8x128xf32> to vector<8x32xf32>
    %101 = math.tanh %100 : vector<8x32xf32>
    %102 = vector.extract_strided_slice %99 {offsets = [0, 32], sizes = [8, 32], strides = [1, 1]} : vector<8x96xf32> to vector<8x32xf32>
    %103 = arith.mulf %102, %75 : vector<8x32xf32>
    %104 = vector.extract_strided_slice %99 {offsets = [0, 0], sizes = [8, 32], strides = [1, 1]} : vector<8x96xf32> to vector<8x32xf32>
    %105 = arith.mulf %104, %101 : vector<8x32xf32>
    %106 = arith.addf %103, %105 : vector<8x32xf32>
    %107 = vector.extract_strided_slice %99 {offsets = [0, 64], sizes = [8, 32], strides = [1, 1]} : vector<8x96xf32> to vector<8x32xf32>
    %108 = math.tanh %106 : vector<8x32xf32>
    %109 = arith.mulf %107, %108 : vector<8x32xf32>
    %c0_79 = arith.constant 0 : index
    %c0_80 = arith.constant 0 : index
    %110 = vector.load %arg22[%c0_79, %c0_80] : memref<64x64xf32, #tpu.memory_space<vmem>>, vector<8x32xf32>
    tpu.vector_store %arg22[%c0_79, %c0_80], %93 {strides = array<i32>} : memref<64x64xf32, #tpu.memory_space<vmem>>, vector<8x32xf32>,
    %c56_81 = arith.constant 56 : index
    %c32_82 = arith.constant 32 : index
    %111 = vector.load %arg22[%c56_81, %c32_82] : memref<64x64xf32, #tpu.memory_space<vmem>>, vector<8x32xf32>
    tpu.vector_store %arg22[%c56_81, %c32_82], %109 {strides = array<i32>} : memref<64x64xf32, #tpu.memory_space<vmem>>, vector<8x32xf32>,
    %c8_83 = arith.constant 8 : index
    %c0_84 = arith.constant 0 : index
    %112 = vector.load %arg21[%c8_83, %c0_84] : memref<64x256xf32, #tpu.memory_space<vmem>>, vector<8x128xf32>
    %c48_85 = arith.constant 48 : index
    %c128_86 = arith.constant 128 : index
    %113 = vector.load %arg21[%c48_85, %c128_86] : memref<64x256xf32, #tpu.memory_space<vmem>>, vector<8x128xf32>
    %cst_87 = arith.constant dense<0.000000e+00> : vector<8x128xf32>
    %114 = tpu.matmul %93, %73, %cst_87 {dimension_numbers = #tpu.dot_dimension_numbers<[1], [0], [0], [1], [0, 0, 1, 1], [], []>} : vector<8x32xf32>, vector<32x128xf32>, vector<8x128xf32> -> vector<8x128xf32>
    %115 = arith.addf %112, %114 : vector<8x128xf32>
    %cst_88 = arith.constant dense<0.000000e+00> : vector<8x128xf32>
    %116 = tpu.matmul %109, %74, %cst_88 {dimension_numbers = #tpu.dot_dimension_numbers<[1], [0], [0], [1], [0, 0, 1, 1], [], []>} : vector<8x32xf32>, vector<32x128xf32>, vector<8x128xf32> -> vector<8x128xf32>
    %117 = arith.addf %113, %116 : vector<8x128xf32>
    %118 = vector.extract_strided_slice %115 {offsets = [0, 0], sizes = [8, 96], strides = [1, 1]} : vector<8x128xf32> to vector<8x96xf32>
    %119 = arith.negf %118 : vector<8x96xf32>
    %120 = math.exp %119 : vector<8x96xf32>
    %cst_89 = arith.constant 1.000000e+00 : f32
    %121 = vector.broadcast %cst_89 : f32 to vector<8x96xf32>
    %122 = arith.addf %121, %120 : vector<8x96xf32>
    %123 = arith.divf %121, %122 : vector<8x96xf32>
    %124 = vector.extract_strided_slice %115 {offsets = [0, 96], sizes = [8, 32], strides = [1, 1]} : vector<8x128xf32> to vector<8x32xf32>
    %125 = math.tanh %124 : vector<8x32xf32>
    %126 = vector.extract_strided_slice %123 {offsets = [0, 32], sizes = [8, 32], strides = [1, 1]} : vector<8x96xf32> to vector<8x32xf32>
    %127 = arith.mulf %126, %90 : vector<8x32xf32>
    %128 = vector.extract_strided_slice %123 {offsets = [0, 0], sizes = [8, 32], strides = [1, 1]} : vector<8x96xf32> to vector<8x32xf32>
    %129 = arith.mulf %128, %125 : vector<8x32xf32>
    %130 = arith.addf %127, %129 : vector<8x32xf32>
    %131 = vector.extract_strided_slice %123 {offsets = [0, 64], sizes = [8, 32], strides = [1, 1]} : vector<8x96xf32> to vector<8x32xf32>
    %132 = math.tanh %130 : vector<8x32xf32>
    %133 = arith.mulf %131, %132 : vector<8x32xf32>
    %134 = vector.extract_strided_slice %117 {offsets = [0, 0], sizes = [8, 96], strides = [1, 1]} : vector<8x128xf32> to vector<8x96xf32>
    %135 = arith.negf %134 : vector<8x96xf32>
    %136 = math.exp %135 : vector<8x96xf32>
    %cst_90 = arith.constant 1.000000e+00 : f32
    %137 = vector.broadcast %cst_90 : f32 to vector<8x96xf32>
    %138 = arith.addf %137, %136 : vector<8x96xf32>
    %139 = arith.divf %137, %138 : vector<8x96xf32>
    %140 = vector.extract_strided_slice %117 {offsets = [0, 96], sizes = [8, 32], strides = [1, 1]} : vector<8x128xf32> to vector<8x32xf32>
    %141 = math.tanh %140 : vector<8x32xf32>
    %142 = vector.extract_strided_slice %139 {offsets = [0, 32], sizes = [8, 32], strides = [1, 1]} : vector<8x96xf32> to vector<8x32xf32>
    %143 = arith.mulf %142, %106 : vector<8x32xf32>
    %144 = vector.extract_strided_slice %139 {offsets = [0, 0], sizes = [8, 32], strides = [1, 1]} : vector<8x96xf32> to vector<8x32xf32>
    %145 = arith.mulf %144, %141 : vector<8x32xf32>
    %146 = arith.addf %143, %145 : vector<8x32xf32>
    %147 = vector.extract_strided_slice %139 {offsets = [0, 64], sizes = [8, 32], strides = [1, 1]} : vector<8x96xf32> to vector<8x32xf32>
    %148 = math.tanh %146 : vector<8x32xf32>
    %149 = arith.mulf %147, %148 : vector<8x32xf32>
    %c8_91 = arith.constant 8 : index
    %c0_92 = arith.constant 0 : index
    %150 = vector.load %arg22[%c8_91, %c0_92] : memref<64x64xf32, #tpu.memory_space<vmem>>, vector<8x32xf32>
    tpu.vector_store %arg22[%c8_91, %c0_92], %133 {strides = array<i32>} : memref<64x64xf32, #tpu.memory_space<vmem>>, vector<8x32xf32>,
    %c48_93 = arith.constant 48 : index
    %c32_94 = arith.constant 32 : index
    %151 = vector.load %arg22[%c48_93, %c32_94] : memref<64x64xf32, #tpu.memory_space<vmem>>, vector<8x32xf32>
    tpu.vector_store %arg22[%c48_93, %c32_94], %149 {strides = array<i32>} : memref<64x64xf32, #tpu.memory_space<vmem>>, vector<8x32xf32>,
    %c16_95 = arith.constant 16 : index
    %c0_96 = arith.constant 0 : index
    %152 = vector.load %arg21[%c16_95, %c0_96] : memref<64x256xf32, #tpu.memory_space<vmem>>, vector<8x128xf32>
    %c40_97 = arith.constant 40 : index
    %c128_98 = arith.constant 128 : index
    %153 = vector.load %arg21[%c40_97, %c128_98] : memref<64x256xf32, #tpu.memory_space<vmem>>, vector<8x128xf32>
    %cst_99 = arith.constant dense<0.000000e+00> : vector<8x128xf32>
    %154 = tpu.matmul %133, %73, %cst_99 {dimension_numbers = #tpu.dot_dimension_numbers<[1], [0], [0], [1], [0, 0, 1, 1], [], []>} : vector<8x32xf32>, vector<32x128xf32>, vector<8x128xf32> -> vector<8x128xf32>
    %155 = arith.addf %152, %154 : vector<8x128xf32>
    %cst_100 = arith.constant dense<0.000000e+00> : vector<8x128xf32>
    %156 = tpu.matmul %149, %74, %cst_100 {dimension_numbers = #tpu.dot_dimension_numbers<[1], [0], [0], [1], [0, 0, 1, 1], [], []>} : vector<8x32xf32>, vector<32x128xf32>, vector<8x128xf32> -> vector<8x128xf32>
    %157 = arith.addf %153, %156 : vector<8x128xf32>
    %158 = vector.extract_strided_slice %155 {offsets = [0, 0], sizes = [8, 96], strides = [1, 1]} : vector<8x128xf32> to vector<8x96xf32>
    %159 = arith.negf %158 : vector<8x96xf32>
    %160 = math.exp %159 : vector<8x96xf32>
    %cst_101 = arith.constant 1.000000e+00 : f32
    %161 = vector.broadcast %cst_101 : f32 to vector<8x96xf32>
    %162 = arith.addf %161, %160 : vector<8x96xf32>
    %163 = arith.divf %161, %162 : vector<8x96xf32>
    %164 = vector.extract_strided_slice %155 {offsets = [0, 96], sizes = [8, 32], strides = [1, 1]} : vector<8x128xf32> to vector<8x32xf32>
    %165 = math.tanh %164 : vector<8x32xf32>
    %166 = vector.extract_strided_slice %163 {offsets = [0, 32], sizes = [8, 32], strides = [1, 1]} : vector<8x96xf32> to vector<8x32xf32>
    %167 = arith.mulf %166, %130 : vector<8x32xf32>
    %168 = vector.extract_strided_slice %163 {offsets = [0, 0], sizes = [8, 32], strides = [1, 1]} : vector<8x96xf32> to vector<8x32xf32>
    %169 = arith.mulf %168, %165 : vector<8x32xf32>
    %170 = arith.addf %167, %169 : vector<8x32xf32>
    %171 = vector.extract_strided_slice %163 {offsets = [0, 64], sizes = [8, 32], strides = [1, 1]} : vector<8x96xf32> to vector<8x32xf32>
    %172 = math.tanh %170 : vector<8x32xf32>
    %173 = arith.mulf %171, %172 : vector<8x32xf32>
    %174 = vector.extract_strided_slice %157 {offsets = [0, 0], sizes = [8, 96], strides = [1, 1]} : vector<8x128xf32> to vector<8x96xf32>
    %175 = arith.negf %174 : vector<8x96xf32>
    %176 = math.exp %175 : vector<8x96xf32>
    %cst_102 = arith.constant 1.000000e+00 : f32
    %177 = vector.broadcast %cst_102 : f32 to vector<8x96xf32>
    %178 = arith.addf %177, %176 : vector<8x96xf32>
    %179 = arith.divf %177, %178 : vector<8x96xf32>
    %180 = vector.extract_strided_slice %157 {offsets = [0, 96], sizes = [8, 32], strides = [1, 1]} : vector<8x128xf32> to vector<8x32xf32>
    %181 = math.tanh %180 : vector<8x32xf32>
    %182 = vector.extract_strided_slice %179 {offsets = [0, 32], sizes = [8, 32], strides = [1, 1]} : vector<8x96xf32> to vector<8x32xf32>
    %183 = arith.mulf %182, %146 : vector<8x32xf32>
    %184 = vector.extract_strided_slice %179 {offsets = [0, 0], sizes = [8, 32], strides = [1, 1]} : vector<8x96xf32> to vector<8x32xf32>
    %185 = arith.mulf %184, %181 : vector<8x32xf32>
    %186 = arith.addf %183, %185 : vector<8x32xf32>
    %187 = vector.extract_strided_slice %179 {offsets = [0, 64], sizes = [8, 32], strides = [1, 1]} : vector<8x96xf32> to vector<8x32xf32>
    %188 = math.tanh %186 : vector<8x32xf32>
    %189 = arith.mulf %187, %188 : vector<8x32xf32>
    %c16_103 = arith.constant 16 : index
    %c0_104 = arith.constant 0 : index
    %190 = vector.load %arg22[%c16_103, %c0_104] : memref<64x64xf32, #tpu.memory_space<vmem>>, vector<8x32xf32>
    tpu.vector_store %arg22[%c16_103, %c0_104], %173 {strides = array<i32>} : memref<64x64xf32, #tpu.memory_space<vmem>>, vector<8x32xf32>,
    %c40_105 = arith.constant 40 : index
    %c32_106 = arith.constant 32 : index
    %191 = vector.load %arg22[%c40_105, %c32_106] : memref<64x64xf32, #tpu.memory_space<vmem>>, vector<8x32xf32>
    tpu.vector_store %arg22[%c40_105, %c32_106], %189 {strides = array<i32>} : memref<64x64xf32, #tpu.memory_space<vmem>>, vector<8x32xf32>,
    %c24_107 = arith.constant 24 : index
    %c0_108 = arith.constant 0 : index
    %192 = vector.load %arg21[%c24_107, %c0_108] : memref<64x256xf32, #tpu.memory_space<vmem>>, vector<8x128xf32>
    %c32_109 = arith.constant 32 : index
    %c128_110 = arith.constant 128 : index
    %193 = vector.load %arg21[%c32_109, %c128_110] : memref<64x256xf32, #tpu.memory_space<vmem>>, vector<8x128xf32>
    %cst_111 = arith.constant dense<0.000000e+00> : vector<8x128xf32>
    %194 = tpu.matmul %173, %73, %cst_111 {dimension_numbers = #tpu.dot_dimension_numbers<[1], [0], [0], [1], [0, 0, 1, 1], [], []>} : vector<8x32xf32>, vector<32x128xf32>, vector<8x128xf32> -> vector<8x128xf32>
    %195 = arith.addf %192, %194 : vector<8x128xf32>
    %cst_112 = arith.constant dense<0.000000e+00> : vector<8x128xf32>
    %196 = tpu.matmul %189, %74, %cst_112 {dimension_numbers = #tpu.dot_dimension_numbers<[1], [0], [0], [1], [0, 0, 1, 1], [], []>} : vector<8x32xf32>, vector<32x128xf32>, vector<8x128xf32> -> vector<8x128xf32>
    %197 = arith.addf %193, %196 : vector<8x128xf32>
    %198 = vector.extract_strided_slice %195 {offsets = [0, 0], sizes = [8, 96], strides = [1, 1]} : vector<8x128xf32> to vector<8x96xf32>
    %199 = arith.negf %198 : vector<8x96xf32>
    %200 = math.exp %199 : vector<8x96xf32>
    %cst_113 = arith.constant 1.000000e+00 : f32
    %201 = vector.broadcast %cst_113 : f32 to vector<8x96xf32>
    %202 = arith.addf %201, %200 : vector<8x96xf32>
    %203 = arith.divf %201, %202 : vector<8x96xf32>
    %204 = vector.extract_strided_slice %195 {offsets = [0, 96], sizes = [8, 32], strides = [1, 1]} : vector<8x128xf32> to vector<8x32xf32>
    %205 = math.tanh %204 : vector<8x32xf32>
    %206 = vector.extract_strided_slice %203 {offsets = [0, 32], sizes = [8, 32], strides = [1, 1]} : vector<8x96xf32> to vector<8x32xf32>
    %207 = arith.mulf %206, %170 : vector<8x32xf32>
    %208 = vector.extract_strided_slice %203 {offsets = [0, 0], sizes = [8, 32], strides = [1, 1]} : vector<8x96xf32> to vector<8x32xf32>
    %209 = arith.mulf %208, %205 : vector<8x32xf32>
    %210 = arith.addf %207, %209 : vector<8x32xf32>
    %211 = vector.extract_strided_slice %203 {offsets = [0, 64], sizes = [8, 32], strides = [1, 1]} : vector<8x96xf32> to vector<8x32xf32>
    %212 = math.tanh %210 : vector<8x32xf32>
    %213 = arith.mulf %211, %212 : vector<8x32xf32>
    %214 = vector.extract_strided_slice %197 {offsets = [0, 0], sizes = [8, 96], strides = [1, 1]} : vector<8x128xf32> to vector<8x96xf32>
    %215 = arith.negf %214 : vector<8x96xf32>
    %216 = math.exp %215 : vector<8x96xf32>
    %cst_114 = arith.constant 1.000000e+00 : f32
    %217 = vector.broadcast %cst_114 : f32 to vector<8x96xf32>
    %218 = arith.addf %217, %216 : vector<8x96xf32>
    %219 = arith.divf %217, %218 : vector<8x96xf32>
    %220 = vector.extract_strided_slice %197 {offsets = [0, 96], sizes = [8, 32], strides = [1, 1]} : vector<8x128xf32> to vector<8x32xf32>
    %221 = math.tanh %220 : vector<8x32xf32>
    %222 = vector.extract_strided_slice %219 {offsets = [0, 32], sizes = [8, 32], strides = [1, 1]} : vector<8x96xf32> to vector<8x32xf32>
    %223 = arith.mulf %222, %186 : vector<8x32xf32>
    %224 = vector.extract_strided_slice %219 {offsets = [0, 0], sizes = [8, 32], strides = [1, 1]} : vector<8x96xf32> to vector<8x32xf32>
    %225 = arith.mulf %224, %221 : vector<8x32xf32>
    %226 = arith.addf %223, %225 : vector<8x32xf32>
    %227 = vector.extract_strided_slice %219 {offsets = [0, 64], sizes = [8, 32], strides = [1, 1]} : vector<8x96xf32> to vector<8x32xf32>
    %228 = math.tanh %226 : vector<8x32xf32>
    %229 = arith.mulf %227, %228 : vector<8x32xf32>
    %c24_115 = arith.constant 24 : index
    %c0_116 = arith.constant 0 : index
    %230 = vector.load %arg22[%c24_115, %c0_116] : memref<64x64xf32, #tpu.memory_space<vmem>>, vector<8x32xf32>
    tpu.vector_store %arg22[%c24_115, %c0_116], %213 {strides = array<i32>} : memref<64x64xf32, #tpu.memory_space<vmem>>, vector<8x32xf32>,
    %c32_117 = arith.constant 32 : index
    %c32_118 = arith.constant 32 : index
    %231 = vector.load %arg22[%c32_117, %c32_118] : memref<64x64xf32, #tpu.memory_space<vmem>>, vector<8x32xf32>
    tpu.vector_store %arg22[%c32_117, %c32_118], %229 {strides = array<i32>} : memref<64x64xf32, #tpu.memory_space<vmem>>, vector<8x32xf32>,
    %c32_119 = arith.constant 32 : index
    %c0_120 = arith.constant 0 : index
    %232 = vector.load %arg21[%c32_119, %c0_120] : memref<64x256xf32, #tpu.memory_space<vmem>>, vector<8x128xf32>
    %c24_121 = arith.constant 24 : index
    %c128_122 = arith.constant 128 : index
    %233 = vector.load %arg21[%c24_121, %c128_122] : memref<64x256xf32, #tpu.memory_space<vmem>>, vector<8x128xf32>
    %cst_123 = arith.constant dense<0.000000e+00> : vector<8x128xf32>
    %234 = tpu.matmul %213, %73, %cst_123 {dimension_numbers = #tpu.dot_dimension_numbers<[1], [0], [0], [1], [0, 0, 1, 1], [], []>} : vector<8x32xf32>, vector<32x128xf32>, vector<8x128xf32> -> vector<8x128xf32>
    %235 = arith.addf %232, %234 : vector<8x128xf32>
    %cst_124 = arith.constant dense<0.000000e+00> : vector<8x128xf32>
    %236 = tpu.matmul %229, %74, %cst_124 {dimension_numbers = #tpu.dot_dimension_numbers<[1], [0], [0], [1], [0, 0, 1, 1], [], []>} : vector<8x32xf32>, vector<32x128xf32>, vector<8x128xf32> -> vector<8x128xf32>
    %237 = arith.addf %233, %236 : vector<8x128xf32>
    %238 = vector.extract_strided_slice %235 {offsets = [0, 0], sizes = [8, 96], strides = [1, 1]} : vector<8x128xf32> to vector<8x96xf32>
    %239 = arith.negf %238 : vector<8x96xf32>
    %240 = math.exp %239 : vector<8x96xf32>
    %cst_125 = arith.constant 1.000000e+00 : f32
    %241 = vector.broadcast %cst_125 : f32 to vector<8x96xf32>
    %242 = arith.addf %241, %240 : vector<8x96xf32>
    %243 = arith.divf %241, %242 : vector<8x96xf32>
    %244 = vector.extract_strided_slice %235 {offsets = [0, 96], sizes = [8, 32], strides = [1, 1]} : vector<8x128xf32> to vector<8x32xf32>
    %245 = math.tanh %244 : vector<8x32xf32>
    %246 = vector.extract_strided_slice %243 {offsets = [0, 32], sizes = [8, 32], strides = [1, 1]} : vector<8x96xf32> to vector<8x32xf32>
    %247 = arith.mulf %246, %210 : vector<8x32xf32>
    %248 = vector.extract_strided_slice %243 {offsets = [0, 0], sizes = [8, 32], strides = [1, 1]} : vector<8x96xf32> to vector<8x32xf32>
    %249 = arith.mulf %248, %245 : vector<8x32xf32>
    %250 = arith.addf %247, %249 : vector<8x32xf32>
    %251 = vector.extract_strided_slice %243 {offsets = [0, 64], sizes = [8, 32], strides = [1, 1]} : vector<8x96xf32> to vector<8x32xf32>
    %252 = math.tanh %250 : vector<8x32xf32>
    %253 = arith.mulf %251, %252 : vector<8x32xf32>
    %254 = vector.extract_strided_slice %237 {offsets = [0, 0], sizes = [8, 96], strides = [1, 1]} : vector<8x128xf32> to vector<8x96xf32>
    %255 = arith.negf %254 : vector<8x96xf32>
    %256 = math.exp %255 : vector<8x96xf32>
    %cst_126 = arith.constant 1.000000e+00 : f32
    %257 = vector.broadcast %cst_126 : f32 to vector<8x96xf32>
    %258 = arith.addf %257, %256 : vector<8x96xf32>
    %259 = arith.divf %257, %258 : vector<8x96xf32>
    %260 = vector.extract_strided_slice %237 {offsets = [0, 96], sizes = [8, 32], strides = [1, 1]} : vector<8x128xf32> to vector<8x32xf32>
    %261 = math.tanh %260 : vector<8x32xf32>
    %262 = vector.extract_strided_slice %259 {offsets = [0, 32], sizes = [8, 32], strides = [1, 1]} : vector<8x96xf32> to vector<8x32xf32>
    %263 = arith.mulf %262, %226 : vector<8x32xf32>
    %264 = vector.extract_strided_slice %259 {offsets = [0, 0], sizes = [8, 32], strides = [1, 1]} : vector<8x96xf32> to vector<8x32xf32>
    %265 = arith.mulf %264, %261 : vector<8x32xf32>
    %266 = arith.addf %263, %265 : vector<8x32xf32>
    %267 = vector.extract_strided_slice %259 {offsets = [0, 64], sizes = [8, 32], strides = [1, 1]} : vector<8x96xf32> to vector<8x32xf32>
    %268 = math.tanh %266 : vector<8x32xf32>
    %269 = arith.mulf %267, %268 : vector<8x32xf32>
    %c32_127 = arith.constant 32 : index
    %c0_128 = arith.constant 0 : index
    %270 = vector.load %arg22[%c32_127, %c0_128] : memref<64x64xf32, #tpu.memory_space<vmem>>, vector<8x32xf32>
    tpu.vector_store %arg22[%c32_127, %c0_128], %253 {strides = array<i32>} : memref<64x64xf32, #tpu.memory_space<vmem>>, vector<8x32xf32>,
    %c24_129 = arith.constant 24 : index
    %c32_130 = arith.constant 32 : index
    %271 = vector.load %arg22[%c24_129, %c32_130] : memref<64x64xf32, #tpu.memory_space<vmem>>, vector<8x32xf32>
    tpu.vector_store %arg22[%c24_129, %c32_130], %269 {strides = array<i32>} : memref<64x64xf32, #tpu.memory_space<vmem>>, vector<8x32xf32>,
    %c40_131 = arith.constant 40 : index
    %c0_132 = arith.constant 0 : index
    %272 = vector.load %arg21[%c40_131, %c0_132] : memref<64x256xf32, #tpu.memory_space<vmem>>, vector<8x128xf32>
    %c16_133 = arith.constant 16 : index
    %c128_134 = arith.constant 128 : index
    %273 = vector.load %arg21[%c16_133, %c128_134] : memref<64x256xf32, #tpu.memory_space<vmem>>, vector<8x128xf32>
    %cst_135 = arith.constant dense<0.000000e+00> : vector<8x128xf32>
    %274 = tpu.matmul %253, %73, %cst_135 {dimension_numbers = #tpu.dot_dimension_numbers<[1], [0], [0], [1], [0, 0, 1, 1], [], []>} : vector<8x32xf32>, vector<32x128xf32>, vector<8x128xf32> -> vector<8x128xf32>
    %275 = arith.addf %272, %274 : vector<8x128xf32>
    %cst_136 = arith.constant dense<0.000000e+00> : vector<8x128xf32>
    %276 = tpu.matmul %269, %74, %cst_136 {dimension_numbers = #tpu.dot_dimension_numbers<[1], [0], [0], [1], [0, 0, 1, 1], [], []>} : vector<8x32xf32>, vector<32x128xf32>, vector<8x128xf32> -> vector<8x128xf32>
    %277 = arith.addf %273, %276 : vector<8x128xf32>
    %278 = vector.extract_strided_slice %275 {offsets = [0, 0], sizes = [8, 96], strides = [1, 1]} : vector<8x128xf32> to vector<8x96xf32>
    %279 = arith.negf %278 : vector<8x96xf32>
    %280 = math.exp %279 : vector<8x96xf32>
    %cst_137 = arith.constant 1.000000e+00 : f32
    %281 = vector.broadcast %cst_137 : f32 to vector<8x96xf32>
    %282 = arith.addf %281, %280 : vector<8x96xf32>
    %283 = arith.divf %281, %282 : vector<8x96xf32>
    %284 = vector.extract_strided_slice %275 {offsets = [0, 96], sizes = [8, 32], strides = [1, 1]} : vector<8x128xf32> to vector<8x32xf32>
    %285 = math.tanh %284 : vector<8x32xf32>
    %286 = vector.extract_strided_slice %283 {offsets = [0, 32], sizes = [8, 32], strides = [1, 1]} : vector<8x96xf32> to vector<8x32xf32>
    %287 = arith.mulf %286, %250 : vector<8x32xf32>
    %288 = vector.extract_strided_slice %283 {offsets = [0, 0], sizes = [8, 32], strides = [1, 1]} : vector<8x96xf32> to vector<8x32xf32>
    %289 = arith.mulf %288, %285 : vector<8x32xf32>
    %290 = arith.addf %287, %289 : vector<8x32xf32>
    %291 = vector.extract_strided_slice %283 {offsets = [0, 64], sizes = [8, 32], strides = [1, 1]} : vector<8x96xf32> to vector<8x32xf32>
    %292 = math.tanh %290 : vector<8x32xf32>
    %293 = arith.mulf %291, %292 : vector<8x32xf32>
    %294 = vector.extract_strided_slice %277 {offsets = [0, 0], sizes = [8, 96], strides = [1, 1]} : vector<8x128xf32> to vector<8x96xf32>
    %295 = arith.negf %294 : vector<8x96xf32>
    %296 = math.exp %295 : vector<8x96xf32>
    %cst_138 = arith.constant 1.000000e+00 : f32
    %297 = vector.broadcast %cst_138 : f32 to vector<8x96xf32>
    %298 = arith.addf %297, %296 : vector<8x96xf32>
    %299 = arith.divf %297, %298 : vector<8x96xf32>
    %300 = vector.extract_strided_slice %277 {offsets = [0, 96], sizes = [8, 32], strides = [1, 1]} : vector<8x128xf32> to vector<8x32xf32>
    %301 = math.tanh %300 : vector<8x32xf32>
    %302 = vector.extract_strided_slice %299 {offsets = [0, 32], sizes = [8, 32], strides = [1, 1]} : vector<8x96xf32> to vector<8x32xf32>
    %303 = arith.mulf %302, %266 : vector<8x32xf32>
    %304 = vector.extract_strided_slice %299 {offsets = [0, 0], sizes = [8, 32], strides = [1, 1]} : vector<8x96xf32> to vector<8x32xf32>
    %305 = arith.mulf %304, %301 : vector<8x32xf32>
    %306 = arith.addf %303, %305 : vector<8x32xf32>
    %307 = vector.extract_strided_slice %299 {offsets = [0, 64], sizes = [8, 32], strides = [1, 1]} : vector<8x96xf32> to vector<8x32xf32>
    %308 = math.tanh %306 : vector<8x32xf32>
    %309 = arith.mulf %307, %308 : vector<8x32xf32>
    %c40_139 = arith.constant 40 : index
    %c0_140 = arith.constant 0 : index
    %310 = vector.load %arg22[%c40_139, %c0_140] : memref<64x64xf32, #tpu.memory_space<vmem>>, vector<8x32xf32>
    tpu.vector_store %arg22[%c40_139, %c0_140], %293 {strides = array<i32>} : memref<64x64xf32, #tpu.memory_space<vmem>>, vector<8x32xf32>,
    %c16_141 = arith.constant 16 : index
    %c32_142 = arith.constant 32 : index
    %311 = vector.load %arg22[%c16_141, %c32_142] : memref<64x64xf32, #tpu.memory_space<vmem>>, vector<8x32xf32>
    tpu.vector_store %arg22[%c16_141, %c32_142], %309 {strides = array<i32>} : memref<64x64xf32, #tpu.memory_space<vmem>>, vector<8x32xf32>,
    %c48_143 = arith.constant 48 : index
    %c0_144 = arith.constant 0 : index
    %312 = vector.load %arg21[%c48_143, %c0_144] : memref<64x256xf32, #tpu.memory_space<vmem>>, vector<8x128xf32>
    %c8_145 = arith.constant 8 : index
    %c128_146 = arith.constant 128 : index
    %313 = vector.load %arg21[%c8_145, %c128_146] : memref<64x256xf32, #tpu.memory_space<vmem>>, vector<8x128xf32>
    %cst_147 = arith.constant dense<0.000000e+00> : vector<8x128xf32>
    %314 = tpu.matmul %293, %73, %cst_147 {dimension_numbers = #tpu.dot_dimension_numbers<[1], [0], [0], [1], [0, 0, 1, 1], [], []>} : vector<8x32xf32>, vector<32x128xf32>, vector<8x128xf32> -> vector<8x128xf32>
    %315 = arith.addf %312, %314 : vector<8x128xf32>
    %cst_148 = arith.constant dense<0.000000e+00> : vector<8x128xf32>
    %316 = tpu.matmul %309, %74, %cst_148 {dimension_numbers = #tpu.dot_dimension_numbers<[1], [0], [0], [1], [0, 0, 1, 1], [], []>} : vector<8x32xf32>, vector<32x128xf32>, vector<8x128xf32> -> vector<8x128xf32>
    %317 = arith.addf %313, %316 : vector<8x128xf32>
    %318 = vector.extract_strided_slice %315 {offsets = [0, 0], sizes = [8, 96], strides = [1, 1]} : vector<8x128xf32> to vector<8x96xf32>
    %319 = arith.negf %318 : vector<8x96xf32>
    %320 = math.exp %319 : vector<8x96xf32>
    %cst_149 = arith.constant 1.000000e+00 : f32
    %321 = vector.broadcast %cst_149 : f32 to vector<8x96xf32>
    %322 = arith.addf %321, %320 : vector<8x96xf32>
    %323 = arith.divf %321, %322 : vector<8x96xf32>
    %324 = vector.extract_strided_slice %315 {offsets = [0, 96], sizes = [8, 32], strides = [1, 1]} : vector<8x128xf32> to vector<8x32xf32>
    %325 = math.tanh %324 : vector<8x32xf32>
    %326 = vector.extract_strided_slice %323 {offsets = [0, 32], sizes = [8, 32], strides = [1, 1]} : vector<8x96xf32> to vector<8x32xf32>
    %327 = arith.mulf %326, %290 : vector<8x32xf32>
    %328 = vector.extract_strided_slice %323 {offsets = [0, 0], sizes = [8, 32], strides = [1, 1]} : vector<8x96xf32> to vector<8x32xf32>
    %329 = arith.mulf %328, %325 : vector<8x32xf32>
    %330 = arith.addf %327, %329 : vector<8x32xf32>
    %331 = vector.extract_strided_slice %323 {offsets = [0, 64], sizes = [8, 32], strides = [1, 1]} : vector<8x96xf32> to vector<8x32xf32>
    %332 = math.tanh %330 : vector<8x32xf32>
    %333 = arith.mulf %331, %332 : vector<8x32xf32>
    %334 = vector.extract_strided_slice %317 {offsets = [0, 0], sizes = [8, 96], strides = [1, 1]} : vector<8x128xf32> to vector<8x96xf32>
    %335 = arith.negf %334 : vector<8x96xf32>
    %336 = math.exp %335 : vector<8x96xf32>
    %cst_150 = arith.constant 1.000000e+00 : f32
    %337 = vector.broadcast %cst_150 : f32 to vector<8x96xf32>
    %338 = arith.addf %337, %336 : vector<8x96xf32>
    %339 = arith.divf %337, %338 : vector<8x96xf32>
    %340 = vector.extract_strided_slice %317 {offsets = [0, 96], sizes = [8, 32], strides = [1, 1]} : vector<8x128xf32> to vector<8x32xf32>
    %341 = math.tanh %340 : vector<8x32xf32>
    %342 = vector.extract_strided_slice %339 {offsets = [0, 32], sizes = [8, 32], strides = [1, 1]} : vector<8x96xf32> to vector<8x32xf32>
    %343 = arith.mulf %342, %306 : vector<8x32xf32>
    %344 = vector.extract_strided_slice %339 {offsets = [0, 0], sizes = [8, 32], strides = [1, 1]} : vector<8x96xf32> to vector<8x32xf32>
    %345 = arith.mulf %344, %341 : vector<8x32xf32>
    %346 = arith.addf %343, %345 : vector<8x32xf32>
    %347 = vector.extract_strided_slice %339 {offsets = [0, 64], sizes = [8, 32], strides = [1, 1]} : vector<8x96xf32> to vector<8x32xf32>
    %348 = math.tanh %346 : vector<8x32xf32>
    %349 = arith.mulf %347, %348 : vector<8x32xf32>
    %c48_151 = arith.constant 48 : index
    %c0_152 = arith.constant 0 : index
    %350 = vector.load %arg22[%c48_151, %c0_152] : memref<64x64xf32, #tpu.memory_space<vmem>>, vector<8x32xf32>
    tpu.vector_store %arg22[%c48_151, %c0_152], %333 {strides = array<i32>} : memref<64x64xf32, #tpu.memory_space<vmem>>, vector<8x32xf32>,
    %c8_153 = arith.constant 8 : index
    %c32_154 = arith.constant 32 : index
    %351 = vector.load %arg22[%c8_153, %c32_154] : memref<64x64xf32, #tpu.memory_space<vmem>>, vector<8x32xf32>
    tpu.vector_store %arg22[%c8_153, %c32_154], %349 {strides = array<i32>} : memref<64x64xf32, #tpu.memory_space<vmem>>, vector<8x32xf32>,
    %c56_155 = arith.constant 56 : index
    %c0_156 = arith.constant 0 : index
    %352 = vector.load %arg21[%c56_155, %c0_156] : memref<64x256xf32, #tpu.memory_space<vmem>>, vector<8x128xf32>
    %c0_157 = arith.constant 0 : index
    %c128_158 = arith.constant 128 : index
    %353 = vector.load %arg21[%c0_157, %c128_158] : memref<64x256xf32, #tpu.memory_space<vmem>>, vector<8x128xf32>
    %cst_159 = arith.constant dense<0.000000e+00> : vector<8x128xf32>
    %354 = tpu.matmul %333, %73, %cst_159 {dimension_numbers = #tpu.dot_dimension_numbers<[1], [0], [0], [1], [0, 0, 1, 1], [], []>} : vector<8x32xf32>, vector<32x128xf32>, vector<8x128xf32> -> vector<8x128xf32>
    %355 = arith.addf %352, %354 : vector<8x128xf32>
    %cst_160 = arith.constant dense<0.000000e+00> : vector<8x128xf32>
    %356 = tpu.matmul %349, %74, %cst_160 {dimension_numbers = #tpu.dot_dimension_numbers<[1], [0], [0], [1], [0, 0, 1, 1], [], []>} : vector<8x32xf32>, vector<32x128xf32>, vector<8x128xf32> -> vector<8x128xf32>
    %357 = arith.addf %353, %356 : vector<8x128xf32>
    %358 = vector.extract_strided_slice %355 {offsets = [0, 0], sizes = [8, 96], strides = [1, 1]} : vector<8x128xf32> to vector<8x96xf32>
    %359 = arith.negf %358 : vector<8x96xf32>
    %360 = math.exp %359 : vector<8x96xf32>
    %cst_161 = arith.constant 1.000000e+00 : f32
    %361 = vector.broadcast %cst_161 : f32 to vector<8x96xf32>
    %362 = arith.addf %361, %360 : vector<8x96xf32>
    %363 = arith.divf %361, %362 : vector<8x96xf32>
    %364 = vector.extract_strided_slice %355 {offsets = [0, 96], sizes = [8, 32], strides = [1, 1]} : vector<8x128xf32> to vector<8x32xf32>
    %365 = math.tanh %364 : vector<8x32xf32>
    %366 = vector.extract_strided_slice %363 {offsets = [0, 32], sizes = [8, 32], strides = [1, 1]} : vector<8x96xf32> to vector<8x32xf32>
    %367 = arith.mulf %366, %330 : vector<8x32xf32>
    %368 = vector.extract_strided_slice %363 {offsets = [0, 0], sizes = [8, 32], strides = [1, 1]} : vector<8x96xf32> to vector<8x32xf32>
    %369 = arith.mulf %368, %365 : vector<8x32xf32>
    %370 = arith.addf %367, %369 : vector<8x32xf32>
    %371 = vector.extract_strided_slice %363 {offsets = [0, 64], sizes = [8, 32], strides = [1, 1]} : vector<8x96xf32> to vector<8x32xf32>
    %372 = math.tanh %370 : vector<8x32xf32>
    %373 = arith.mulf %371, %372 : vector<8x32xf32>
    %374 = vector.extract_strided_slice %357 {offsets = [0, 0], sizes = [8, 96], strides = [1, 1]} : vector<8x128xf32> to vector<8x96xf32>
    %375 = arith.negf %374 : vector<8x96xf32>
    %376 = math.exp %375 : vector<8x96xf32>
    %cst_162 = arith.constant 1.000000e+00 : f32
    %377 = vector.broadcast %cst_162 : f32 to vector<8x96xf32>
    %378 = arith.addf %377, %376 : vector<8x96xf32>
    %379 = arith.divf %377, %378 : vector<8x96xf32>
    %380 = vector.extract_strided_slice %357 {offsets = [0, 96], sizes = [8, 32], strides = [1, 1]} : vector<8x128xf32> to vector<8x32xf32>
    %381 = math.tanh %380 : vector<8x32xf32>
    %382 = vector.extract_strided_slice %379 {offsets = [0, 32], sizes = [8, 32], strides = [1, 1]} : vector<8x96xf32> to vector<8x32xf32>
    %383 = arith.mulf %382, %346 : vector<8x32xf32>
    %384 = vector.extract_strided_slice %379 {offsets = [0, 0], sizes = [8, 32], strides = [1, 1]} : vector<8x96xf32> to vector<8x32xf32>
    %385 = arith.mulf %384, %381 : vector<8x32xf32>
    %386 = arith.addf %383, %385 : vector<8x32xf32>
    %387 = vector.extract_strided_slice %379 {offsets = [0, 64], sizes = [8, 32], strides = [1, 1]} : vector<8x96xf32> to vector<8x32xf32>
    %388 = math.tanh %386 : vector<8x32xf32>
    %389 = arith.mulf %387, %388 : vector<8x32xf32>
    %c56_163 = arith.constant 56 : index
    %c0_164 = arith.constant 0 : index
    %390 = vector.load %arg22[%c56_163, %c0_164] : memref<64x64xf32, #tpu.memory_space<vmem>>, vector<8x32xf32>
    tpu.vector_store %arg22[%c56_163, %c0_164], %373 {strides = array<i32>} : memref<64x64xf32, #tpu.memory_space<vmem>>, vector<8x32xf32>,
    %c0_165 = arith.constant 0 : index
    %c32_166 = arith.constant 32 : index
    %391 = vector.load %arg22[%c0_165, %c32_166] : memref<64x64xf32, #tpu.memory_space<vmem>>, vector<8x32xf32>
    tpu.vector_store %arg22[%c0_165, %c32_166], %389 {strides = array<i32>} : memref<64x64xf32, #tpu.memory_space<vmem>>, vector<8x32xf32>,
    %c0_167 = arith.constant 0 : index
    %c0_168 = arith.constant 0 : index
    %392 = vector.load %arg22[%c0_167, %c0_168] : memref<64x64xf32, #tpu.memory_space<vmem>>, vector<64x64xf32>
    %c0_169 = arith.constant 0 : index
    %c0_170 = arith.constant 0 : index
    %393 = vector.load %arg7[%c0_169, %c0_170] : memref<64x192xf32, #tpu.memory_space<vmem>>, vector<64x192xf32>
    %cst_171 = arith.constant dense<0.000000e+00> : vector<64x192xf32>
    %394 = tpu.matmul %392, %393, %cst_171 {dimension_numbers = #tpu.dot_dimension_numbers<[1], [0], [0], [1], [0, 0, 1, 1], [], []>} : vector<64x64xf32>, vector<64x192xf32>, vector<64x192xf32> -> vector<64x192xf32>
    %c0_172 = arith.constant 0 : index
    %c0_173 = arith.constant 0 : index
    %395 = vector.load %arg8[%c0_172, %c0_173] : memref<1x192xf32, #tpu.memory_space<vmem>>, vector<1x192xf32>
    %396 = vector.broadcast %395 : vector<1x192xf32> to vector<64x192xf32>
    %397 = arith.addf %394, %396 : vector<64x192xf32>
    %c0_174 = arith.constant 0 : index
    %c0_175 = arith.constant 0 : index
    %398 = vector.load %arg23[%c0_174, %c0_175] : memref<64x192xf32, #tpu.memory_space<vmem>>, vector<64x192xf32>
    tpu.vector_store %arg23[%c0_174, %c0_175], %397 {strides = array<i32>} : memref<64x192xf32, #tpu.memory_space<vmem>>, vector<64x192xf32>,
    %c0_176 = arith.constant 0 : index
    %c0_177 = arith.constant 0 : index
    %399 = vector.load %arg11[%c0_176, %c0_177] : memref<32x96xf32, #tpu.memory_space<vmem>>, vector<32x96xf32>
    %c0_178 = arith.constant 0 : index
    %c0_179 = arith.constant 0 : index
    %400 = vector.load %arg12[%c0_178, %c0_179] : memref<32x96xf32, #tpu.memory_space<vmem>>, vector<32x96xf32>
    %c0_180 = arith.constant 0 : index
    %c0_181 = arith.constant 0 : index
    %401 = vector.load %arg9[%c0_180, %c0_181] : memref<1x96xf32, #tpu.memory_space<vmem>>, vector<1x96xf32>
    %402 = vector.shape_cast %401 : vector<1x96xf32> to vector<1x96xf32>
    %403 = vector.broadcast %402 : vector<1x96xf32> to vector<8x96xf32>
    %c0_182 = arith.constant 0 : index
    %c0_183 = arith.constant 0 : index
    %404 = vector.load %arg10[%c0_182, %c0_183] : memref<1x96xf32, #tpu.memory_space<vmem>>, vector<1x96xf32>
    %405 = vector.shape_cast %404 : vector<1x96xf32> to vector<1x96xf32>
    %406 = vector.broadcast %405 : vector<1x96xf32> to vector<8x96xf32>
    %c0_184 = arith.constant 0 : index
    %c0_185 = arith.constant 0 : index
    %407 = vector.load %arg23[%c0_184, %c0_185] : memref<64x192xf32, #tpu.memory_space<vmem>>, vector<8x96xf32>
    %c56_186 = arith.constant 56 : index
    %c96 = arith.constant 96 : index
    %408 = vector.load %arg23[%c56_186, %c96] : memref<64x192xf32, #tpu.memory_space<vmem>>, vector<8x96xf32>
    %409 = vector.extract_strided_slice %407 {offsets = [0, 0], sizes = [8, 64], strides = [1, 1]} : vector<8x96xf32> to vector<8x64xf32>
    %410 = vector.extract_strided_slice %403 {offsets = [0, 0], sizes = [8, 64], strides = [1, 1]} : vector<8x96xf32> to vector<8x64xf32>
    %411 = arith.addf %409, %410 : vector<8x64xf32>
    %412 = arith.negf %411 : vector<8x64xf32>
    %413 = math.exp %412 : vector<8x64xf32>
    %cst_187 = arith.constant 1.000000e+00 : f32
    %414 = vector.broadcast %cst_187 : f32 to vector<8x64xf32>
    %415 = arith.addf %414, %413 : vector<8x64xf32>
    %416 = arith.divf %414, %415 : vector<8x64xf32>
    %417 = vector.extract_strided_slice %407 {offsets = [0, 64], sizes = [8, 32], strides = [1, 1]} : vector<8x96xf32> to vector<8x32xf32>
    %418 = vector.extract_strided_slice %416 {offsets = [0, 0], sizes = [8, 32], strides = [1, 1]} : vector<8x64xf32> to vector<8x32xf32>
    %419 = vector.extract_strided_slice %403 {offsets = [0, 64], sizes = [8, 32], strides = [1, 1]} : vector<8x96xf32> to vector<8x32xf32>
    %420 = arith.mulf %418, %419 : vector<8x32xf32>
    %421 = arith.addf %417, %420 : vector<8x32xf32>
    %422 = math.tanh %421 : vector<8x32xf32>
    %423 = vector.extract_strided_slice %416 {offsets = [0, 32], sizes = [8, 32], strides = [1, 1]} : vector<8x64xf32> to vector<8x32xf32>
    %cst_188 = arith.constant 1.000000e+00 : f32
    %424 = vector.broadcast %cst_188 : f32 to vector<8x32xf32>
    %425 = arith.subf %424, %423 : vector<8x32xf32>
    %426 = arith.mulf %425, %422 : vector<8x32xf32>
    %427 = arith.mulf %423, %75 : vector<8x32xf32>
    %428 = arith.addf %426, %427 : vector<8x32xf32>
    %429 = vector.extract_strided_slice %408 {offsets = [0, 0], sizes = [8, 64], strides = [1, 1]} : vector<8x96xf32> to vector<8x64xf32>
    %430 = vector.extract_strided_slice %406 {offsets = [0, 0], sizes = [8, 64], strides = [1, 1]} : vector<8x96xf32> to vector<8x64xf32>
    %431 = arith.addf %429, %430 : vector<8x64xf32>
    %432 = arith.negf %431 : vector<8x64xf32>
    %433 = math.exp %432 : vector<8x64xf32>
    %cst_189 = arith.constant 1.000000e+00 : f32
    %434 = vector.broadcast %cst_189 : f32 to vector<8x64xf32>
    %435 = arith.addf %434, %433 : vector<8x64xf32>
    %436 = arith.divf %434, %435 : vector<8x64xf32>
    %437 = vector.extract_strided_slice %408 {offsets = [0, 64], sizes = [8, 32], strides = [1, 1]} : vector<8x96xf32> to vector<8x32xf32>
    %438 = vector.extract_strided_slice %436 {offsets = [0, 0], sizes = [8, 32], strides = [1, 1]} : vector<8x64xf32> to vector<8x32xf32>
    %439 = vector.extract_strided_slice %406 {offsets = [0, 64], sizes = [8, 32], strides = [1, 1]} : vector<8x96xf32> to vector<8x32xf32>
    %440 = arith.mulf %438, %439 : vector<8x32xf32>
    %441 = arith.addf %437, %440 : vector<8x32xf32>
    %442 = math.tanh %441 : vector<8x32xf32>
    %443 = vector.extract_strided_slice %436 {offsets = [0, 32], sizes = [8, 32], strides = [1, 1]} : vector<8x64xf32> to vector<8x32xf32>
    %cst_190 = arith.constant 1.000000e+00 : f32
    %444 = vector.broadcast %cst_190 : f32 to vector<8x32xf32>
    %445 = arith.subf %444, %443 : vector<8x32xf32>
    %446 = arith.mulf %445, %442 : vector<8x32xf32>
    %447 = arith.mulf %443, %75 : vector<8x32xf32>
    %448 = arith.addf %446, %447 : vector<8x32xf32>
    %c0_191 = arith.constant 0 : index
    %c0_192 = arith.constant 0 : index
    %449 = vector.load %arg24[%c0_191, %c0_192] : memref<64x64xf32, #tpu.memory_space<vmem>>, vector<8x32xf32>
    tpu.vector_store %arg24[%c0_191, %c0_192], %428 {strides = array<i32>} : memref<64x64xf32, #tpu.memory_space<vmem>>, vector<8x32xf32>,
    %c56_193 = arith.constant 56 : index
    %c32_194 = arith.constant 32 : index
    %450 = vector.load %arg24[%c56_193, %c32_194] : memref<64x64xf32, #tpu.memory_space<vmem>>, vector<8x32xf32>
    tpu.vector_store %arg24[%c56_193, %c32_194], %448 {strides = array<i32>} : memref<64x64xf32, #tpu.memory_space<vmem>>, vector<8x32xf32>,
    %c8_195 = arith.constant 8 : index
    %c0_196 = arith.constant 0 : index
    %451 = vector.load %arg23[%c8_195, %c0_196] : memref<64x192xf32, #tpu.memory_space<vmem>>, vector<8x96xf32>
    %c48_197 = arith.constant 48 : index
    %c96_198 = arith.constant 96 : index
    %452 = vector.load %arg23[%c48_197, %c96_198] : memref<64x192xf32, #tpu.memory_space<vmem>>, vector<8x96xf32>
    %cst_199 = arith.constant dense<0.000000e+00> : vector<8x96xf32>
    %453 = tpu.matmul %428, %399, %cst_199 {dimension_numbers = #tpu.dot_dimension_numbers<[1], [0], [0], [1], [0, 0, 1, 1], [], []>} : vector<8x32xf32>, vector<32x96xf32>, vector<8x96xf32> -> vector<8x96xf32>
    %454 = arith.addf %453, %403 : vector<8x96xf32>
    %cst_200 = arith.constant dense<0.000000e+00> : vector<8x96xf32>
    %455 = tpu.matmul %448, %400, %cst_200 {dimension_numbers = #tpu.dot_dimension_numbers<[1], [0], [0], [1], [0, 0, 1, 1], [], []>} : vector<8x32xf32>, vector<32x96xf32>, vector<8x96xf32> -> vector<8x96xf32>
    %456 = arith.addf %455, %406 : vector<8x96xf32>
    %457 = vector.extract_strided_slice %451 {offsets = [0, 0], sizes = [8, 64], strides = [1, 1]} : vector<8x96xf32> to vector<8x64xf32>
    %458 = vector.extract_strided_slice %454 {offsets = [0, 0], sizes = [8, 64], strides = [1, 1]} : vector<8x96xf32> to vector<8x64xf32>
    %459 = arith.addf %457, %458 : vector<8x64xf32>
    %460 = arith.negf %459 : vector<8x64xf32>
    %461 = math.exp %460 : vector<8x64xf32>
    %cst_201 = arith.constant 1.000000e+00 : f32
    %462 = vector.broadcast %cst_201 : f32 to vector<8x64xf32>
    %463 = arith.addf %462, %461 : vector<8x64xf32>
    %464 = arith.divf %462, %463 : vector<8x64xf32>
    %465 = vector.extract_strided_slice %451 {offsets = [0, 64], sizes = [8, 32], strides = [1, 1]} : vector<8x96xf32> to vector<8x32xf32>
    %466 = vector.extract_strided_slice %464 {offsets = [0, 0], sizes = [8, 32], strides = [1, 1]} : vector<8x64xf32> to vector<8x32xf32>
    %467 = vector.extract_strided_slice %454 {offsets = [0, 64], sizes = [8, 32], strides = [1, 1]} : vector<8x96xf32> to vector<8x32xf32>
    %468 = arith.mulf %466, %467 : vector<8x32xf32>
    %469 = arith.addf %465, %468 : vector<8x32xf32>
    %470 = math.tanh %469 : vector<8x32xf32>
    %471 = vector.extract_strided_slice %464 {offsets = [0, 32], sizes = [8, 32], strides = [1, 1]} : vector<8x64xf32> to vector<8x32xf32>
    %cst_202 = arith.constant 1.000000e+00 : f32
    %472 = vector.broadcast %cst_202 : f32 to vector<8x32xf32>
    %473 = arith.subf %472, %471 : vector<8x32xf32>
    %474 = arith.mulf %473, %470 : vector<8x32xf32>
    %475 = arith.mulf %471, %428 : vector<8x32xf32>
    %476 = arith.addf %474, %475 : vector<8x32xf32>
    %477 = vector.extract_strided_slice %452 {offsets = [0, 0], sizes = [8, 64], strides = [1, 1]} : vector<8x96xf32> to vector<8x64xf32>
    %478 = vector.extract_strided_slice %456 {offsets = [0, 0], sizes = [8, 64], strides = [1, 1]} : vector<8x96xf32> to vector<8x64xf32>
    %479 = arith.addf %477, %478 : vector<8x64xf32>
    %480 = arith.negf %479 : vector<8x64xf32>
    %481 = math.exp %480 : vector<8x64xf32>
    %cst_203 = arith.constant 1.000000e+00 : f32
    %482 = vector.broadcast %cst_203 : f32 to vector<8x64xf32>
    %483 = arith.addf %482, %481 : vector<8x64xf32>
    %484 = arith.divf %482, %483 : vector<8x64xf32>
    %485 = vector.extract_strided_slice %452 {offsets = [0, 64], sizes = [8, 32], strides = [1, 1]} : vector<8x96xf32> to vector<8x32xf32>
    %486 = vector.extract_strided_slice %484 {offsets = [0, 0], sizes = [8, 32], strides = [1, 1]} : vector<8x64xf32> to vector<8x32xf32>
    %487 = vector.extract_strided_slice %456 {offsets = [0, 64], sizes = [8, 32], strides = [1, 1]} : vector<8x96xf32> to vector<8x32xf32>
    %488 = arith.mulf %486, %487 : vector<8x32xf32>
    %489 = arith.addf %485, %488 : vector<8x32xf32>
    %490 = math.tanh %489 : vector<8x32xf32>
    %491 = vector.extract_strided_slice %484 {offsets = [0, 32], sizes = [8, 32], strides = [1, 1]} : vector<8x64xf32> to vector<8x32xf32>
    %cst_204 = arith.constant 1.000000e+00 : f32
    %492 = vector.broadcast %cst_204 : f32 to vector<8x32xf32>
    %493 = arith.subf %492, %491 : vector<8x32xf32>
    %494 = arith.mulf %493, %490 : vector<8x32xf32>
    %495 = arith.mulf %491, %448 : vector<8x32xf32>
    %496 = arith.addf %494, %495 : vector<8x32xf32>
    %c8_205 = arith.constant 8 : index
    %c0_206 = arith.constant 0 : index
    %497 = vector.load %arg24[%c8_205, %c0_206] : memref<64x64xf32, #tpu.memory_space<vmem>>, vector<8x32xf32>
    tpu.vector_store %arg24[%c8_205, %c0_206], %476 {strides = array<i32>} : memref<64x64xf32, #tpu.memory_space<vmem>>, vector<8x32xf32>,
    %c48_207 = arith.constant 48 : index
    %c32_208 = arith.constant 32 : index
    %498 = vector.load %arg24[%c48_207, %c32_208] : memref<64x64xf32, #tpu.memory_space<vmem>>, vector<8x32xf32>
    tpu.vector_store %arg24[%c48_207, %c32_208], %496 {strides = array<i32>} : memref<64x64xf32, #tpu.memory_space<vmem>>, vector<8x32xf32>,
    %c16_209 = arith.constant 16 : index
    %c0_210 = arith.constant 0 : index
    %499 = vector.load %arg23[%c16_209, %c0_210] : memref<64x192xf32, #tpu.memory_space<vmem>>, vector<8x96xf32>
    %c40_211 = arith.constant 40 : index
    %c96_212 = arith.constant 96 : index
    %500 = vector.load %arg23[%c40_211, %c96_212] : memref<64x192xf32, #tpu.memory_space<vmem>>, vector<8x96xf32>
    %cst_213 = arith.constant dense<0.000000e+00> : vector<8x96xf32>
    %501 = tpu.matmul %476, %399, %cst_213 {dimension_numbers = #tpu.dot_dimension_numbers<[1], [0], [0], [1], [0, 0, 1, 1], [], []>} : vector<8x32xf32>, vector<32x96xf32>, vector<8x96xf32> -> vector<8x96xf32>
    %502 = arith.addf %501, %403 : vector<8x96xf32>
    %cst_214 = arith.constant dense<0.000000e+00> : vector<8x96xf32>
    %503 = tpu.matmul %496, %400, %cst_214 {dimension_numbers = #tpu.dot_dimension_numbers<[1], [0], [0], [1], [0, 0, 1, 1], [], []>} : vector<8x32xf32>, vector<32x96xf32>, vector<8x96xf32> -> vector<8x96xf32>
    %504 = arith.addf %503, %406 : vector<8x96xf32>
    %505 = vector.extract_strided_slice %499 {offsets = [0, 0], sizes = [8, 64], strides = [1, 1]} : vector<8x96xf32> to vector<8x64xf32>
    %506 = vector.extract_strided_slice %502 {offsets = [0, 0], sizes = [8, 64], strides = [1, 1]} : vector<8x96xf32> to vector<8x64xf32>
    %507 = arith.addf %505, %506 : vector<8x64xf32>
    %508 = arith.negf %507 : vector<8x64xf32>
    %509 = math.exp %508 : vector<8x64xf32>
    %cst_215 = arith.constant 1.000000e+00 : f32
    %510 = vector.broadcast %cst_215 : f32 to vector<8x64xf32>
    %511 = arith.addf %510, %509 : vector<8x64xf32>
    %512 = arith.divf %510, %511 : vector<8x64xf32>
    %513 = vector.extract_strided_slice %499 {offsets = [0, 64], sizes = [8, 32], strides = [1, 1]} : vector<8x96xf32> to vector<8x32xf32>
    %514 = vector.extract_strided_slice %512 {offsets = [0, 0], sizes = [8, 32], strides = [1, 1]} : vector<8x64xf32> to vector<8x32xf32>
    %515 = vector.extract_strided_slice %502 {offsets = [0, 64], sizes = [8, 32], strides = [1, 1]} : vector<8x96xf32> to vector<8x32xf32>
    %516 = arith.mulf %514, %515 : vector<8x32xf32>
    %517 = arith.addf %513, %516 : vector<8x32xf32>
    %518 = math.tanh %517 : vector<8x32xf32>
    %519 = vector.extract_strided_slice %512 {offsets = [0, 32], sizes = [8, 32], strides = [1, 1]} : vector<8x64xf32> to vector<8x32xf32>
    %cst_216 = arith.constant 1.000000e+00 : f32
    %520 = vector.broadcast %cst_216 : f32 to vector<8x32xf32>
    %521 = arith.subf %520, %519 : vector<8x32xf32>
    %522 = arith.mulf %521, %518 : vector<8x32xf32>
    %523 = arith.mulf %519, %476 : vector<8x32xf32>
    %524 = arith.addf %522, %523 : vector<8x32xf32>
    %525 = vector.extract_strided_slice %500 {offsets = [0, 0], sizes = [8, 64], strides = [1, 1]} : vector<8x96xf32> to vector<8x64xf32>
    %526 = vector.extract_strided_slice %504 {offsets = [0, 0], sizes = [8, 64], strides = [1, 1]} : vector<8x96xf32> to vector<8x64xf32>
    %527 = arith.addf %525, %526 : vector<8x64xf32>
    %528 = arith.negf %527 : vector<8x64xf32>
    %529 = math.exp %528 : vector<8x64xf32>
    %cst_217 = arith.constant 1.000000e+00 : f32
    %530 = vector.broadcast %cst_217 : f32 to vector<8x64xf32>
    %531 = arith.addf %530, %529 : vector<8x64xf32>
    %532 = arith.divf %530, %531 : vector<8x64xf32>
    %533 = vector.extract_strided_slice %500 {offsets = [0, 64], sizes = [8, 32], strides = [1, 1]} : vector<8x96xf32> to vector<8x32xf32>
    %534 = vector.extract_strided_slice %532 {offsets = [0, 0], sizes = [8, 32], strides = [1, 1]} : vector<8x64xf32> to vector<8x32xf32>
    %535 = vector.extract_strided_slice %504 {offsets = [0, 64], sizes = [8, 32], strides = [1, 1]} : vector<8x96xf32> to vector<8x32xf32>
    %536 = arith.mulf %534, %535 : vector<8x32xf32>
    %537 = arith.addf %533, %536 : vector<8x32xf32>
    %538 = math.tanh %537 : vector<8x32xf32>
    %539 = vector.extract_strided_slice %532 {offsets = [0, 32], sizes = [8, 32], strides = [1, 1]} : vector<8x64xf32> to vector<8x32xf32>
    %cst_218 = arith.constant 1.000000e+00 : f32
    %540 = vector.broadcast %cst_218 : f32 to vector<8x32xf32>
    %541 = arith.subf %540, %539 : vector<8x32xf32>
    %542 = arith.mulf %541, %538 : vector<8x32xf32>
    %543 = arith.mulf %539, %496 : vector<8x32xf32>
    %544 = arith.addf %542, %543 : vector<8x32xf32>
    %c16_219 = arith.constant 16 : index
    %c0_220 = arith.constant 0 : index
    %545 = vector.load %arg24[%c16_219, %c0_220] : memref<64x64xf32, #tpu.memory_space<vmem>>, vector<8x32xf32>
    tpu.vector_store %arg24[%c16_219, %c0_220], %524 {strides = array<i32>} : memref<64x64xf32, #tpu.memory_space<vmem>>, vector<8x32xf32>,
    %c40_221 = arith.constant 40 : index
    %c32_222 = arith.constant 32 : index
    %546 = vector.load %arg24[%c40_221, %c32_222] : memref<64x64xf32, #tpu.memory_space<vmem>>, vector<8x32xf32>
    tpu.vector_store %arg24[%c40_221, %c32_222], %544 {strides = array<i32>} : memref<64x64xf32, #tpu.memory_space<vmem>>, vector<8x32xf32>,
    %c24_223 = arith.constant 24 : index
    %c0_224 = arith.constant 0 : index
    %547 = vector.load %arg23[%c24_223, %c0_224] : memref<64x192xf32, #tpu.memory_space<vmem>>, vector<8x96xf32>
    %c32_225 = arith.constant 32 : index
    %c96_226 = arith.constant 96 : index
    %548 = vector.load %arg23[%c32_225, %c96_226] : memref<64x192xf32, #tpu.memory_space<vmem>>, vector<8x96xf32>
    %cst_227 = arith.constant dense<0.000000e+00> : vector<8x96xf32>
    %549 = tpu.matmul %524, %399, %cst_227 {dimension_numbers = #tpu.dot_dimension_numbers<[1], [0], [0], [1], [0, 0, 1, 1], [], []>} : vector<8x32xf32>, vector<32x96xf32>, vector<8x96xf32> -> vector<8x96xf32>
    %550 = arith.addf %549, %403 : vector<8x96xf32>
    %cst_228 = arith.constant dense<0.000000e+00> : vector<8x96xf32>
    %551 = tpu.matmul %544, %400, %cst_228 {dimension_numbers = #tpu.dot_dimension_numbers<[1], [0], [0], [1], [0, 0, 1, 1], [], []>} : vector<8x32xf32>, vector<32x96xf32>, vector<8x96xf32> -> vector<8x96xf32>
    %552 = arith.addf %551, %406 : vector<8x96xf32>
    %553 = vector.extract_strided_slice %547 {offsets = [0, 0], sizes = [8, 64], strides = [1, 1]} : vector<8x96xf32> to vector<8x64xf32>
    %554 = vector.extract_strided_slice %550 {offsets = [0, 0], sizes = [8, 64], strides = [1, 1]} : vector<8x96xf32> to vector<8x64xf32>
    %555 = arith.addf %553, %554 : vector<8x64xf32>
    %556 = arith.negf %555 : vector<8x64xf32>
    %557 = math.exp %556 : vector<8x64xf32>
    %cst_229 = arith.constant 1.000000e+00 : f32
    %558 = vector.broadcast %cst_229 : f32 to vector<8x64xf32>
    %559 = arith.addf %558, %557 : vector<8x64xf32>
    %560 = arith.divf %558, %559 : vector<8x64xf32>
    %561 = vector.extract_strided_slice %547 {offsets = [0, 64], sizes = [8, 32], strides = [1, 1]} : vector<8x96xf32> to vector<8x32xf32>
    %562 = vector.extract_strided_slice %560 {offsets = [0, 0], sizes = [8, 32], strides = [1, 1]} : vector<8x64xf32> to vector<8x32xf32>
    %563 = vector.extract_strided_slice %550 {offsets = [0, 64], sizes = [8, 32], strides = [1, 1]} : vector<8x96xf32> to vector<8x32xf32>
    %564 = arith.mulf %562, %563 : vector<8x32xf32>
    %565 = arith.addf %561, %564 : vector<8x32xf32>
    %566 = math.tanh %565 : vector<8x32xf32>
    %567 = vector.extract_strided_slice %560 {offsets = [0, 32], sizes = [8, 32], strides = [1, 1]} : vector<8x64xf32> to vector<8x32xf32>
    %cst_230 = arith.constant 1.000000e+00 : f32
    %568 = vector.broadcast %cst_230 : f32 to vector<8x32xf32>
    %569 = arith.subf %568, %567 : vector<8x32xf32>
    %570 = arith.mulf %569, %566 : vector<8x32xf32>
    %571 = arith.mulf %567, %524 : vector<8x32xf32>
    %572 = arith.addf %570, %571 : vector<8x32xf32>
    %573 = vector.extract_strided_slice %548 {offsets = [0, 0], sizes = [8, 64], strides = [1, 1]} : vector<8x96xf32> to vector<8x64xf32>
    %574 = vector.extract_strided_slice %552 {offsets = [0, 0], sizes = [8, 64], strides = [1, 1]} : vector<8x96xf32> to vector<8x64xf32>
    %575 = arith.addf %573, %574 : vector<8x64xf32>
    %576 = arith.negf %575 : vector<8x64xf32>
    %577 = math.exp %576 : vector<8x64xf32>
    %cst_231 = arith.constant 1.000000e+00 : f32
    %578 = vector.broadcast %cst_231 : f32 to vector<8x64xf32>
    %579 = arith.addf %578, %577 : vector<8x64xf32>
    %580 = arith.divf %578, %579 : vector<8x64xf32>
    %581 = vector.extract_strided_slice %548 {offsets = [0, 64], sizes = [8, 32], strides = [1, 1]} : vector<8x96xf32> to vector<8x32xf32>
    %582 = vector.extract_strided_slice %580 {offsets = [0, 0], sizes = [8, 32], strides = [1, 1]} : vector<8x64xf32> to vector<8x32xf32>
    %583 = vector.extract_strided_slice %552 {offsets = [0, 64], sizes = [8, 32], strides = [1, 1]} : vector<8x96xf32> to vector<8x32xf32>
    %584 = arith.mulf %582, %583 : vector<8x32xf32>
    %585 = arith.addf %581, %584 : vector<8x32xf32>
    %586 = math.tanh %585 : vector<8x32xf32>
    %587 = vector.extract_strided_slice %580 {offsets = [0, 32], sizes = [8, 32], strides = [1, 1]} : vector<8x64xf32> to vector<8x32xf32>
    %cst_232 = arith.constant 1.000000e+00 : f32
    %588 = vector.broadcast %cst_232 : f32 to vector<8x32xf32>
    %589 = arith.subf %588, %587 : vector<8x32xf32>
    %590 = arith.mulf %589, %586 : vector<8x32xf32>
    %591 = arith.mulf %587, %544 : vector<8x32xf32>
    %592 = arith.addf %590, %591 : vector<8x32xf32>
    %c24_233 = arith.constant 24 : index
    %c0_234 = arith.constant 0 : index
    %593 = vector.load %arg24[%c24_233, %c0_234] : memref<64x64xf32, #tpu.memory_space<vmem>>, vector<8x32xf32>
    tpu.vector_store %arg24[%c24_233, %c0_234], %572 {strides = array<i32>} : memref<64x64xf32, #tpu.memory_space<vmem>>, vector<8x32xf32>,
    %c32_235 = arith.constant 32 : index
    %c32_236 = arith.constant 32 : index
    %594 = vector.load %arg24[%c32_235, %c32_236] : memref<64x64xf32, #tpu.memory_space<vmem>>, vector<8x32xf32>
    tpu.vector_store %arg24[%c32_235, %c32_236], %592 {strides = array<i32>} : memref<64x64xf32, #tpu.memory_space<vmem>>, vector<8x32xf32>,
    %c32_237 = arith.constant 32 : index
    %c0_238 = arith.constant 0 : index
    %595 = vector.load %arg23[%c32_237, %c0_238] : memref<64x192xf32, #tpu.memory_space<vmem>>, vector<8x96xf32>
    %c24_239 = arith.constant 24 : index
    %c96_240 = arith.constant 96 : index
    %596 = vector.load %arg23[%c24_239, %c96_240] : memref<64x192xf32, #tpu.memory_space<vmem>>, vector<8x96xf32>
    %cst_241 = arith.constant dense<0.000000e+00> : vector<8x96xf32>
    %597 = tpu.matmul %572, %399, %cst_241 {dimension_numbers = #tpu.dot_dimension_numbers<[1], [0], [0], [1], [0, 0, 1, 1], [], []>} : vector<8x32xf32>, vector<32x96xf32>, vector<8x96xf32> -> vector<8x96xf32>
    %598 = arith.addf %597, %403 : vector<8x96xf32>
    %cst_242 = arith.constant dense<0.000000e+00> : vector<8x96xf32>
    %599 = tpu.matmul %592, %400, %cst_242 {dimension_numbers = #tpu.dot_dimension_numbers<[1], [0], [0], [1], [0, 0, 1, 1], [], []>} : vector<8x32xf32>, vector<32x96xf32>, vector<8x96xf32> -> vector<8x96xf32>
    %600 = arith.addf %599, %406 : vector<8x96xf32>
    %601 = vector.extract_strided_slice %595 {offsets = [0, 0], sizes = [8, 64], strides = [1, 1]} : vector<8x96xf32> to vector<8x64xf32>
    %602 = vector.extract_strided_slice %598 {offsets = [0, 0], sizes = [8, 64], strides = [1, 1]} : vector<8x96xf32> to vector<8x64xf32>
    %603 = arith.addf %601, %602 : vector<8x64xf32>
    %604 = arith.negf %603 : vector<8x64xf32>
    %605 = math.exp %604 : vector<8x64xf32>
    %cst_243 = arith.constant 1.000000e+00 : f32
    %606 = vector.broadcast %cst_243 : f32 to vector<8x64xf32>
    %607 = arith.addf %606, %605 : vector<8x64xf32>
    %608 = arith.divf %606, %607 : vector<8x64xf32>
    %609 = vector.extract_strided_slice %595 {offsets = [0, 64], sizes = [8, 32], strides = [1, 1]} : vector<8x96xf32> to vector<8x32xf32>
    %610 = vector.extract_strided_slice %608 {offsets = [0, 0], sizes = [8, 32], strides = [1, 1]} : vector<8x64xf32> to vector<8x32xf32>
    %611 = vector.extract_strided_slice %598 {offsets = [0, 64], sizes = [8, 32], strides = [1, 1]} : vector<8x96xf32> to vector<8x32xf32>
    %612 = arith.mulf %610, %611 : vector<8x32xf32>
    %613 = arith.addf %609, %612 : vector<8x32xf32>
    %614 = math.tanh %613 : vector<8x32xf32>
    %615 = vector.extract_strided_slice %608 {offsets = [0, 32], sizes = [8, 32], strides = [1, 1]} : vector<8x64xf32> to vector<8x32xf32>
    %cst_244 = arith.constant 1.000000e+00 : f32
    %616 = vector.broadcast %cst_244 : f32 to vector<8x32xf32>
    %617 = arith.subf %616, %615 : vector<8x32xf32>
    %618 = arith.mulf %617, %614 : vector<8x32xf32>
    %619 = arith.mulf %615, %572 : vector<8x32xf32>
    %620 = arith.addf %618, %619 : vector<8x32xf32>
    %621 = vector.extract_strided_slice %596 {offsets = [0, 0], sizes = [8, 64], strides = [1, 1]} : vector<8x96xf32> to vector<8x64xf32>
    %622 = vector.extract_strided_slice %600 {offsets = [0, 0], sizes = [8, 64], strides = [1, 1]} : vector<8x96xf32> to vector<8x64xf32>
    %623 = arith.addf %621, %622 : vector<8x64xf32>
    %624 = arith.negf %623 : vector<8x64xf32>
    %625 = math.exp %624 : vector<8x64xf32>
    %cst_245 = arith.constant 1.000000e+00 : f32
    %626 = vector.broadcast %cst_245 : f32 to vector<8x64xf32>
    %627 = arith.addf %626, %625 : vector<8x64xf32>
    %628 = arith.divf %626, %627 : vector<8x64xf32>
    %629 = vector.extract_strided_slice %596 {offsets = [0, 64], sizes = [8, 32], strides = [1, 1]} : vector<8x96xf32> to vector<8x32xf32>
    %630 = vector.extract_strided_slice %628 {offsets = [0, 0], sizes = [8, 32], strides = [1, 1]} : vector<8x64xf32> to vector<8x32xf32>
    %631 = vector.extract_strided_slice %600 {offsets = [0, 64], sizes = [8, 32], strides = [1, 1]} : vector<8x96xf32> to vector<8x32xf32>
    %632 = arith.mulf %630, %631 : vector<8x32xf32>
    %633 = arith.addf %629, %632 : vector<8x32xf32>
    %634 = math.tanh %633 : vector<8x32xf32>
    %635 = vector.extract_strided_slice %628 {offsets = [0, 32], sizes = [8, 32], strides = [1, 1]} : vector<8x64xf32> to vector<8x32xf32>
    %cst_246 = arith.constant 1.000000e+00 : f32
    %636 = vector.broadcast %cst_246 : f32 to vector<8x32xf32>
    %637 = arith.subf %636, %635 : vector<8x32xf32>
    %638 = arith.mulf %637, %634 : vector<8x32xf32>
    %639 = arith.mulf %635, %592 : vector<8x32xf32>
    %640 = arith.addf %638, %639 : vector<8x32xf32>
    %c32_247 = arith.constant 32 : index
    %c0_248 = arith.constant 0 : index
    %641 = vector.load %arg24[%c32_247, %c0_248] : memref<64x64xf32, #tpu.memory_space<vmem>>, vector<8x32xf32>
    tpu.vector_store %arg24[%c32_247, %c0_248], %620 {strides = array<i32>} : memref<64x64xf32, #tpu.memory_space<vmem>>, vector<8x32xf32>,
    %c24_249 = arith.constant 24 : index
    %c32_250 = arith.constant 32 : index
    %642 = vector.load %arg24[%c24_249, %c32_250] : memref<64x64xf32, #tpu.memory_space<vmem>>, vector<8x32xf32>
    tpu.vector_store %arg24[%c24_249, %c32_250], %640 {strides = array<i32>} : memref<64x64xf32, #tpu.memory_space<vmem>>, vector<8x32xf32>,
    %c40_251 = arith.constant 40 : index
    %c0_252 = arith.constant 0 : index
    %643 = vector.load %arg23[%c40_251, %c0_252] : memref<64x192xf32, #tpu.memory_space<vmem>>, vector<8x96xf32>
    %c16_253 = arith.constant 16 : index
    %c96_254 = arith.constant 96 : index
    %644 = vector.load %arg23[%c16_253, %c96_254] : memref<64x192xf32, #tpu.memory_space<vmem>>, vector<8x96xf32>
    %cst_255 = arith.constant dense<0.000000e+00> : vector<8x96xf32>
    %645 = tpu.matmul %620, %399, %cst_255 {dimension_numbers = #tpu.dot_dimension_numbers<[1], [0], [0], [1], [0, 0, 1, 1], [], []>} : vector<8x32xf32>, vector<32x96xf32>, vector<8x96xf32> -> vector<8x96xf32>
    %646 = arith.addf %645, %403 : vector<8x96xf32>
    %cst_256 = arith.constant dense<0.000000e+00> : vector<8x96xf32>
    %647 = tpu.matmul %640, %400, %cst_256 {dimension_numbers = #tpu.dot_dimension_numbers<[1], [0], [0], [1], [0, 0, 1, 1], [], []>} : vector<8x32xf32>, vector<32x96xf32>, vector<8x96xf32> -> vector<8x96xf32>
    %648 = arith.addf %647, %406 : vector<8x96xf32>
    %649 = vector.extract_strided_slice %643 {offsets = [0, 0], sizes = [8, 64], strides = [1, 1]} : vector<8x96xf32> to vector<8x64xf32>
    %650 = vector.extract_strided_slice %646 {offsets = [0, 0], sizes = [8, 64], strides = [1, 1]} : vector<8x96xf32> to vector<8x64xf32>
    %651 = arith.addf %649, %650 : vector<8x64xf32>
    %652 = arith.negf %651 : vector<8x64xf32>
    %653 = math.exp %652 : vector<8x64xf32>
    %cst_257 = arith.constant 1.000000e+00 : f32
    %654 = vector.broadcast %cst_257 : f32 to vector<8x64xf32>
    %655 = arith.addf %654, %653 : vector<8x64xf32>
    %656 = arith.divf %654, %655 : vector<8x64xf32>
    %657 = vector.extract_strided_slice %643 {offsets = [0, 64], sizes = [8, 32], strides = [1, 1]} : vector<8x96xf32> to vector<8x32xf32>
    %658 = vector.extract_strided_slice %656 {offsets = [0, 0], sizes = [8, 32], strides = [1, 1]} : vector<8x64xf32> to vector<8x32xf32>
    %659 = vector.extract_strided_slice %646 {offsets = [0, 64], sizes = [8, 32], strides = [1, 1]} : vector<8x96xf32> to vector<8x32xf32>
    %660 = arith.mulf %658, %659 : vector<8x32xf32>
    %661 = arith.addf %657, %660 : vector<8x32xf32>
    %662 = math.tanh %661 : vector<8x32xf32>
    %663 = vector.extract_strided_slice %656 {offsets = [0, 32], sizes = [8, 32], strides = [1, 1]} : vector<8x64xf32> to vector<8x32xf32>
    %cst_258 = arith.constant 1.000000e+00 : f32
    %664 = vector.broadcast %cst_258 : f32 to vector<8x32xf32>
    %665 = arith.subf %664, %663 : vector<8x32xf32>
    %666 = arith.mulf %665, %662 : vector<8x32xf32>
    %667 = arith.mulf %663, %620 : vector<8x32xf32>
    %668 = arith.addf %666, %667 : vector<8x32xf32>
    %669 = vector.extract_strided_slice %644 {offsets = [0, 0], sizes = [8, 64], strides = [1, 1]} : vector<8x96xf32> to vector<8x64xf32>
    %670 = vector.extract_strided_slice %648 {offsets = [0, 0], sizes = [8, 64], strides = [1, 1]} : vector<8x96xf32> to vector<8x64xf32>
    %671 = arith.addf %669, %670 : vector<8x64xf32>
    %672 = arith.negf %671 : vector<8x64xf32>
    %673 = math.exp %672 : vector<8x64xf32>
    %cst_259 = arith.constant 1.000000e+00 : f32
    %674 = vector.broadcast %cst_259 : f32 to vector<8x64xf32>
    %675 = arith.addf %674, %673 : vector<8x64xf32>
    %676 = arith.divf %674, %675 : vector<8x64xf32>
    %677 = vector.extract_strided_slice %644 {offsets = [0, 64], sizes = [8, 32], strides = [1, 1]} : vector<8x96xf32> to vector<8x32xf32>
    %678 = vector.extract_strided_slice %676 {offsets = [0, 0], sizes = [8, 32], strides = [1, 1]} : vector<8x64xf32> to vector<8x32xf32>
    %679 = vector.extract_strided_slice %648 {offsets = [0, 64], sizes = [8, 32], strides = [1, 1]} : vector<8x96xf32> to vector<8x32xf32>
    %680 = arith.mulf %678, %679 : vector<8x32xf32>
    %681 = arith.addf %677, %680 : vector<8x32xf32>
    %682 = math.tanh %681 : vector<8x32xf32>
    %683 = vector.extract_strided_slice %676 {offsets = [0, 32], sizes = [8, 32], strides = [1, 1]} : vector<8x64xf32> to vector<8x32xf32>
    %cst_260 = arith.constant 1.000000e+00 : f32
    %684 = vector.broadcast %cst_260 : f32 to vector<8x32xf32>
    %685 = arith.subf %684, %683 : vector<8x32xf32>
    %686 = arith.mulf %685, %682 : vector<8x32xf32>
    %687 = arith.mulf %683, %640 : vector<8x32xf32>
    %688 = arith.addf %686, %687 : vector<8x32xf32>
    %c40_261 = arith.constant 40 : index
    %c0_262 = arith.constant 0 : index
    %689 = vector.load %arg24[%c40_261, %c0_262] : memref<64x64xf32, #tpu.memory_space<vmem>>, vector<8x32xf32>
    tpu.vector_store %arg24[%c40_261, %c0_262], %668 {strides = array<i32>} : memref<64x64xf32, #tpu.memory_space<vmem>>, vector<8x32xf32>,
    %c16_263 = arith.constant 16 : index
    %c32_264 = arith.constant 32 : index
    %690 = vector.load %arg24[%c16_263, %c32_264] : memref<64x64xf32, #tpu.memory_space<vmem>>, vector<8x32xf32>
    tpu.vector_store %arg24[%c16_263, %c32_264], %688 {strides = array<i32>} : memref<64x64xf32, #tpu.memory_space<vmem>>, vector<8x32xf32>,
    %c48_265 = arith.constant 48 : index
    %c0_266 = arith.constant 0 : index
    %691 = vector.load %arg23[%c48_265, %c0_266] : memref<64x192xf32, #tpu.memory_space<vmem>>, vector<8x96xf32>
    %c8_267 = arith.constant 8 : index
    %c96_268 = arith.constant 96 : index
    %692 = vector.load %arg23[%c8_267, %c96_268] : memref<64x192xf32, #tpu.memory_space<vmem>>, vector<8x96xf32>
    %cst_269 = arith.constant dense<0.000000e+00> : vector<8x96xf32>
    %693 = tpu.matmul %668, %399, %cst_269 {dimension_numbers = #tpu.dot_dimension_numbers<[1], [0], [0], [1], [0, 0, 1, 1], [], []>} : vector<8x32xf32>, vector<32x96xf32>, vector<8x96xf32> -> vector<8x96xf32>
    %694 = arith.addf %693, %403 : vector<8x96xf32>
    %cst_270 = arith.constant dense<0.000000e+00> : vector<8x96xf32>
    %695 = tpu.matmul %688, %400, %cst_270 {dimension_numbers = #tpu.dot_dimension_numbers<[1], [0], [0], [1], [0, 0, 1, 1], [], []>} : vector<8x32xf32>, vector<32x96xf32>, vector<8x96xf32> -> vector<8x96xf32>
    %696 = arith.addf %695, %406 : vector<8x96xf32>
    %697 = vector.extract_strided_slice %691 {offsets = [0, 0], sizes = [8, 64], strides = [1, 1]} : vector<8x96xf32> to vector<8x64xf32>
    %698 = vector.extract_strided_slice %694 {offsets = [0, 0], sizes = [8, 64], strides = [1, 1]} : vector<8x96xf32> to vector<8x64xf32>
    %699 = arith.addf %697, %698 : vector<8x64xf32>
    %700 = arith.negf %699 : vector<8x64xf32>
    %701 = math.exp %700 : vector<8x64xf32>
    %cst_271 = arith.constant 1.000000e+00 : f32
    %702 = vector.broadcast %cst_271 : f32 to vector<8x64xf32>
    %703 = arith.addf %702, %701 : vector<8x64xf32>
    %704 = arith.divf %702, %703 : vector<8x64xf32>
    %705 = vector.extract_strided_slice %691 {offsets = [0, 64], sizes = [8, 32], strides = [1, 1]} : vector<8x96xf32> to vector<8x32xf32>
    %706 = vector.extract_strided_slice %704 {offsets = [0, 0], sizes = [8, 32], strides = [1, 1]} : vector<8x64xf32> to vector<8x32xf32>
    %707 = vector.extract_strided_slice %694 {offsets = [0, 64], sizes = [8, 32], strides = [1, 1]} : vector<8x96xf32> to vector<8x32xf32>
    %708 = arith.mulf %706, %707 : vector<8x32xf32>
    %709 = arith.addf %705, %708 : vector<8x32xf32>
    %710 = math.tanh %709 : vector<8x32xf32>
    %711 = vector.extract_strided_slice %704 {offsets = [0, 32], sizes = [8, 32], strides = [1, 1]} : vector<8x64xf32> to vector<8x32xf32>
    %cst_272 = arith.constant 1.000000e+00 : f32
    %712 = vector.broadcast %cst_272 : f32 to vector<8x32xf32>
    %713 = arith.subf %712, %711 : vector<8x32xf32>
    %714 = arith.mulf %713, %710 : vector<8x32xf32>
    %715 = arith.mulf %711, %668 : vector<8x32xf32>
    %716 = arith.addf %714, %715 : vector<8x32xf32>
    %717 = vector.extract_strided_slice %692 {offsets = [0, 0], sizes = [8, 64], strides = [1, 1]} : vector<8x96xf32> to vector<8x64xf32>
    %718 = vector.extract_strided_slice %696 {offsets = [0, 0], sizes = [8, 64], strides = [1, 1]} : vector<8x96xf32> to vector<8x64xf32>
    %719 = arith.addf %717, %718 : vector<8x64xf32>
    %720 = arith.negf %719 : vector<8x64xf32>
    %721 = math.exp %720 : vector<8x64xf32>
    %cst_273 = arith.constant 1.000000e+00 : f32
    %722 = vector.broadcast %cst_273 : f32 to vector<8x64xf32>
    %723 = arith.addf %722, %721 : vector<8x64xf32>
    %724 = arith.divf %722, %723 : vector<8x64xf32>
    %725 = vector.extract_strided_slice %692 {offsets = [0, 64], sizes = [8, 32], strides = [1, 1]} : vector<8x96xf32> to vector<8x32xf32>
    %726 = vector.extract_strided_slice %724 {offsets = [0, 0], sizes = [8, 32], strides = [1, 1]} : vector<8x64xf32> to vector<8x32xf32>
    %727 = vector.extract_strided_slice %696 {offsets = [0, 64], sizes = [8, 32], strides = [1, 1]} : vector<8x96xf32> to vector<8x32xf32>
    %728 = arith.mulf %726, %727 : vector<8x32xf32>
    %729 = arith.addf %725, %728 : vector<8x32xf32>
    %730 = math.tanh %729 : vector<8x32xf32>
    %731 = vector.extract_strided_slice %724 {offsets = [0, 32], sizes = [8, 32], strides = [1, 1]} : vector<8x64xf32> to vector<8x32xf32>
    %cst_274 = arith.constant 1.000000e+00 : f32
    %732 = vector.broadcast %cst_274 : f32 to vector<8x32xf32>
    %733 = arith.subf %732, %731 : vector<8x32xf32>
    %734 = arith.mulf %733, %730 : vector<8x32xf32>
    %735 = arith.mulf %731, %688 : vector<8x32xf32>
    %736 = arith.addf %734, %735 : vector<8x32xf32>
    %c48_275 = arith.constant 48 : index
    %c0_276 = arith.constant 0 : index
    %737 = vector.load %arg24[%c48_275, %c0_276] : memref<64x64xf32, #tpu.memory_space<vmem>>, vector<8x32xf32>
    tpu.vector_store %arg24[%c48_275, %c0_276], %716 {strides = array<i32>} : memref<64x64xf32, #tpu.memory_space<vmem>>, vector<8x32xf32>,
    %c8_277 = arith.constant 8 : index
    %c32_278 = arith.constant 32 : index
    %738 = vector.load %arg24[%c8_277, %c32_278] : memref<64x64xf32, #tpu.memory_space<vmem>>, vector<8x32xf32>
    tpu.vector_store %arg24[%c8_277, %c32_278], %736 {strides = array<i32>} : memref<64x64xf32, #tpu.memory_space<vmem>>, vector<8x32xf32>,
    %c56_279 = arith.constant 56 : index
    %c0_280 = arith.constant 0 : index
    %739 = vector.load %arg23[%c56_279, %c0_280] : memref<64x192xf32, #tpu.memory_space<vmem>>, vector<8x96xf32>
    %c0_281 = arith.constant 0 : index
    %c96_282 = arith.constant 96 : index
    %740 = vector.load %arg23[%c0_281, %c96_282] : memref<64x192xf32, #tpu.memory_space<vmem>>, vector<8x96xf32>
    %cst_283 = arith.constant dense<0.000000e+00> : vector<8x96xf32>
    %741 = tpu.matmul %716, %399, %cst_283 {dimension_numbers = #tpu.dot_dimension_numbers<[1], [0], [0], [1], [0, 0, 1, 1], [], []>} : vector<8x32xf32>, vector<32x96xf32>, vector<8x96xf32> -> vector<8x96xf32>
    %742 = arith.addf %741, %403 : vector<8x96xf32>
    %cst_284 = arith.constant dense<0.000000e+00> : vector<8x96xf32>
    %743 = tpu.matmul %736, %400, %cst_284 {dimension_numbers = #tpu.dot_dimension_numbers<[1], [0], [0], [1], [0, 0, 1, 1], [], []>} : vector<8x32xf32>, vector<32x96xf32>, vector<8x96xf32> -> vector<8x96xf32>
    %744 = arith.addf %743, %406 : vector<8x96xf32>
    %745 = vector.extract_strided_slice %739 {offsets = [0, 0], sizes = [8, 64], strides = [1, 1]} : vector<8x96xf32> to vector<8x64xf32>
    %746 = vector.extract_strided_slice %742 {offsets = [0, 0], sizes = [8, 64], strides = [1, 1]} : vector<8x96xf32> to vector<8x64xf32>
    %747 = arith.addf %745, %746 : vector<8x64xf32>
    %748 = arith.negf %747 : vector<8x64xf32>
    %749 = math.exp %748 : vector<8x64xf32>
    %cst_285 = arith.constant 1.000000e+00 : f32
    %750 = vector.broadcast %cst_285 : f32 to vector<8x64xf32>
    %751 = arith.addf %750, %749 : vector<8x64xf32>
    %752 = arith.divf %750, %751 : vector<8x64xf32>
    %753 = vector.extract_strided_slice %739 {offsets = [0, 64], sizes = [8, 32], strides = [1, 1]} : vector<8x96xf32> to vector<8x32xf32>
    %754 = vector.extract_strided_slice %752 {offsets = [0, 0], sizes = [8, 32], strides = [1, 1]} : vector<8x64xf32> to vector<8x32xf32>
    %755 = vector.extract_strided_slice %742 {offsets = [0, 64], sizes = [8, 32], strides = [1, 1]} : vector<8x96xf32> to vector<8x32xf32>
    %756 = arith.mulf %754, %755 : vector<8x32xf32>
    %757 = arith.addf %753, %756 : vector<8x32xf32>
    %758 = math.tanh %757 : vector<8x32xf32>
    %759 = vector.extract_strided_slice %752 {offsets = [0, 32], sizes = [8, 32], strides = [1, 1]} : vector<8x64xf32> to vector<8x32xf32>
    %cst_286 = arith.constant 1.000000e+00 : f32
    %760 = vector.broadcast %cst_286 : f32 to vector<8x32xf32>
    %761 = arith.subf %760, %759 : vector<8x32xf32>
    %762 = arith.mulf %761, %758 : vector<8x32xf32>
    %763 = arith.mulf %759, %716 : vector<8x32xf32>
    %764 = arith.addf %762, %763 : vector<8x32xf32>
    %765 = vector.extract_strided_slice %740 {offsets = [0, 0], sizes = [8, 64], strides = [1, 1]} : vector<8x96xf32> to vector<8x64xf32>
    %766 = vector.extract_strided_slice %744 {offsets = [0, 0], sizes = [8, 64], strides = [1, 1]} : vector<8x96xf32> to vector<8x64xf32>
    %767 = arith.addf %765, %766 : vector<8x64xf32>
    %768 = arith.negf %767 : vector<8x64xf32>
    %769 = math.exp %768 : vector<8x64xf32>
    %cst_287 = arith.constant 1.000000e+00 : f32
    %770 = vector.broadcast %cst_287 : f32 to vector<8x64xf32>
    %771 = arith.addf %770, %769 : vector<8x64xf32>
    %772 = arith.divf %770, %771 : vector<8x64xf32>
    %773 = vector.extract_strided_slice %740 {offsets = [0, 64], sizes = [8, 32], strides = [1, 1]} : vector<8x96xf32> to vector<8x32xf32>
    %774 = vector.extract_strided_slice %772 {offsets = [0, 0], sizes = [8, 32], strides = [1, 1]} : vector<8x64xf32> to vector<8x32xf32>
    %775 = vector.extract_strided_slice %744 {offsets = [0, 64], sizes = [8, 32], strides = [1, 1]} : vector<8x96xf32> to vector<8x32xf32>
    %776 = arith.mulf %774, %775 : vector<8x32xf32>
    %777 = arith.addf %773, %776 : vector<8x32xf32>
    %778 = math.tanh %777 : vector<8x32xf32>
    %779 = vector.extract_strided_slice %772 {offsets = [0, 32], sizes = [8, 32], strides = [1, 1]} : vector<8x64xf32> to vector<8x32xf32>
    %cst_288 = arith.constant 1.000000e+00 : f32
    %780 = vector.broadcast %cst_288 : f32 to vector<8x32xf32>
    %781 = arith.subf %780, %779 : vector<8x32xf32>
    %782 = arith.mulf %781, %778 : vector<8x32xf32>
    %783 = arith.mulf %779, %736 : vector<8x32xf32>
    %784 = arith.addf %782, %783 : vector<8x32xf32>
    %c56_289 = arith.constant 56 : index
    %c0_290 = arith.constant 0 : index
    %785 = vector.load %arg24[%c56_289, %c0_290] : memref<64x64xf32, #tpu.memory_space<vmem>>, vector<8x32xf32>
    tpu.vector_store %arg24[%c56_289, %c0_290], %764 {strides = array<i32>} : memref<64x64xf32, #tpu.memory_space<vmem>>, vector<8x32xf32>,
    %c0_291 = arith.constant 0 : index
    %c32_292 = arith.constant 32 : index
    %786 = vector.load %arg24[%c0_291, %c32_292] : memref<64x64xf32, #tpu.memory_space<vmem>>, vector<8x32xf32>
    tpu.vector_store %arg24[%c0_291, %c32_292], %784 {strides = array<i32>} : memref<64x64xf32, #tpu.memory_space<vmem>>, vector<8x32xf32>,
    %c0_293 = arith.constant 0 : index
    %c0_294 = arith.constant 0 : index
    %787 = vector.load %arg13[%c0_293, %c0_294] : memref<1x64xf32, #tpu.memory_space<vmem>>, vector<1x64xf32>
    %cst_295 = arith.constant 0.000000e+00 : f32
    %788 = vector.broadcast %cst_295 : f32 to vector<8x64xf32>
    %cst_296 = arith.constant 0xFF800000 : f32
    %789 = vector.broadcast %cst_296 : f32 to vector<8x64xf32>
    %cst_297 = arith.constant 0.000000e+00 : f32
    %790 = vector.broadcast %cst_297 : f32 to vector<8x64xf32>
    %cst_298 = arith.constant 0.000000e+00 : f32
    %791 = vector.broadcast %cst_298 : f32 to vector<8x1xf32>
    %c0_299 = arith.constant 0 : index
    %c0_300 = arith.constant 0 : index
    %792 = vector.load %arg24[%c0_299, %c0_300] : memref<64x64xf32, #tpu.memory_space<vmem>>, vector<8x64xf32>
    %793 = arith.addf %788, %792 : vector<8x64xf32>
    %794 = arith.maximumf %789, %792 : vector<8x64xf32>
    %795 = vector.broadcast %787 : vector<1x64xf32> to vector<8x64xf32>
    %796 = arith.mulf %792, %795 : vector<8x64xf32>
    %cst_301 = arith.constant dense<0.000000e+00> : vector<8xf32>
    %797 = vector.multi_reduction <add>, %796, %cst_301 [1] : vector<8x64xf32> to vector<8xf32>
    %798 = vector.shape_cast %797 : vector<8xf32> to vector<8x1xf32>
    %c0_302 = arith.constant 0 : index
    %c0_303 = arith.constant 0 : index
    %799 = memref.load %arg1[%c0_302, %c0_303] : memref<8x1xf32, #tpu.memory_space<smem>>
    %800 = vector.broadcast %799 : f32 to vector<8x1xf32>
    %801 = arith.addf %798, %800 : vector<8x1xf32>
    %802 = math.tanh %801 : vector<8x1xf32>
    %803 = math.exp %802 : vector<8x1xf32>
    %804 = arith.addf %791, %803 : vector<8x1xf32>
    %805 = vector.broadcast %803 : vector<8x1xf32> to vector<8x64xf32>
    %806 = arith.mulf %792, %805 : vector<8x64xf32>
    %807 = arith.addf %790, %806 : vector<8x64xf32>
    %c8_304 = arith.constant 8 : index
    %c0_305 = arith.constant 0 : index
    %808 = vector.load %arg24[%c8_304, %c0_305] : memref<64x64xf32, #tpu.memory_space<vmem>>, vector<8x64xf32>
    %809 = arith.addf %793, %808 : vector<8x64xf32>
    %810 = arith.maximumf %794, %808 : vector<8x64xf32>
    %811 = vector.broadcast %787 : vector<1x64xf32> to vector<8x64xf32>
    %812 = arith.mulf %808, %811 : vector<8x64xf32>
    %cst_306 = arith.constant dense<0.000000e+00> : vector<8xf32>
    %813 = vector.multi_reduction <add>, %812, %cst_306 [1] : vector<8x64xf32> to vector<8xf32>
    %814 = vector.shape_cast %813 : vector<8xf32> to vector<8x1xf32>
    %c1_307 = arith.constant 1 : index
    %c0_308 = arith.constant 0 : index
    %815 = memref.load %arg1[%c1_307, %c0_308] : memref<8x1xf32, #tpu.memory_space<smem>>
    %816 = vector.broadcast %815 : f32 to vector<8x1xf32>
    %817 = arith.addf %814, %816 : vector<8x1xf32>
    %818 = math.tanh %817 : vector<8x1xf32>
    %819 = math.exp %818 : vector<8x1xf32>
    %820 = arith.addf %804, %819 : vector<8x1xf32>
    %821 = vector.broadcast %819 : vector<8x1xf32> to vector<8x64xf32>
    %822 = arith.mulf %808, %821 : vector<8x64xf32>
    %823 = arith.addf %807, %822 : vector<8x64xf32>
    %c16_309 = arith.constant 16 : index
    %c0_310 = arith.constant 0 : index
    %824 = vector.load %arg24[%c16_309, %c0_310] : memref<64x64xf32, #tpu.memory_space<vmem>>, vector<8x64xf32>
    %825 = arith.addf %809, %824 : vector<8x64xf32>
    %826 = arith.maximumf %810, %824 : vector<8x64xf32>
    %827 = vector.broadcast %787 : vector<1x64xf32> to vector<8x64xf32>
    %828 = arith.mulf %824, %827 : vector<8x64xf32>
    %cst_311 = arith.constant dense<0.000000e+00> : vector<8xf32>
    %829 = vector.multi_reduction <add>, %828, %cst_311 [1] : vector<8x64xf32> to vector<8xf32>
    %830 = vector.shape_cast %829 : vector<8xf32> to vector<8x1xf32>
    %c2_312 = arith.constant 2 : index
    %c0_313 = arith.constant 0 : index
    %831 = memref.load %arg1[%c2_312, %c0_313] : memref<8x1xf32, #tpu.memory_space<smem>>
    %832 = vector.broadcast %831 : f32 to vector<8x1xf32>
    %833 = arith.addf %830, %832 : vector<8x1xf32>
    %834 = math.tanh %833 : vector<8x1xf32>
    %835 = math.exp %834 : vector<8x1xf32>
    %836 = arith.addf %820, %835 : vector<8x1xf32>
    %837 = vector.broadcast %835 : vector<8x1xf32> to vector<8x64xf32>
    %838 = arith.mulf %824, %837 : vector<8x64xf32>
    %839 = arith.addf %823, %838 : vector<8x64xf32>
    %c24_314 = arith.constant 24 : index
    %c0_315 = arith.constant 0 : index
    %840 = vector.load %arg24[%c24_314, %c0_315] : memref<64x64xf32, #tpu.memory_space<vmem>>, vector<8x64xf32>
    %841 = arith.addf %825, %840 : vector<8x64xf32>
    %842 = arith.maximumf %826, %840 : vector<8x64xf32>
    %843 = vector.broadcast %787 : vector<1x64xf32> to vector<8x64xf32>
    %844 = arith.mulf %840, %843 : vector<8x64xf32>
    %cst_316 = arith.constant dense<0.000000e+00> : vector<8xf32>
    %845 = vector.multi_reduction <add>, %844, %cst_316 [1] : vector<8x64xf32> to vector<8xf32>
    %846 = vector.shape_cast %845 : vector<8xf32> to vector<8x1xf32>
    %c3_317 = arith.constant 3 : index
    %c0_318 = arith.constant 0 : index
    %847 = memref.load %arg1[%c3_317, %c0_318] : memref<8x1xf32, #tpu.memory_space<smem>>
    %848 = vector.broadcast %847 : f32 to vector<8x1xf32>
    %849 = arith.addf %846, %848 : vector<8x1xf32>
    %850 = math.tanh %849 : vector<8x1xf32>
    %851 = math.exp %850 : vector<8x1xf32>
    %852 = arith.addf %836, %851 : vector<8x1xf32>
    %853 = vector.broadcast %851 : vector<8x1xf32> to vector<8x64xf32>
    %854 = arith.mulf %840, %853 : vector<8x64xf32>
    %855 = arith.addf %839, %854 : vector<8x64xf32>
    %c32_319 = arith.constant 32 : index
    %c0_320 = arith.constant 0 : index
    %856 = vector.load %arg24[%c32_319, %c0_320] : memref<64x64xf32, #tpu.memory_space<vmem>>, vector<8x64xf32>
    %857 = arith.addf %841, %856 : vector<8x64xf32>
    %858 = arith.maximumf %842, %856 : vector<8x64xf32>
    %859 = vector.broadcast %787 : vector<1x64xf32> to vector<8x64xf32>
    %860 = arith.mulf %856, %859 : vector<8x64xf32>
    %cst_321 = arith.constant dense<0.000000e+00> : vector<8xf32>
    %861 = vector.multi_reduction <add>, %860, %cst_321 [1] : vector<8x64xf32> to vector<8xf32>
    %862 = vector.shape_cast %861 : vector<8xf32> to vector<8x1xf32>
    %c4_322 = arith.constant 4 : index
    %c0_323 = arith.constant 0 : index
    %863 = memref.load %arg1[%c4_322, %c0_323] : memref<8x1xf32, #tpu.memory_space<smem>>
    %864 = vector.broadcast %863 : f32 to vector<8x1xf32>
    %865 = arith.addf %862, %864 : vector<8x1xf32>
    %866 = math.tanh %865 : vector<8x1xf32>
    %867 = math.exp %866 : vector<8x1xf32>
    %868 = arith.addf %852, %867 : vector<8x1xf32>
    %869 = vector.broadcast %867 : vector<8x1xf32> to vector<8x64xf32>
    %870 = arith.mulf %856, %869 : vector<8x64xf32>
    %871 = arith.addf %855, %870 : vector<8x64xf32>
    %c40_324 = arith.constant 40 : index
    %c0_325 = arith.constant 0 : index
    %872 = vector.load %arg24[%c40_324, %c0_325] : memref<64x64xf32, #tpu.memory_space<vmem>>, vector<8x64xf32>
    %873 = arith.addf %857, %872 : vector<8x64xf32>
    %874 = arith.maximumf %858, %872 : vector<8x64xf32>
    %875 = vector.broadcast %787 : vector<1x64xf32> to vector<8x64xf32>
    %876 = arith.mulf %872, %875 : vector<8x64xf32>
    %cst_326 = arith.constant dense<0.000000e+00> : vector<8xf32>
    %877 = vector.multi_reduction <add>, %876, %cst_326 [1] : vector<8x64xf32> to vector<8xf32>
    %878 = vector.shape_cast %877 : vector<8xf32> to vector<8x1xf32>
    %c5_327 = arith.constant 5 : index
    %c0_328 = arith.constant 0 : index
    %879 = memref.load %arg1[%c5_327, %c0_328] : memref<8x1xf32, #tpu.memory_space<smem>>
    %880 = vector.broadcast %879 : f32 to vector<8x1xf32>
    %881 = arith.addf %878, %880 : vector<8x1xf32>
    %882 = math.tanh %881 : vector<8x1xf32>
    %883 = math.exp %882 : vector<8x1xf32>
    %884 = arith.addf %868, %883 : vector<8x1xf32>
    %885 = vector.broadcast %883 : vector<8x1xf32> to vector<8x64xf32>
    %886 = arith.mulf %872, %885 : vector<8x64xf32>
    %887 = arith.addf %871, %886 : vector<8x64xf32>
    %c48_329 = arith.constant 48 : index
    %c0_330 = arith.constant 0 : index
    %888 = vector.load %arg24[%c48_329, %c0_330] : memref<64x64xf32, #tpu.memory_space<vmem>>, vector<8x64xf32>
    %889 = arith.addf %873, %888 : vector<8x64xf32>
    %890 = arith.maximumf %874, %888 : vector<8x64xf32>
    %891 = vector.broadcast %787 : vector<1x64xf32> to vector<8x64xf32>
    %892 = arith.mulf %888, %891 : vector<8x64xf32>
    %cst_331 = arith.constant dense<0.000000e+00> : vector<8xf32>
    %893 = vector.multi_reduction <add>, %892, %cst_331 [1] : vector<8x64xf32> to vector<8xf32>
    %894 = vector.shape_cast %893 : vector<8xf32> to vector<8x1xf32>
    %c6_332 = arith.constant 6 : index
    %c0_333 = arith.constant 0 : index
    %895 = memref.load %arg1[%c6_332, %c0_333] : memref<8x1xf32, #tpu.memory_space<smem>>
    %896 = vector.broadcast %895 : f32 to vector<8x1xf32>
    %897 = arith.addf %894, %896 : vector<8x1xf32>
    %898 = math.tanh %897 : vector<8x1xf32>
    %899 = math.exp %898 : vector<8x1xf32>
    %900 = arith.addf %884, %899 : vector<8x1xf32>
    %901 = vector.broadcast %899 : vector<8x1xf32> to vector<8x64xf32>
    %902 = arith.mulf %888, %901 : vector<8x64xf32>
    %903 = arith.addf %887, %902 : vector<8x64xf32>
    %c56_334 = arith.constant 56 : index
    %c0_335 = arith.constant 0 : index
    %904 = vector.load %arg24[%c56_334, %c0_335] : memref<64x64xf32, #tpu.memory_space<vmem>>, vector<8x64xf32>
    %905 = arith.addf %889, %904 : vector<8x64xf32>
    %906 = arith.maximumf %890, %904 : vector<8x64xf32>
    %907 = vector.broadcast %787 : vector<1x64xf32> to vector<8x64xf32>
    %908 = arith.mulf %904, %907 : vector<8x64xf32>
    %cst_336 = arith.constant dense<0.000000e+00> : vector<8xf32>
    %909 = vector.multi_reduction <add>, %908, %cst_336 [1] : vector<8x64xf32> to vector<8xf32>
    %910 = vector.shape_cast %909 : vector<8xf32> to vector<8x1xf32>
    %c7_337 = arith.constant 7 : index
    %c0_338 = arith.constant 0 : index
    %911 = memref.load %arg1[%c7_337, %c0_338] : memref<8x1xf32, #tpu.memory_space<smem>>
    %912 = vector.broadcast %911 : f32 to vector<8x1xf32>
    %913 = arith.addf %910, %912 : vector<8x1xf32>
    %914 = math.tanh %913 : vector<8x1xf32>
    %915 = math.exp %914 : vector<8x1xf32>
    %916 = arith.addf %900, %915 : vector<8x1xf32>
    %917 = vector.broadcast %915 : vector<8x1xf32> to vector<8x64xf32>
    %918 = arith.mulf %904, %917 : vector<8x64xf32>
    %919 = arith.addf %903, %918 : vector<8x64xf32>
    %cst_339 = arith.constant 1.000000e-10 : f32
    %920 = vector.broadcast %cst_339 : f32 to vector<8x1xf32>
    %921 = arith.addf %916, %920 : vector<8x1xf32>
    %922 = tpu.reciprocal %921 {approx = true} : vector<8x1xf32> -> vector<8x1xf32>
    %923 = vector.broadcast %922 : vector<8x1xf32> to vector<8x64xf32>
    %924 = arith.mulf %919, %923 : vector<8x64xf32>
    %cst_340 = arith.constant 1.250000e-01 : f32
    %925 = vector.broadcast %cst_340 : f32 to vector<8x64xf32>
    %926 = arith.mulf %905, %925 : vector<8x64xf32>
    %927 = tpu.concatenate %906, %926, %924 in 1 : vector<8x64xf32>, vector<8x64xf32>, vector<8x64xf32> -> vector<8x192xf32>
    %c0_341 = arith.constant 0 : index
    %c0_342 = arith.constant 0 : index
    %928 = vector.load %arg14[%c0_341, %c0_342] : memref<192x384xf32, #tpu.memory_space<vmem>>, vector<192x384xf32>
    %cst_343 = arith.constant dense<0.000000e+00> : vector<8x384xf32>
    %929 = tpu.matmul %927, %928, %cst_343 {dimension_numbers = #tpu.dot_dimension_numbers<[1], [0], [0], [1], [0, 0, 1, 1], [], []>} : vector<8x192xf32>, vector<192x384xf32>, vector<8x384xf32> -> vector<8x384xf32>
    %c0_344 = arith.constant 0 : index
    %c0_345 = arith.constant 0 : index
    %930 = vector.load %arg15[%c0_344, %c0_345] : memref<1x384xf32, #tpu.memory_space<vmem>>, vector<1x384xf32>
    %931 = vector.broadcast %930 : vector<1x384xf32> to vector<8x384xf32>
    %932 = arith.addf %929, %931 : vector<8x384xf32>
    %cst_346 = arith.constant 0.000000e+00 : f32
    %933 = vector.broadcast %cst_346 : f32 to vector<8x384xf32>
    %934 = arith.maximumf %932, %933 : vector<8x384xf32>
    %c0_347 = arith.constant 0 : index
    %c0_348 = arith.constant 0 : index
    %935 = vector.load %arg16[%c0_347, %c0_348] : memref<192x6xf32, #tpu.memory_space<vmem>>, vector<192x6xf32>
    %cst_349 = arith.constant dense<0.000000e+00> : vector<8x6xf32>
    %936 = tpu.matmul %927, %935, %cst_349 {dimension_numbers = #tpu.dot_dimension_numbers<[1], [0], [0], [1], [0, 0, 1, 1], [], []>} : vector<8x192xf32>, vector<192x6xf32>, vector<8x6xf32> -> vector<8x6xf32>
    %c0_350 = arith.constant 0 : index
    %c0_351 = arith.constant 0 : index
    %937 = vector.load %arg17[%c0_350, %c0_351] : memref<384x6xf32, #tpu.memory_space<vmem>>, vector<384x6xf32>
    %cst_352 = arith.constant dense<0.000000e+00> : vector<8x6xf32>
    %938 = tpu.matmul %934, %937, %cst_352 {dimension_numbers = #tpu.dot_dimension_numbers<[1], [0], [0], [1], [0, 0, 1, 1], [], []>} : vector<8x384xf32>, vector<384x6xf32>, vector<8x6xf32> -> vector<8x6xf32>
    %939 = arith.addf %936, %938 : vector<8x6xf32>
    %c0_353 = arith.constant 0 : index
    %c0_354 = arith.constant 0 : index
    %940 = vector.load %arg18[%c0_353, %c0_354] : memref<1x6xf32, #tpu.memory_space<vmem>>, vector<1x6xf32>
    %941 = vector.broadcast %940 : vector<1x6xf32> to vector<8x6xf32>
    %942 = arith.addf %939, %941 : vector<8x6xf32>
    %c0_355 = arith.constant 0 : index
    %c0_356 = arith.constant 0 : index
    %943 = vector.load %arg19[%c0_355, %c0_356] : memref<8x6xf32, #tpu.memory_space<vmem>>, vector<8x6xf32>
    tpu.vector_store %arg19[%c0_355, %c0_356], %942 {strides = array<i32>} : memref<8x6xf32, #tpu.memory_space<vmem>>, vector<8x6xf32>,
    return
  }
}

</mosaic_0001>

<bundles_post_ra>
// kernel: lstm_gru_atten_forward.1
= control target key start
LH: loop header
LB: loop body
LE: loop exit
PB: predicated region body
PF: predicated region fallthrough
CT: control target
= control target key end

     0   :  { %s7384_s0 = inlined_call_operand.hbm [shape: s32[2,8], index: 0, kind: input, shape index: {}]   ;;  %s7385_s1 = inlined_call_operand.vmem [shape: f32[8,1], index: 1, kind: input, shape index: {}]   ;;  %s7386_s2 = inlined_call_operand.vmem [shape: f32[50,32], index: 2, kind: input, shape index: {}]   ;;  %s7387_s3 = inlined_call_operand.hbm [shape: f32[32,256], index: 3, kind: input, shape index: {}]   ;;  %s7388_s4 = inlined_call_operand.hbm [shape: f32[1,256], index: 4, kind: input, shape index: {}]   ;;  %s7389_s5 = inlined_call_operand.vmem [shape: f32[32,128], index: 5, kind: input, shape index: {}]   ;;  %s7390_s6 = inlined_call_operand.hbm [shape: f32[32,128], index: 6, kind: input, shape index: {}]   ;;  %s7391_s7 = inlined_call_operand.vmem [shape: f32[64,192], index: 7, kind: input, shape index: {}]   ;;  %s7392_s8 = inlined_call_operand.hbm [shape: f32[1,192], index: 8, kind: input, shape index: {}]   ;;  %s7393_s9 = inlined_call_operand.vmem [shape: f32[1,96], index: 9, kind: input, shape index: {}]   ;;  %s7394_s10 = inlined_call_operand.hbm [shape: f32[1,96], index: 10, kind: input, shape index: {}]   ;;  %s7395_s11 = inlined_call_operand.hbm [shape: f32[32,96], index: 11, kind: input, shape index: {}]   ;;  %s7396_s12 = inlined_call_operand.hbm [shape: f32[32,96], index: 12, kind: input, shape index: {}]   ;;  %s7397_s13 = inlined_call_operand.hbm [shape: f32[1,64], index: 13, kind: input, shape index: {}]   ;;  %s7398_s14 = inlined_call_operand.vmem [shape: f32[192,384], index: 14, kind: input, shape index: {}]   ;;  %s7399_s15 = inlined_call_operand.vmem [shape: f32[1,384], index: 15, kind: input, shape index: {}]   ;;  %s7400_s16 = inlined_call_operand.vmem [shape: f32[192,6], index: 16, kind: input, shape index: {}]   ;;  %s7401_s17 = inlined_call_operand.vmem [shape: f32[384,6], index: 17, kind: input, shape index: {}]   ;;  %s7402_s18 = inlined_call_operand.hbm [shape: f32[1,6], index: 18, kind: input, shape index: {}]   ;;  %s7403_s19 = inlined_call_operand.vmem [shape: f32[8,6], index: 19, kind: output, shape index: {}]  }
   0x1   :  { %7405 = sst [smem:[#allocation32_spill]] %s7384_s0 }
   0x2   :  { %7406 = sst [smem:[#allocation33_spill]] %s7385_s1 }
   0x3   :  { %7407 = sst [smem:[#allocation34_spill]] %s7386_s2 }
   0x4   :  { %7408 = sst [smem:[#allocation35_spill]] %s7387_s3 }
   0x5   :  { %24 = vsyncpa [#allocation9], 0 }
   0x6   :  { %25 = vsyncpa [#allocation10], 0 }
   0x7   :  { %26 = vsyncpa [#allocation8], 0 }
   0x8   :  { %27 = vsyncpa [#allocation14], 0 }
   0x9   :  { %28 = vsyncpa [#allocation17], 0 }
   0xa   :  { %29 = vsyncpa [#allocation20], 0 }
   0xb   :  { %30 = vsyncpa [#allocation23], 0  ;;  %s5669_s0 = smov [#allocation13]   ;;  %s5670_s20 = smov [#allocation16]  }
   0xc   :  { %s69_s30 = sshll.u32 %s5669_s0, 4  ;;  %s95_s21 = sshll.u32 %s5670_s20, 4  ;;  %s70_s30 = int_to_ptr.vmem [resolvable:$true] %s69_s30  ;;  %s96_s21 = int_to_ptr.vmem [resolvable:$true] %s95_s21 }
   0xd   :  { %s5463_s1 = scalar_lea.vmem %s70_s30, 32  ;;  %p5468_p1 = scmp.lt.s32.totalorder %s70_s30, %s70_s30 }
   0xe   :  { %p5464_p0 = scmp.ne.s32.totalorder %s70_s30, %s5463_s1  ;;  %p5469_p2 = scmp.lt.s32.totalorder %s5463_s1, %s5463_s1 }
  0x10   :  { %p5470_p3 = por %p5469_p2, %p5468_p1 }
  0x12   :  { %p5471_p4 = pnand %p5470_p3, %p5464_p0 }
  0x14   :  { %5474 = shalt.err (!%p5471_p4)
}
  0x15   :  { %72 = dma.hbm_to_vmem [thread:$0]  %s7388_s4, 32, %s70_s30, [#allocation14]  }
  0x16   :  { %s5483_s23 = scalar_lea.vmem %s96_s21, 32  ;;  %p5488_p6 = scmp.lt.s32.totalorder %s96_s21, %s96_s21 }
  0x17   :  { %p5484_p5 = scmp.ne.s32.totalorder %s96_s21, %s5483_s23  ;;  %p5489_p7 = scmp.lt.s32.totalorder %s5483_s23, %s5483_s23 }
  0x19   :  { %p5490_p8 = por %p5489_p7, %p5488_p6 }
  0x1b   :  { %p5491_p9 = pnand %p5490_p8, %p5484_p5 }
  0x1d   :  { %5494 = shalt.err (!%p5491_p9)
}
  0x1e   :  { %98 = dma.hbm_to_vmem [thread:$0]  %s7392_s8, 32, %s96_s21, [#allocation17]  }
  0x1f   :  { %s5671_s3 = smov [#allocation19]   ;;  %s5672_s27 = smov [#allocation22]  }
  0x20   :  { %s116_s26 = sshll.u32 %s5671_s3, 4  ;;  %s141_s28 = sshll.u32 %s5672_s27, 4  ;;  %s117_s26 = int_to_ptr.vmem [resolvable:$true] %s116_s26  ;;  %s142_s28 = int_to_ptr.vmem [resolvable:$true] %s141_s28 }
  0x21   :  { %s5503_s29 = scalar_lea.vmem %s117_s26, 512  ;;  %p5508_p11 = scmp.lt.s32.totalorder %s117_s26, %s117_s26 }
  0x22   :  { %p5504_p10 = scmp.ne.s32.totalorder %s117_s26, %s5503_s29  ;;  %p5509_p12 = scmp.lt.s32.totalorder %s5503_s29, %s5503_s29 }
  0x24   :  { %p5510_p13 = por %p5509_p12, %p5508_p11 }
  0x26   :  { %p5511_p0 = pnand %p5510_p13, %p5504_p10 }
  0x28   :  { %5514 = shalt.err (!%p5511_p0)
}
  0x29   :  { %s5673_s4 = smov 128   ;;  %s5674_s0 = smov 8  }
  0x2a   :  { %122 = dma.hbm_to_vmem [thread:$0]  %s7395_s11, 512, %s117_s26, [#allocation20], %s5673_s4, %s5673_s4, %s5674_s0  }
  0x2b   :  { %s5523_s20 = scalar_lea.vmem %s142_s28, 16  ;;  %s5527_s21 = scalar_lea.vmem %s142_s28, 32 }
  0x2c   :  { %p5524_p1 = scmp.ne.s32.totalorder %s142_s28, %s5523_s20  ;;  %p5528_p2 = scmp.lt.s32.totalorder %s142_s28, %s142_s28 }
  0x2d   :  { %p5529_p3 = scmp.lt.s32.totalorder %s5527_s21, %s5523_s20 }
  0x2f   :  { %p5530_p4 = por %p5529_p3, %p5528_p2 }
  0x31   :  { %p5531_p5 = pnand %p5530_p4, %p5524_p1 }
  0x33   :  { %5534 = shalt.err (!%p5531_p5)
}
  0x34   :  { %144 = dma.hbm_to_vmem [thread:$0]  %s7397_s13, 16, %s142_s28, [#allocation23]  }
  0x35   :  { %s7409_s24 = sld [smem:[#allocation33_spill]]  ;;  %s5675_s3 = smov [#allocation7]  }
  0x36   :  { %s7410_s11 = sld [smem:[#allocation32_spill]] }
  0x3b   :  { %s45_s25 = sshll.u32 %s7409_s24, 4  ;;  %s46_s25 = int_to_ptr.vmem [resolvable:$true] %s45_s25 }
  0x3c   :  { %38 = dma.hbm_to_smem %s7410_s11, 32, %s5675_s3, [#allocation9]  }
  0x3d   :  { %s5543_s26 = scalar_lea.vmem %s46_s25, 128  ;;  %p5548_p7 = scmp.lt.s32.totalorder %s46_s25, %s46_s25 }
  0x3e   :  { %p5544_p6 = scmp.ne.s32.totalorder %s46_s25, %s5543_s26  ;;  %p5549_p8 = scmp.lt.s32.totalorder %s5543_s26, %s5543_s26 }
  0x40   :  { %p5550_p9 = por %p5549_p8, %p5548_p7 }
  0x42   :  { %p5551_p10 = pnand %p5550_p9, %p5544_p6 }
  0x44   :  { %5554 = shalt.err (!%p5551_p10)
}
  0x45   :  { %s5676_s30 = smov [#allocation11]   ;;  %s5677_s13 = smov [#allocation12]  }
  0x46   :  { %48 = dma.vmem_to_smem %s46_s25, 128, %s5676_s30, [#allocation10]  }
  0x47   :  { %s56_s28 = sshll.u32 %s5677_s13, 4  ;;  %s57_s28 = int_to_ptr.vmem [resolvable:$true] %s56_s28 }
  0x48   :  { %s5563_s8 = scalar_lea.vmem %s57_s28, 1024  ;;  %p5568_p12 = scmp.lt.s32.totalorder %s57_s28, %s57_s28 }
  0x49   :  { %p5564_p11 = scmp.ne.s32.totalorder %s57_s28, %s5563_s8  ;;  %p5569_p13 = scmp.lt.s32.totalorder %s5563_s8, %s5563_s8 }
  0x4b   :  { %p5570_p0 = por %p5569_p13, %p5568_p12 }
  0x4d   :  { %p5571_p1 = pnand %p5570_p0, %p5564_p11 }
  0x4f   :  { %5574 = shalt.err (!%p5571_p1)
}
  0x50   :  { %s5678_s20 = smov 256   ;;  %s5679_s21 = smov 16  }
  0x51   :  { %s7411_s2 = sld [smem:[#allocation35_spill]]  ;;  %s5680_s23 = smov [#allocation15]  }
  0x52   :  { %s80_s24 = sshll.u32 %s5680_s23, 4  ;;  %s5681_s25 = smov [#allocation18]   ;;  %s81_s24 = int_to_ptr.vmem [resolvable:$true] %s80_s24 }
  0x53   :  { %s107_s3 = sshll.u32 %s5681_s25, 4  ;;  %s5583_s27 = scalar_lea.vmem %s81_s24, 512  ;;  %s108_s3 = int_to_ptr.vmem [resolvable:$true] %s107_s3 }
  0x54   :  { %p5584_p2 = scmp.ne.s32.totalorder %s81_s24, %s5583_s27  ;;  %p5588_p3 = scmp.lt.s32.totalorder %s81_s24, %s81_s24 }
  0x55   :  { %p5589_p4 = scmp.lt.s32.totalorder %s5583_s27, %s5583_s27 }
  0x57   :  { %62 = dma.hbm_to_vmem [thread:$0]  %s7411_s2, 1024, %s57_s28, [#allocation8], %s5678_s20, %s5678_s20, %s5679_s21  }
  0x58   :  { %p5590_p5 = por %p5589_p4, %p5588_p3 }
  0x5a   :  { %p5591_p6 = pnand %p5590_p5, %p5584_p2 }
  0x5c   :  { %5594 = shalt.err (!%p5591_p6)
}
  0x5d   :  { %86 = dma.hbm_to_vmem [thread:$0]  %s7390_s6, 512, %s81_s24, [#allocation14], %s5673_s4, %s5673_s4, %s5674_s0  }
  0x5e   :  { %s5603_s26 = scalar_lea.vmem %s108_s3, 16  ;;  %s5607_s30 = scalar_lea.vmem %s108_s3, 32 }
  0x5f   :  { %p5604_p7 = scmp.ne.s32.totalorder %s108_s3, %s5603_s26  ;;  %p5608_p8 = scmp.lt.s32.totalorder %s108_s3, %s108_s3 }
  0x60   :  { %p5609_p9 = scmp.lt.s32.totalorder %s5607_s30, %s5603_s26 }
  0x62   :  { %p5610_p10 = por %p5609_p9, %p5608_p8 }
  0x64   :  { %p5611_p11 = pnand %p5610_p10, %p5604_p7 }
  0x66   :  { %5614 = shalt.err (!%p5611_p11)
}
  0x67   :  { %110 = dma.hbm_to_vmem [thread:$0]  %s7394_s10, 16, %s108_s3, [#allocation17]  }
  0x68   :  { %s5682_s8 = smov [#allocation21]   ;;  %s5683_s21 = smov [#allocation24]  }
  0x69   :  { %s128_s20 = sshll.u32 %s5682_s8, 4  ;;  %s159_s1 = sshll.u32 %s5683_s21, 4  ;;  %s129_s20 = int_to_ptr.vmem [resolvable:$true] %s128_s20  ;;  %s160_s1 = int_to_ptr.vmem [resolvable:$true] %s159_s1 }
  0x6a   :  { %s5623_s22 = scalar_lea.vmem %s129_s20, 512  ;;  %p5628_p13 = scmp.lt.s32.totalorder %s129_s20, %s129_s20 }
  0x6b   :  { %p5624_p12 = scmp.ne.s32.totalorder %s129_s20, %s5623_s22  ;;  %p5629_p0 = scmp.lt.s32.totalorder %s5623_s22, %s5623_s22 }
  0x6d   :  { %p5630_p1 = por %p5629_p0, %p5628_p13 }
  0x6f   :  { %p5631_p2 = pnand %p5630_p1, %p5624_p12 }
  0x71   :  { %5634 = shalt.err (!%p5631_p2)
}
  0x72   :  { %134 = dma.hbm_to_vmem [thread:$0]  %s7396_s12, 512, %s129_s20, [#allocation20], %s5673_s4, %s5673_s4, %s5674_s0  }
  0x73   :  { %s5643_s10 = scalar_lea.vmem %s160_s1, 16  ;;  %s5647_s23 = scalar_lea.vmem %s160_s1, 32 }
  0x74   :  { %p5644_p3 = scmp.ne.s32.totalorder %s160_s1, %s5643_s10  ;;  %p5648_p4 = scmp.lt.s32.totalorder %s160_s1, %s160_s1 }
  0x75   :  { %p5649_p5 = scmp.lt.s32.totalorder %s5647_s23, %s5643_s10 }
  0x77   :  { %p5650_p6 = por %p5649_p5, %p5648_p4 }
  0x79   :  { %p5651_p7 = pnand %p5650_p6, %p5644_p3 }
  0x7b   :  { %5654 = shalt.err (!%p5651_p7)
}
  0x7c   :  { %162 = dma.hbm_to_vmem [thread:$0]  %s7402_s18, 16, %s160_s1, [#allocation23]  }
  0x7d   :  { %5655 = dma.done.wait [#allocation9], 32  }
  0x7e   :  { %5656 = vsyncadd [#allocation9], 4294967264 }
  0x7f   :  { %5657 = dma.done.wait [#allocation10], 128  }
  0x80   :  { %5658 = vsyncadd [#allocation10], 4294967168 }
  0x81   :  { %5659 = dma.done.wait [#allocation8], 1024  }
  0x82   :  { %5660 = vsyncadd [#allocation8], 4294966272 }
  0x83   :  { %5661 = dma.done.wait [#allocation14], 544  }
  0x84   :  { %5662 = vsyncadd [#allocation14], 4294966752 }
  0x85   :  { %5663 = dma.done.wait [#allocation17], 48  }
  0x86   :  { %5664 = vsyncadd [#allocation17], 4294967248 }
  0x87   :  { %5665 = dma.done.wait [#allocation20], 1024  }
  0x88   :  { %5666 = vsyncadd [#allocation20], 4294966272 }
  0x89   :  { %5667 = dma.done.wait [#allocation23], 32  }
  0x8a   :  { %5668 = vsyncadd [#allocation23], 4294967264 }
  0x8b   :  { %196 = sfence }
  0x8c   :  { %v286_v0 = vld [vmem:[#allocation12 + $0x38] sm:$0xff]  ;;  %v285_v1 = vld [vmem:[#allocation12 + $0x30] sm:$0xff]  ;;  %v284_v2 = vld [vmem:[#allocation12 + $0x28] sm:$0xff]  ;;  %vm197_vm0 = vcmask 261120   ;;  %v5684_v4 = vmov 0.0   ;;  %s206_s12 = sld [smem:[#allocation7]]  ;;  %v289_v33 = vlaneseq }
  0x8d   :  { %347 = vmatprep.subr.mxu0 %v286_v0  ;;  %v283_v3 = vld [vmem:[#allocation12 + $0x20] sm:$0xff]  ;;  %387 = vmatprep.mubr.f32.mxu0 %v5684_v4  ;;  %198 = vst.msk [vmem:[#allocation2] sm:$0xff] %vm197_vm0, %v5684_v4  ;;  %199 = vst.msk [vmem:[#allocation2 + $0x8] sm:$0xff] %vm197_vm0, %v5684_v4  ;;  %v282_v5 = vld [vmem:[#allocation12 + $0x18] sm:$0xff]  ;;  %s4500_s18 = sld [smem:[#allocation7 + $0x80]]  ;;  %vm209_vm1 = vcmask 253952  }
  0x8e   :  { %200 = vst.msk [vmem:[#allocation2 + $0x10] sm:$0xff] %vm197_vm0, %v5684_v4  ;;  %201 = vst.msk [vmem:[#allocation2 + $0x18] sm:$0xff] %vm197_vm0, %v5684_v4  ;;  %348 = vmatpush1.msra.mxu0 %v285_v1  ;;  %4820 = vmatprep.subr.mxu1 %v5684_v4  ;;  %v281_v6 = vld [vmem:[#allocation12 + $0x10] sm:$0xff]  ;;  %s4493_s4 = sld [smem:[#allocation7 + $0x1]]  ;;  %v280_v7 = vld [vmem:[#allocation12 + $0x8] sm:$0xff]  ;;  %v5929_v34 = vshrl.u32 %v289_v33, 7 }
  0x8f   :  { %202 = vst.msk [vmem:[#allocation2 + $0x20] sm:$0xff] %vm197_vm0, %v5684_v4  ;;  %203 = vst.msk [vmem:[#allocation2 + $0x28] sm:$0xff] %vm197_vm0, %v5684_v4  ;;  %349 = vmatprep.subr.mxu0 %v284_v2  ;;  %s4501_s0 = sld [smem:[#allocation7 + $0x81]]  ;;  %v279_v8 = vld [vmem:[#allocation12] sm:$0xff]  ;;  %vm5686_vm2 = vmmov 0   ;;  %vm519_vm3 = vcmask 523520  }
  0x90   :  { %204 = vst.msk [vmem:[#allocation2 + $0x30] sm:$0xff] %vm197_vm0, %v5684_v4  ;;  %205 = vst.msk [vmem:[#allocation2 + $0x38] sm:$0xff] %vm197_vm0, %v5684_v4  ;;  %350 = vmatpush1.msra.mxu0 %v283_v3  ;;  %s4494_s3 = sld [smem:[#allocation7 + $0x2]]  ;;  %v5932_v35 = vsub.s32 0, %v5929_v34  ;;  %v287_v36 = vld [vmem:[#allocation13] sm:$0x3]  ;;  %4828 = vmatprep.mubr.msk.f32.mxu1 %vm5686_vm2, %v5684_v4 }
  0x91   :  { %351 = vmatprep.subr.mxu0 %v282_v5  ;;  %s4502_s27 = sld [smem:[#allocation7 + $0x82]]  ;;  %v5935_v37 = vsub.s32 1, %v5929_v34  ;;  %v6004_v33 = vld [vmem:[%s7389_s5] sm:$0xff]  ;;  %vm2013_vm4 = vcmask 523264   ;;  %vm4464_vm5 = vcmask 48128  }
  0x92   :  { %352 = vmatpush1.msra.mxu0 %v281_v6  ;;  %s7412_s26 = sld [smem:[#allocation34_spill]]  ;;  %v292_v38 = vrot.slane %v287_v36, %v5932_v35 }
  0x93   :  { %353 = vmatprep.subr.mxu0 %v280_v7  ;;  %s4495_s13 = sld [smem:[#allocation7 + $0x3]]  ;;  %v296_v39 = vrot.slane %v287_v36, %v5935_v37 }
  0x94   :  { %354 = vmatpush1.msra.mxu0 %v279_v8  ;;  %s4503_s21 = sld [smem:[#allocation7 + $0x83]] }
  0x95   :  { %s4496_s2 = sld [smem:[#allocation7 + $0x4]]  ;;  %4798 = vmatprep.subr.mxu0 %v5684_v4 }
  0x96   :  { %s4504_s25 = sld [smem:[#allocation7 + $0x84]] }
  0x97   :  { %s4497_s11 = sld [smem:[#allocation7 + $0x5]] }
  0x98   :  { %s207_s30 = scalar_lea.vmem %s7412_s26, %s206_s12  ;;  %s240_s20 = scalar_lea.vmem %s7412_s26, %s4500_s18 }
  0x99   :  { %v208_v9 = vld [vmem:[%s207_s30] sm:$0x1]  ;;  %s212_s6 = scalar_lea.vmem %s7412_s26, %s4493_s4  ;;  %s244_s24 = scalar_lea.vmem %s7412_s26, %s4501_s0 }
  0x9a   :  { %210 = vst.msk [vmem:[#allocation2] sm:$0x1] %vm209_vm1, %v208_v9  ;;  %v241_v10 = vld [vmem:[%s240_s20] sm:$0x1]  ;;  %s216_s29 = scalar_lea.vmem %s7412_s26, %s4494_s3  ;;  %s248_s28 = scalar_lea.vmem %s7412_s26, %s4502_s27 }
  0x9b   :  { %242 = vst.msk [vmem:[#allocation2 + $0x1] sm:$0x1] %vm209_vm1, %v241_v10  ;;  %v213_v11 = vld [vmem:[%s212_s6] sm:$0x1]  ;;  %s4505_s8 = sld [smem:[#allocation7 + $0x85]]  ;;  %s220_s1 = scalar_lea.vmem %s7412_s26, %s4495_s13 }
  0x9c   :  { %214 = vst.msk [vmem:[#allocation2 + $0x8] sm:$0x1] %vm209_vm1, %v213_v11  ;;  %v245_v12 = vld [vmem:[%s244_s24] sm:$0x1]  ;;  %s4498_s22 = sld [smem:[#allocation7 + $0x6]]  ;;  %s252_s10 = scalar_lea.vmem %s7412_s26, %s4503_s21 }
  0x9d   :  { %246 = vst.msk [vmem:[#allocation2 + $0x9] sm:$0x1] %vm209_vm1, %v245_v12  ;;  %v217_v13 = vld [vmem:[%s216_s29] sm:$0x1]  ;;  %s4506_s23 = sld [smem:[#allocation7 + $0x86]]  ;;  %s224_s12 = scalar_lea.vmem %s7412_s26, %s4496_s2 }
  0x9e   :  { %218 = vst.msk [vmem:[#allocation2 + $0x10] sm:$0x1] %vm209_vm1, %v217_v13  ;;  %v249_v14 = vld [vmem:[%s248_s28] sm:$0x1]  ;;  %s4499_s18 = sld [smem:[#allocation7 + $0x7]]  ;;  %s256_s4 = scalar_lea.vmem %s7412_s26, %s4504_s25 }
  0x9f   :  { %250 = vst.msk [vmem:[#allocation2 + $0x11] sm:$0x1] %vm209_vm1, %v249_v14  ;;  %v221_v15 = vld [vmem:[%s220_s1] sm:$0x1]  ;;  %s4507_s30 = sld [smem:[#allocation7 + $0x87]]  ;;  %s228_s0 = scalar_lea.vmem %s7412_s26, %s4497_s11 }
  0xa0   :  { %222 = vst.msk [vmem:[#allocation2 + $0x18] sm:$0x1] %vm209_vm1, %v221_v15  ;;  %v253_v16 = vld [vmem:[%s252_s10] sm:$0x1]  ;;  %s5688_s20 = smov 96   ;;  %s4595_s10 = sld [smem:[#allocation11 + $0x80]] }
  0xa1   :  { %254 = vst.msk [vmem:[#allocation2 + $0x19] sm:$0x1] %vm209_vm1, %v253_v16  ;;  %v225_v17 = vld [vmem:[%s224_s12] sm:$0x1]  ;;  %s260_s1 = scalar_lea.vmem %s7412_s26, %s4505_s8  ;;  %s4596_s8 = sld [smem:[#allocation11 + $0x100]] }
  0xa2   :  { %v271_v18 = vld [vmem:[#allocation2] sm:$0xff]  ;;  %226 = vst.msk [vmem:[#allocation2 + $0x20] sm:$0x1] %vm209_vm1, %v225_v17  ;;  %s232_s6 = scalar_lea.vmem %s7412_s26, %s4498_s22  ;;  %s4597_s24 = sld [smem:[#allocation11 + $0x180]] }
  0xa3   :  { %v257_v19 = vld [vmem:[%s256_s4] sm:$0x1]  ;;  %4508 = vmatmul.mubr.msk.f32.vlgmr.msra.gmra.mxu0 %vm197_vm0, %v271_v18  ;;  %s264_s27 = scalar_lea.vmem %s7412_s26, %s4506_s23  ;;  %s4600_s22 = sld [smem:[#allocation11 + $0x300]] }
  0xa4   :  { %258 = vst.msk [vmem:[#allocation2 + $0x21] sm:$0x1] %vm209_vm1, %v257_v19  ;;  %v229_v20 = vld [vmem:[%s228_s0] sm:$0x1]  ;;  %393 = vmatprep.mubr.f32.mxu0 %v5684_v4  ;;  %v272_v21 = vld [vmem:[#allocation2 + $0x8] sm:$0xff]  ;;  %s236_s12 = scalar_lea.vmem %s7412_s26, %s4499_s18 }
  0xa5   :  { %230 = vst.msk [vmem:[#allocation2 + $0x28] sm:$0x1] %vm209_vm1, %v229_v20  ;;  %v261_v22 = vld [vmem:[%s260_s1] sm:$0x1]  ;;  %s268_s29 = scalar_lea.vmem %s7412_s26, %s4507_s30  ;;  %s5685_s26 = smov 32  }
  0xa6   :  { %262 = vst.msk [vmem:[#allocation2 + $0x29] sm:$0x1] %vm209_vm1, %v261_v22  ;;  %v233_v23 = vld [vmem:[%s232_s6] sm:$0x1]  ;;  %v273_v26 = vld [vmem:[#allocation2 + $0x10] sm:$0xff] }
  0xa7   :  { %234 = vst.msk [vmem:[#allocation2 + $0x30] sm:$0x1] %vm209_vm1, %v233_v23  ;;  %v265_v24 = vld [vmem:[%s264_s27] sm:$0x1]  ;;  %4509 = vmatmul.mubr.msk.f32.gmra.mxu0 %vm197_vm0, %v272_v21  ;;  %s3808_s27 = sld [smem:[#allocation11]] }
  0xa8   :  { %266 = vst.msk [vmem:[#allocation2 + $0x31] sm:$0x1] %vm209_vm1, %v265_v24  ;;  %v237_v25 = vld [vmem:[%s236_s12] sm:$0x1]  ;;  %399 = vmatprep.mubr.f32.mxu0 %v5684_v4  ;;  %v274_v28 = vld [vmem:[#allocation2 + $0x18] sm:$0xff]  ;;  %s4599_s12 = sld [smem:[#allocation11 + $0x280]] }
  0xa9   :  { %238 = vst.msk [vmem:[#allocation2 + $0x38] sm:$0x1] %vm209_vm1, %v237_v25  ;;  %v269_v27 = vld [vmem:[%s268_s29] sm:$0x1] }
  0xaa   :  { %270 = vst.msk [vmem:[#allocation2 + $0x39] sm:$0x1] %vm209_vm1, %v269_v27 }
  0xab   :  { %4510 = vmatmul.mubr.msk.f32.gmra.mxu0 %vm197_vm0, %v273_v26  ;;  %v275_v29 = vld [vmem:[#allocation2 + $0x20] sm:$0xff] }
  0xac   :  { %405 = vmatprep.mubr.f32.mxu0 %v5684_v4 }
  0xad   :  { %v276_v30 = vld [vmem:[#allocation2 + $0x28] sm:$0xff] }
  0xaf   :  { %4511 = vmatmul.mubr.msk.f32.gmra.mxu0 %vm197_vm0, %v274_v28  ;;  %v277_v31 = vld [vmem:[#allocation2 + $0x30] sm:$0xff] }
  0xb0   :  { %411 = vmatprep.mubr.f32.mxu0 %v5684_v4 }
  0xb1   :  { %v278_v32 = vld [vmem:[#allocation2 + $0x38] sm:$0xff] }
  0xb3   :  { %4512 = vmatmul.mubr.msk.f32.gmra.mxu0 %vm197_vm0, %v275_v29 }
  0xb4   :  { %417 = vmatprep.mubr.f32.mxu0 %v5684_v4 }
  0xb7   :  { %4513 = vmatmul.mubr.msk.f32.gmra.mxu0 %vm197_vm0, %v276_v30  ;;  %v5981_v30 = vld [vmem:[%s7389_s5 + $0x18] sm:$0xff] }
  0xb8   :  { %423 = vmatprep.mubr.f32.mxu0 %v5684_v4  ;;  %4799 = vmatpush3.msra.mxu0 %v5981_v30 }
  0xb9   :  { %4800 = vmatprep.subr.mxu0 %v5684_v4  ;;  %4821 = vmatpush3.msra.mxu1 %v5981_v30 }
  0xba   :  { %4822 = vmatprep.subr.mxu1 %v5684_v4 }
  0xbb   :  { %4514 = vmatmul.mubr.msk.f32.gmra.mxu0 %vm197_vm0, %v277_v31  ;;  %v5986_v31 = vld [vmem:[%s7389_s5 + $0x10] sm:$0xff] }
  0xbc   :  { %429 = vmatprep.mubr.f32.mxu0 %v5684_v4  ;;  %4801 = vmatpush3.msra.mxu0 %v5986_v31 }
  0xbd   :  { %4802 = vmatprep.subr.mxu0 %v5684_v4  ;;  %4823 = vmatpush3.msra.mxu1 %v5986_v31 }
  0xbe   :  { %4824 = vmatprep.subr.mxu1 %v5684_v4 }
  0xbf   :  { %4515 = vmatmul.mubr.msk.f32.gmra.mxu0 %vm197_vm0, %v278_v32  ;;  %v5995_v32 = vld [vmem:[%s7389_s5 + $0x8] sm:$0xff]  ;;  %s5687_s5 = smov 64  }
  0xc0   :  { %4806 = vmatprep.mubr.msk.f32.mxu0 %vm5686_vm2, %v5684_v4  ;;  %4803 = vmatpush3.msra.mxu0 %v5995_v32 }
  0xc1   :  { %4804 = vmatprep.subr.mxu0 %v5684_v4  ;;  %4825 = vmatpush3.msra.mxu1 %v5995_v32 }
  0xc2   :  { %4805 = vmatpush3.msra.mxu0 %v6004_v33  ;;  %4826 = vmatprep.subr.mxu1 %v5684_v4 }
  0xc3   :  { %4809 = vmatprep.subr.mxu0 %v5684_v4  ;;  %4827 = vmatpush3.msra.mxu1 %v6004_v33 }
  0xc4   :  { %4831 = vmatprep.subr.mxu1 %v5684_v4 }
 0x163   :  { %v389_v40 = vpop.f32.mrf.mxu0 }
 0x164   :  { %v390_v41 = vadd.f32 %v389_v40, %v292_v38 }
 0x165   :  { %v391_v42 = vpop.f32.mrf.mxu0 }
 0x166   :  { %5161 = vtanh.f32 %v390_v41  ;;  %v5939_v43 = vadd.f32 %v391_v42, %v296_v39  ;;  %v4516_v11 = vmul.f32 -1.442695, %v390_v41  ;;  %v6024_v42 = vld [vmem:[#allocation15 + $0x18] sm:$0xff] }
 0x167   :  { %v395_v44 = vpop.f32.mrf.mxu0 }
 0x168   :  { %v5941_v45 = vadd.f32 %v395_v44, %v292_v38 }
 0x169   :  { %v397_v46 = vpop.f32.mrf.mxu0 }
 0x16a   :  { %v5943_v47 = vadd.f32 %v397_v46, %v296_v39  ;;  %v6028_v46 = vld [vmem:[#allocation15 + $0x10] sm:$0xff] }
 0x16b   :  { %v401_v48 = vpop.f32.mrf.mxu0 }
 0x16c   :  { %v5945_v49 = vadd.f32 %v401_v48, %v292_v38  ;;  %v6034_v48 = vld [vmem:[#allocation15 + $0x8] sm:$0xff] }
 0x16d   :  { %v403_v50 = vpop.f32.mrf.mxu0 }
 0x16e   :  { %v5947_v51 = vadd.f32 %v403_v50, %v296_v39  ;;  %v6038_v50 = vld [vmem:[#allocation15] sm:$0xff] }
 0x16f   :  { %v407_v52 = vpop.f32.mrf.mxu0 }
 0x170   :  { %v5949_v53 = vadd.f32 %v407_v52, %v292_v38 }
 0x171   :  { %v409_v54 = vpop.f32.mrf.mxu0 }
 0x172   :  { %v5951_v55 = vadd.f32 %v409_v54, %v296_v39 }
 0x173   :  { %v5162_v56 = vpop.eup %5161  ;;  %v413_v57 = vpop.f32.mrf.mxu0 }
 0x174   :  { %v5953_v58 = vadd.f32 %v413_v57, %v292_v38  ;;  %471 = vrot.lane.b32.xlu0 %v5162_v56, %s5685_s26 }
 0x175   :  { %v415_v59 = vpop.f32.mrf.mxu0 }
 0x176   :  { %v5956_v60 = vadd.f32 %v415_v59, %v296_v39 }
 0x177   :  { %v419_v61 = vpop.f32.mrf.mxu0 }
 0x178   :  { %v5958_v62 = vadd.f32 %v419_v61, %v292_v38 }
 0x179   :  { %v421_v63 = vpop.f32.mrf.mxu0 }
 0x17a   :  { %v5960_v0 = vadd.f32 %v421_v63, %v296_v39 }
 0x17b   :  { %v425_v1 = vpop.f32.mrf.mxu0 }
 0x17c   :  { %v5962_v2 = vadd.f32 %v425_v1, %v292_v38 }
 0x17d   :  { %v427_v3 = vpop.f32.mrf.mxu0 }
 0x17e   :  { %v5964_v5 = vadd.f32 %v427_v3, %v296_v39 }
 0x17f   :  { %v431_v6 = vpop.f32.mrf.mxu0 }
 0x180   :  { %v5966_v7 = vadd.f32 %v431_v6, %v292_v38 }
 0x181   :  { %v433_v8 = vpop.f32.mrf.mxu0 }
 0x182   :  { %v434_v9 = vadd.f32 %v433_v8, %v296_v39 }
 0x184   :  { %5163 = vtanh.f32 %v434_v9  ;;  %v4517_v14 = vmul.f32 -1.442695, %v434_v9 }
 0x185   :  { %5165 = vpow2.f32 %v4516_v11 }
 0x191   :  { %v5164_v10 = vpop.eup %5163 }
 0x192   :  { %495 = vrot.lane.b32.xlu0 %v5164_v10, %s5685_s26  ;;  %v5166_v12 = vpop.eup %5165 }
 0x193   :  { %v465_v13 = vadd.f32 1.0, %v5166_v12 }
 0x195   :  { %5167 = vrcp.f32 %v465_v13 }
 0x196   :  { %5169 = vpow2.f32 %v4517_v14 }
 0x1a2   :  { %v5168_v15 = vpop.eup %5167 }
 0x1a3   :  { %v5170_v18 = vpop.eup %5169  ;;  %v469_v23 = vmul.f32 0.0, %v5168_v15 }
 0x1a4   :  { %v489_v19 = vadd.f32 1.0, %v5170_v18 }
 0x1a6   :  { %5171 = vrcp.f32 %v489_v19 }
 0x1b3   :  { %v5172_v20 = vpop.eup %5171 }
 0x1b4   :  { %v493_v27 = vmul.f32 0.0, %v5172_v20 }
 0x1e6   :  { %v472_v16 = vpop.permute.xlu0 %471 }
 0x1e7   :  { %v474_v17 = vmul.f32 %v5168_v15, %v472_v16 }
 0x1e9   :  { %476 = vrot.lane.b32.xlu1 %v474_v17, %s5685_s26 }
 0x204   :  { %v496_v21 = vpop.permute.xlu0 %495 }
 0x205   :  { %v498_v22 = vmul.f32 %v5172_v20, %v496_v21 }
 0x207   :  { %500 = vrot.lane.b32.xlu1 %v498_v22, %s5685_s26 }
 0x25b   :  { %v477_v24 = vpop.permute.xlu1 %476 }
 0x25c   :  { %v5971_v25 = vadd.f32 %v477_v24, %v469_v23 }
 0x25e   :  { %5173 = vtanh.f32 %v5971_v25 }
 0x26b   :  { %v5174_v26 = vpop.eup %5173 }
 0x26c   :  { %482 = vrot.lane.b32.xlu0 %v5174_v26, %s5685_s26 }
 0x279   :  { %v501_v28 = vpop.permute.xlu1 %500 }
 0x27a   :  { %v5975_v29 = vadd.f32 %v501_v28, %v493_v27 }
 0x27c   :  { %5175 = vtanh.f32 %v5975_v29 }
 0x289   :  { %v5176_v36 = vpop.eup %5175 }
 0x28a   :  { %506 = vrot.lane.b32.xlu1 %v5176_v36, %s5685_s26 }
 0x2de   :  { %v483_v38 = vpop.permute.xlu0 %482 }
 0x2df   :  { %v485_v39 = vmul.f32 %v5168_v15, %v483_v38 }
 0x2e1   :  { %511 = vrot.lane.b32.xlu0 %v485_v39, %s5687_s5 }
 0x2fc   :  { %v507_v40 = vpop.permute.xlu1 %506 }
 0x2fd   :  { %v6020_v41 = vmul.f32 %v5172_v20, %v507_v40 }
 0x2ff   :  { %596 = vrot.lane.b32.xlu1 %v6020_v41, %s5687_s5 }
 0x353   :  { %v512_v44 = vpop.permute.xlu0 %511 }
 0x354   :  { %514 = vst.msk [vmem:[#allocation4] sm:$0xff] %vm197_vm0, %v512_v44  ;;  %4807 = vmatmul.mubr.msk.f32.vlgmr.msra.gmra.mxu0 %vm197_vm0, %v512_v44 }
 0x355   :  { %4810 = vmatpush3.msra.mxu0 %v6024_v42  ;;  %4817 = vmatprep.mubr.msk.f32.mxu0 %vm5686_vm2, %v5684_v4 }
 0x356   :  { %4811 = vmatprep.subr.mxu0 %v5684_v4 }
 0x357   :  { %4812 = vmatpush3.msra.mxu0 %v6028_v46 }
 0x358   :  { %4813 = vmatprep.subr.mxu0 %v5684_v4 }
 0x359   :  { %4814 = vmatpush3.msra.mxu0 %v6034_v48 }
 0x35a   :  { %4815 = vmatprep.subr.mxu0 %v5684_v4 }
 0x35b   :  { %4816 = vmatpush3.msra.mxu0 %v6038_v50 }
 0x35c   :  { %4842 = vmatprep.subr.mxu0 %v5684_v4 }
 0x371   :  { %v597_v52 = vpop.permute.xlu1 %596 }
 0x372   :  { %4818 = vmatmul.mubr.msk.f32.vlgmr.msra.gmra.mxu0 %vm197_vm0, %v597_v52 }
 0x373   :  { %4843 = vmatpush3.msra.mxu0 %v5981_v30  ;;  %4850 = vmatprep.mubr.msk.f32.mxu0 %vm5686_vm2, %v5684_v4 }
 0x374   :  { %4844 = vmatprep.subr.mxu0 %v5684_v4 }
 0x375   :  { %4845 = vmatpush3.msra.mxu0 %v5986_v31 }
 0x376   :  { %4846 = vmatprep.subr.mxu0 %v5684_v4 }
 0x377   :  { %4847 = vmatpush3.msra.mxu0 %v5995_v32 }
 0x378   :  { %4848 = vmatprep.subr.mxu0 %v5684_v4 }
 0x379   :  { %4849 = vmatpush3.msra.mxu0 %v6004_v33 }
 0x37a   :  { %4864 = vmatprep.subr.mxu0 %v5684_v4 }
 0x414   :  { %v591_v54 = vpop.f32.mrf.mxu0 }
 0x415   :  { %v595_v56 = vadd.f32 %v591_v54, %v5941_v45 }
 0x416   :  { %v4808_v57 = vpop.f32.mrf.mxu0 }
 0x417   :  { %5177 = vtanh.f32 %v595_v56  ;;  %v4520_v6 = vmul.f32 -1.442695, %v595_v56 }
 0x424   :  { %v5178_v59 = vpop.eup %5177 }
 0x425   :  { %680 = vrot.lane.b32.xlu0 %v5178_v59, %s5685_s26 }
 0x432   :  { %v666_v61 = vpop.f32.mrf.mxu0 }
 0x433   :  { %v670_v63 = vadd.f32 %v666_v61, %v5964_v5 }
 0x434   :  { %v4819_v1 = vpop.f32.mrf.mxu0 }
 0x435   :  { %5179 = vtanh.f32 %v670_v63  ;;  %v4521_v10 = vmul.f32 -1.442695, %v670_v63 }
 0x436   :  { %5181 = vpow2.f32 %v4520_v6 }
 0x442   :  { %v5180_v3 = vpop.eup %5179 }
 0x443   :  { %704 = vrot.lane.b32.xlu1 %v5180_v3, %s5685_s26  ;;  %v5182_v8 = vpop.eup %5181 }
 0x444   :  { %v674_v9 = vadd.f32 1.0, %v5182_v8 }
 0x446   :  { %5183 = vrcp.f32 %v674_v9 }
 0x447   :  { %5185 = vpow2.f32 %v4521_v10 }
 0x453   :  { %v5184_v45 = vpop.eup %5183 }
 0x454   :  { %v5186_v13 = vpop.eup %5185  ;;  %v678_v17 = vmul.f32 %v5184_v45, %v5971_v25 }
 0x455   :  { %v698_v14 = vadd.f32 1.0, %v5186_v13 }
 0x457   :  { %5187 = vrcp.f32 %v698_v14 }
 0x464   :  { %v5188_v5 = vpop.eup %5187 }
 0x465   :  { %v702_v21 = vmul.f32 %v5188_v5, %v5975_v29 }
 0x497   :  { %v681_v11 = vpop.permute.xlu0 %680 }
 0x498   :  { %v683_v12 = vmul.f32 %v5184_v45, %v681_v11 }
 0x49a   :  { %685 = vrot.lane.b32.xlu0 %v683_v12, %s5685_s26 }
 0x4b5   :  { %v705_v15 = vpop.permute.xlu1 %704 }
 0x4b6   :  { %v707_v16 = vmul.f32 %v5188_v5, %v705_v15 }
 0x4b8   :  { %709 = vrot.lane.b32.xlu1 %v707_v16, %s5685_s26 }
 0x50c   :  { %v686_v18 = vpop.permute.xlu0 %685 }
 0x50d   :  { %v6062_v19 = vadd.f32 %v686_v18, %v678_v17 }
 0x50f   :  { %5189 = vtanh.f32 %v6062_v19 }
 0x51c   :  { %v5190_v20 = vpop.eup %5189 }
 0x51d   :  { %691 = vrot.lane.b32.xlu0 %v5190_v20, %s5685_s26 }
 0x52a   :  { %v710_v22 = vpop.permute.xlu1 %709 }
 0x52b   :  { %v712_v23 = vadd.f32 %v710_v22, %v702_v21 }
 0x52d   :  { %5191 = vtanh.f32 %v712_v23 }
 0x53a   :  { %v5192_v24 = vpop.eup %5191 }
 0x53b   :  { %715 = vrot.lane.b32.xlu1 %v5192_v24, %s5685_s26 }
 0x58f   :  { %v692_v26 = vpop.permute.xlu0 %691 }
 0x590   :  { %v694_v27 = vmul.f32 %v5184_v45, %v692_v26 }
 0x592   :  { %720 = vrot.lane.b32.xlu0 %v694_v27, %s5687_s5 }
 0x5ad   :  { %v716_v25 = vpop.permute.xlu1 %715 }
 0x5ae   :  { %v6069_v28 = vmul.f32 %v5188_v5, %v716_v25 }
 0x5b0   :  { %804 = vrot.lane.b32.xlu1 %v6069_v28, %s5687_s5 }
 0x604   :  { %v721_v36 = vpop.permute.xlu0 %720 }
 0x605   :  { %723 = vst.msk [vmem:[#allocation4 + $0x8] sm:$0xff] %vm197_vm0, %v721_v36  ;;  %4829 = vmatmul.mubr.msk.f32.vlgmr.msra.gmra.mxu1 %vm197_vm0, %v721_v36 }
 0x606   :  { %4832 = vmatpush3.msra.mxu1 %v6024_v42  ;;  %4839 = vmatprep.mubr.msk.f32.mxu1 %vm5686_vm2, %v5684_v4 }
 0x607   :  { %4833 = vmatprep.subr.mxu1 %v5684_v4 }
 0x608   :  { %4834 = vmatpush3.msra.mxu1 %v6028_v46 }
 0x609   :  { %4835 = vmatprep.subr.mxu1 %v5684_v4 }
 0x60a   :  { %4836 = vmatpush3.msra.mxu1 %v6034_v48 }
 0x60b   :  { %4837 = vmatprep.subr.mxu1 %v5684_v4 }
 0x60c   :  { %4838 = vmatpush3.msra.mxu1 %v6038_v50 }
 0x60d   :  { %4853 = vmatprep.subr.mxu1 %v5684_v4 }
 0x622   :  { %v805_v29 = vpop.permute.xlu1 %804 }
 0x623   :  { %4840 = vmatmul.mubr.msk.f32.vlgmr.msra.gmra.mxu1 %vm197_vm0, %v805_v29 }
 0x624   :  { %4854 = vmatpush3.msra.mxu1 %v6024_v42  ;;  %4861 = vmatprep.mubr.msk.f32.mxu1 %vm5686_vm2, %v5684_v4 }
 0x625   :  { %4855 = vmatprep.subr.mxu1 %v5684_v4 }
 0x626   :  { %4856 = vmatpush3.msra.mxu1 %v6028_v46 }
 0x627   :  { %4857 = vmatprep.subr.mxu1 %v5684_v4 }
 0x628   :  { %4858 = vmatpush3.msra.mxu1 %v6034_v48 }
 0x629   :  { %4859 = vmatprep.subr.mxu1 %v5684_v4 }
 0x62a   :  { %4860 = vmatpush3.msra.mxu1 %v6038_v50 }
 0x62b   :  { %4875 = vmatprep.subr.mxu1 %v5684_v4 }
 0x6c5   :  { %v799_v38 = vpop.f32.mrf.mxu1 }
 0x6c6   :  { %v803_v39 = vadd.f32 %v799_v38, %v5945_v49 }
 0x6c7   :  { %v4830_v40 = vpop.f32.mrf.mxu1 }
 0x6e3   :  { %v874_v44 = vpop.f32.mrf.mxu1 }
 0x6e4   :  { %v878_v52 = vadd.f32 %v874_v44, %v5960_v0  ;;  %v4524_v0 = vmul.f32 -1.442695, %v803_v39 }
 0x6e5   :  { %v4841_v54 = vpop.f32.mrf.mxu1 }
 0x6e6   :  { %5193 = vtanh.f32 %v878_v52  ;;  %v4525_v57 = vmul.f32 -1.442695, %v878_v52 }
 0x6e8   :  { %5195 = vpow2.f32 %v4525_v57 }
 0x6f3   :  { %v5194_v56 = vpop.eup %5193 }
 0x6f4   :  { %912 = vrot.lane.b32.xlu0 %v5194_v56, %s5685_s26 }
 0x6f5   :  { %v5196_v59 = vpop.eup %5195 }
 0x6f6   :  { %v906_v61 = vadd.f32 1.0, %v5196_v59 }
 0x6f8   :  { %5197 = vrcp.f32 %v906_v61 }
 0x6f9   :  { %5199 = vtanh.f32 %v803_v39 }
 0x6fa   :  { %5201 = vpow2.f32 %v4524_v0 }
 0x705   :  { %v5198_v63 = vpop.eup %5197 }
 0x706   :  { %v5200_v49 = vpop.eup %5199  ;;  %v910_v9 = vmul.f32 %v5198_v63, %v712_v23 }
 0x707   :  { %v5202_v6 = vpop.eup %5201 }
 0x708   :  { %v882_v8 = vadd.f32 1.0, %v5202_v6 }
 0x70a   :  { %5203 = vrcp.f32 %v882_v8 }
 0x717   :  { %v5204_v11 = vpop.eup %5203 }
 0x718   :  { %v886_v5 = vmul.f32 %v5204_v11, %v6062_v19 }
 0x766   :  { %v913_v1 = vpop.permute.xlu0 %912 }
 0x767   :  { %v915_v3 = vmul.f32 %v5198_v63, %v913_v1 }
 0x769   :  { %917 = vrot.lane.b32.xlu1 %v915_v3, %s5685_s26 }
 0x76d   :  { %888 = vrot.lane.b32.xlu1 %v5200_v49, %s5685_s26 }
 0x7db   :  { %v918_v10 = vpop.permute.xlu1 %917 }
 0x7dc   :  { %v6101_v45 = vadd.f32 %v918_v10, %v910_v9 }
 0x7de   :  { %5205 = vtanh.f32 %v6101_v45 }
 0x7df   :  { %v889_v12 = vpop.permute.xlu1 %888 }
 0x7e0   :  { %v891_v13 = vmul.f32 %v5204_v11, %v889_v12 }
 0x7e2   :  { %893 = vrot.lane.b32.xlu1 %v891_v13, %s5685_s26 }
 0x7eb   :  { %v5206_v14 = vpop.eup %5205 }
 0x7ec   :  { %923 = vrot.lane.b32.xlu0 %v5206_v14, %s5685_s26 }
 0x854   :  { %v894_v15 = vpop.permute.xlu1 %893 }
 0x855   :  { %v6107_v16 = vadd.f32 %v894_v15, %v886_v5 }
 0x857   :  { %5207 = vtanh.f32 %v6107_v16 }
 0x85e   :  { %v924_v17 = vpop.permute.xlu0 %923 }
 0x85f   :  { %v6110_v18 = vmul.f32 %v5198_v63, %v924_v17 }
 0x861   :  { %1012 = vrot.lane.b32.xlu0 %v6110_v18, %s5687_s5 }
 0x864   :  { %v5208_v20 = vpop.eup %5207 }
 0x865   :  { %899 = vrot.lane.b32.xlu0 %v5208_v20, %s5685_s26 }
 0x8d3   :  { %v1013_v21 = vpop.permute.xlu0 %1012 }
 0x8d4   :  { %4862 = vmatmul.mubr.msk.f32.vlgmr.msra.gmra.mxu1 %vm197_vm0, %v1013_v21 }
 0x8d5   :  { %4876 = vmatpush3.msra.mxu1 %v6024_v42  ;;  %4883 = vmatprep.mubr.msk.f32.mxu1 %vm5686_vm2, %v5684_v4 }
 0x8d6   :  { %4877 = vmatprep.subr.mxu1 %v5684_v4 }
 0x8d7   :  { %v900_v19 = vpop.permute.xlu0 %899  ;;  %4878 = vmatpush3.msra.mxu1 %v6028_v46 }
 0x8d8   :  { %v902_v22 = vmul.f32 %v5204_v11, %v900_v19  ;;  %4879 = vmatprep.subr.mxu1 %v5684_v4 }
 0x8d9   :  { %4880 = vmatpush3.msra.mxu1 %v6034_v48 }
 0x8da   :  { %928 = vrot.lane.b32.xlu1 %v902_v22, %s5687_s5  ;;  %4881 = vmatprep.subr.mxu1 %v5684_v4 }
 0x8db   :  { %4882 = vmatpush3.msra.mxu1 %v6038_v50 }
 0x8dc   :  { %4897 = vmatprep.subr.mxu1 %v5684_v4 }
 0x94c   :  { %v929_v23 = vpop.permute.xlu1 %928 }
 0x94d   :  { %931 = vst.msk [vmem:[#allocation4 + $0x10] sm:$0xff] %vm197_vm0, %v929_v23  ;;  %4851 = vmatmul.mubr.msk.f32.vlgmr.msra.gmra.mxu0 %vm197_vm0, %v929_v23 }
 0x94e   :  { %4865 = vmatpush3.msra.mxu0 %v5981_v30  ;;  %4872 = vmatprep.mubr.msk.f32.mxu0 %vm5686_vm2, %v5684_v4 }
 0x94f   :  { %4866 = vmatprep.subr.mxu0 %v5684_v4 }
 0x950   :  { %4867 = vmatpush3.msra.mxu0 %v5986_v31 }
 0x951   :  { %4868 = vmatprep.subr.mxu0 %v5684_v4 }
 0x952   :  { %4869 = vmatpush3.msra.mxu0 %v5995_v32 }
 0x953   :  { %4870 = vmatprep.subr.mxu0 %v5684_v4 }
 0x954   :  { %4871 = vmatpush3.msra.mxu0 %v6004_v33 }
 0x955   :  { %4886 = vmatprep.subr.mxu0 %v5684_v4 }
 0x994   :  { %v1082_v24 = vpop.f32.mrf.mxu1 }
 0x995   :  { %v1086_v26 = vadd.f32 %v1082_v24, %v5956_v60 }
 0x996   :  { %v4863_v27 = vpop.f32.mrf.mxu1 }
 0x997   :  { %5209 = vtanh.f32 %v1086_v26  ;;  %v4529_v36 = vmul.f32 -1.442695, %v1086_v26 }
 0x999   :  { %5211 = vpow2.f32 %v4529_v36 }
 0x9a4   :  { %v5210_v25 = vpop.eup %5209 }
 0x9a5   :  { %1120 = vrot.lane.b32.xlu0 %v5210_v25, %s5685_s26 }
 0x9a6   :  { %v5212_v29 = vpop.eup %5211 }
 0x9a7   :  { %v1114_v38 = vadd.f32 1.0, %v5212_v29 }
 0x9a9   :  { %5213 = vrcp.f32 %v1114_v38 }
 0x9b6   :  { %v5214_v52 = vpop.eup %5213 }
 0x9b7   :  { %v1118_v63 = vmul.f32 %v5214_v52, %v6101_v45 }
 0xa0d   :  { %v1007_v39 = vpop.f32.mrf.mxu0 }
 0xa0e   :  { %v1011_v40 = vadd.f32 %v1007_v39, %v5949_v53 }
 0xa0f   :  { %v4852_v44 = vpop.f32.mrf.mxu0 }
 0xa10   :  { %5215 = vtanh.f32 %v1011_v40  ;;  %v4528_v57 = vmul.f32 -1.442695, %v1011_v40 }
 0xa12   :  { %5217 = vpow2.f32 %v4528_v57 }
 0xa17   :  { %v1121_v54 = vpop.permute.xlu0 %1120 }
 0xa18   :  { %v1123_v56 = vmul.f32 %v5214_v52, %v1121_v54 }
 0xa1a   :  { %1125 = vrot.lane.b32.xlu1 %v1123_v56, %s5685_s26 }
 0xa1d   :  { %v5216_v60 = vpop.eup %5215 }
 0xa1e   :  { %1096 = vrot.lane.b32.xlu1 %v5216_v60, %s5685_s26 }
 0xa1f   :  { %v5218_v59 = vpop.eup %5217 }
 0xa20   :  { %v1090_v61 = vadd.f32 1.0, %v5218_v59 }
 0xa22   :  { %5219 = vrcp.f32 %v1090_v61 }
 0xa2f   :  { %v5220_v53 = vpop.eup %5219 }
 0xa30   :  { %v1094_v8 = vmul.f32 %v5220_v53, %v6107_v16 }
 0xa8c   :  { %v1126_v1 = vpop.permute.xlu1 %1125 }
 0xa8d   :  { %v6145_v3 = vadd.f32 %v1126_v1, %v1118_v63 }
 0xa8f   :  { %5221 = vtanh.f32 %v6145_v3 }
 0xa90   :  { %v1097_v49 = vpop.permute.xlu1 %1096 }
 0xa91   :  { %v1099_v0 = vmul.f32 %v5220_v53, %v1097_v49 }
 0xa93   :  { %1101 = vrot.lane.b32.xlu1 %v1099_v0, %s5685_s26 }
 0xa9c   :  { %v5222_v6 = vpop.eup %5221 }
 0xa9d   :  { %1131 = vrot.lane.b32.xlu0 %v5222_v6, %s5685_s26 }
 0xb05   :  { %v1102_v9 = vpop.permute.xlu1 %1101 }
 0xb06   :  { %v6151_v10 = vadd.f32 %v1102_v9, %v1094_v8 }
 0xb08   :  { %5223 = vtanh.f32 %v6151_v10 }
 0xb0f   :  { %v1132_v45 = vpop.permute.xlu0 %1131 }
 0xb10   :  { %v6154_v11 = vmul.f32 %v5214_v52, %v1132_v45 }
 0xb12   :  { %1220 = vrot.lane.b32.xlu0 %v6154_v11, %s5687_s5 }
 0xb15   :  { %v5224_v12 = vpop.eup %5223 }
 0xb16   :  { %1107 = vrot.lane.b32.xlu0 %v5224_v12, %s5685_s26 }
 0xb84   :  { %v1221_v13 = vpop.permute.xlu0 %1220 }
 0xb85   :  { %4884 = vmatmul.mubr.msk.f32.vlgmr.msra.gmra.mxu1 %vm197_vm0, %v1221_v13 }
 0xb86   :  { %4898 = vmatpush3.msra.mxu1 %v6024_v42  ;;  %4905 = vmatprep.mubr.msk.f32.mxu1 %vm5686_vm2, %v5684_v4 }
 0xb87   :  { %4899 = vmatprep.subr.mxu1 %v5684_v4 }
 0xb88   :  { %v1108_v14 = vpop.permute.xlu0 %1107  ;;  %4900 = vmatpush3.msra.mxu1 %v6028_v46 }
 0xb89   :  { %v1110_v5 = vmul.f32 %v5220_v53, %v1108_v14  ;;  %4901 = vmatprep.subr.mxu1 %v5684_v4 }
 0xb8a   :  { %4902 = vmatpush3.msra.mxu1 %v6034_v48 }
 0xb8b   :  { %1136 = vrot.lane.b32.xlu1 %v1110_v5, %s5687_s5  ;;  %4903 = vmatprep.subr.mxu1 %v5684_v4 }
 0xb8c   :  { %4904 = vmatpush3.msra.mxu1 %v6038_v50 }
 0xb8d   :  { %4919 = vmatprep.subr.mxu1 %v5684_v4 }
 0xbfd   :  { %v1137_v15 = vpop.permute.xlu1 %1136 }
 0xbfe   :  { %1139 = vst.msk [vmem:[#allocation4 + $0x18] sm:$0xff] %vm197_vm0, %v1137_v15  ;;  %4873 = vmatmul.mubr.msk.f32.vlgmr.msra.gmra.mxu0 %vm197_vm0, %v1137_v15 }
 0xbff   :  { %4887 = vmatpush3.msra.mxu0 %v5981_v30  ;;  %4894 = vmatprep.mubr.msk.f32.mxu0 %vm5686_vm2, %v5684_v4 }
 0xc00   :  { %4888 = vmatprep.subr.mxu0 %v5684_v4 }
 0xc01   :  { %4889 = vmatpush3.msra.mxu0 %v5986_v31 }
 0xc02   :  { %4890 = vmatprep.subr.mxu0 %v5684_v4 }
 0xc03   :  { %4891 = vmatpush3.msra.mxu0 %v5995_v32 }
 0xc04   :  { %4892 = vmatprep.subr.mxu0 %v5684_v4 }
 0xc05   :  { %4893 = vmatpush3.msra.mxu0 %v6004_v33 }
 0xc06   :  { %4908 = vmatprep.subr.mxu0 %v5684_v4 }
 0xc45   :  { %v1290_v16 = vpop.f32.mrf.mxu1 }
 0xc46   :  { %v1294_v17 = vadd.f32 %v1290_v16, %v5951_v55 }
 0xc47   :  { %v4885_v20 = vpop.f32.mrf.mxu1 }
 0xc48   :  { %5225 = vtanh.f32 %v1294_v17  ;;  %v4533_v19 = vmul.f32 -1.442695, %v1294_v17 }
 0xc4a   :  { %5227 = vpow2.f32 %v4533_v19 }
 0xc55   :  { %v5226_v21 = vpop.eup %5225 }
 0xc56   :  { %1328 = vrot.lane.b32.xlu0 %v5226_v21, %s5685_s26 }
 0xc57   :  { %v5228_v22 = vpop.eup %5227 }
 0xc58   :  { %v1322_v23 = vadd.f32 1.0, %v5228_v22 }
 0xc5a   :  { %5229 = vrcp.f32 %v1322_v23 }
 0xc67   :  { %v5230_v25 = vpop.eup %5229 }
 0xc68   :  { %v1326_v44 = vmul.f32 %v5230_v25, %v6145_v3 }
 0xcbe   :  { %v1215_v24 = vpop.f32.mrf.mxu0 }
 0xcbf   :  { %v1219_v26 = vadd.f32 %v1215_v24, %v5953_v58 }
 0xcc0   :  { %v4874_v27 = vpop.f32.mrf.mxu0 }
 0xcc1   :  { %5231 = vtanh.f32 %v1219_v26  ;;  %v4532_v38 = vmul.f32 -1.442695, %v1219_v26 }
 0xcc3   :  { %5233 = vpow2.f32 %v4532_v38 }
 0xcc8   :  { %v1329_v36 = vpop.permute.xlu0 %1328 }
 0xcc9   :  { %v1331_v29 = vmul.f32 %v5230_v25, %v1329_v36 }
 0xccb   :  { %1333 = vrot.lane.b32.xlu1 %v1331_v29, %s5685_s26 }
 0xcce   :  { %v5232_v55 = vpop.eup %5231 }
 0xccf   :  { %1304 = vrot.lane.b32.xlu1 %v5232_v55, %s5685_s26 }
 0xcd0   :  { %v5234_v39 = vpop.eup %5233 }
 0xcd1   :  { %v1298_v40 = vadd.f32 1.0, %v5234_v39 }
 0xcd3   :  { %5235 = vrcp.f32 %v1298_v40 }
 0xce0   :  { %v5236_v58 = vpop.eup %5235 }
 0xce1   :  { %v1302_v59 = vmul.f32 %v5236_v58, %v6151_v10 }
 0xd3d   :  { %v1334_v52 = vpop.permute.xlu1 %1333 }
 0xd3e   :  { %v6189_v54 = vadd.f32 %v1334_v52, %v1326_v44 }
 0xd40   :  { %5237 = vtanh.f32 %v6189_v54 }
 0xd41   :  { %v1305_v56 = vpop.permute.xlu1 %1304 }
 0xd42   :  { %v1307_v60 = vmul.f32 %v5236_v58, %v1305_v56 }
 0xd44   :  { %1309 = vrot.lane.b32.xlu1 %v1307_v60, %s5685_s26 }
 0xd4d   :  { %v5238_v57 = vpop.eup %5237 }
 0xd4e   :  { %1339 = vrot.lane.b32.xlu0 %v5238_v57, %s5685_s26 }
 0xdb6   :  { %v1310_v61 = vpop.permute.xlu1 %1309 }
 0xdb7   :  { %v6195_v63 = vadd.f32 %v1310_v61, %v1302_v59 }
 0xdb9   :  { %5239 = vtanh.f32 %v6195_v63 }
 0xdc0   :  { %v1340_v1 = vpop.permute.xlu0 %1339 }
 0xdc1   :  { %v6198_v3 = vmul.f32 %v5230_v25, %v1340_v1 }
 0xdc3   :  { %1428 = vrot.lane.b32.xlu0 %v6198_v3, %s5687_s5 }
 0xdc6   :  { %v5240_v53 = vpop.eup %5239 }
 0xdc7   :  { %1315 = vrot.lane.b32.xlu0 %v5240_v53, %s5685_s26 }
 0xe35   :  { %v1429_v49 = vpop.permute.xlu0 %1428 }
 0xe36   :  { %4906 = vmatmul.mubr.msk.f32.vlgmr.msra.gmra.mxu1 %vm197_vm0, %v1429_v49 }
 0xe37   :  { %4920 = vmatpush3.msra.mxu1 %v6024_v42  ;;  %4927 = vmatprep.mubr.msk.f32.mxu1 %vm5686_vm2, %v5684_v4 }
 0xe38   :  { %4921 = vmatprep.subr.mxu1 %v5684_v4 }
 0xe39   :  { %v1316_v0 = vpop.permute.xlu0 %1315  ;;  %4922 = vmatpush3.msra.mxu1 %v6028_v46 }
 0xe3a   :  { %v1318_v6 = vmul.f32 %v5236_v58, %v1316_v0  ;;  %4923 = vmatprep.subr.mxu1 %v5684_v4 }
 0xe3b   :  { %4924 = vmatpush3.msra.mxu1 %v6034_v48 }
 0xe3c   :  { %1344 = vrot.lane.b32.xlu1 %v1318_v6, %s5687_s5  ;;  %4925 = vmatprep.subr.mxu1 %v5684_v4 }
 0xe3d   :  { %4926 = vmatpush3.msra.mxu1 %v6038_v50 }
 0xe3e   :  { %4941 = vmatprep.subr.mxu1 %v5684_v4 }
 0xeae   :  { %v6215_v8 = vpop.permute.xlu1 %1344 }
 0xeaf   :  { %4895 = vmatmul.mubr.msk.f32.vlgmr.msra.gmra.mxu0 %vm197_vm0, %v6215_v8 }
 0xeb0   :  { %4909 = vmatpush3.msra.mxu0 %v5981_v30  ;;  %4916 = vmatprep.mubr.msk.f32.mxu0 %vm5686_vm2, %v5684_v4 }
 0xeb1   :  { %4910 = vmatprep.subr.mxu0 %v5684_v4 }
 0xeb2   :  { %4911 = vmatpush3.msra.mxu0 %v5986_v31 }
 0xeb3   :  { %4912 = vmatprep.subr.mxu0 %v5684_v4 }
 0xeb4   :  { %4913 = vmatpush3.msra.mxu0 %v5995_v32 }
 0xeb5   :  { %4914 = vmatprep.subr.mxu0 %v5684_v4 }
 0xeb6   :  { %4915 = vmatpush3.msra.mxu0 %v6004_v33 }
 0xeb7   :  { %4930 = vmatprep.subr.mxu0 %v5684_v4 }
 0xef6   :  { %v1498_v9 = vpop.f32.mrf.mxu1 }
 0xef7   :  { %v1502_v10 = vadd.f32 %v1498_v9, %v5947_v51 }
 0xef8   :  { %v4907_v45 = vpop.f32.mrf.mxu1 }
 0xef9   :  { %5241 = vtanh.f32 %v1502_v10  ;;  %v4537_v13 = vmul.f32 -1.442695, %v1502_v10 }
 0xefb   :  { %5243 = vpow2.f32 %v4537_v13 }
 0xf06   :  { %v5242_v12 = vpop.eup %5241 }
 0xf07   :  { %1536 = vrot.lane.b32.xlu0 %v5242_v12, %s5685_s26 }
 0xf08   :  { %v5244_v14 = vpop.eup %5243 }
 0xf09   :  { %v1530_v5 = vadd.f32 1.0, %v5244_v14 }
 0xf0b   :  { %5245 = vrcp.f32 %v1530_v5 }
 0xf18   :  { %v5246_v20 = vpop.eup %5245 }
 0xf19   :  { %v1534_v26 = vmul.f32 %v5246_v20, %v6189_v54 }
 0xf6f   :  { %v1423_v15 = vpop.f32.mrf.mxu0 }
 0xf70   :  { %v1427_v16 = vadd.f32 %v1423_v15, %v5958_v62 }
 0xf71   :  { %v4896_v17 = vpop.f32.mrf.mxu0 }
 0xf72   :  { %5247 = vtanh.f32 %v1427_v16  ;;  %v4536_v22 = vmul.f32 -1.442695, %v1427_v16 }
 0xf74   :  { %5249 = vpow2.f32 %v4536_v22 }
 0xf79   :  { %v1537_v21 = vpop.permute.xlu0 %1536 }
 0xf7a   :  { %v1539_v19 = vmul.f32 %v5246_v20, %v1537_v21 }
 0xf7c   :  { %1541 = vrot.lane.b32.xlu1 %v1539_v19, %s5685_s26 }
 0xf7f   :  { %v5248_v51 = vpop.eup %5247 }
 0xf80   :  { %1512 = vrot.lane.b32.xlu1 %v5248_v51, %s5685_s26 }
 0xf81   :  { %v5250_v23 = vpop.eup %5249 }
 0xf82   :  { %v1506_v24 = vadd.f32 1.0, %v5250_v23 }
 0xf84   :  { %5251 = vrcp.f32 %v1506_v24 }
 0xf91   :  { %v5252_v62 = vpop.eup %5251 }
 0xf92   :  { %v1510_v38 = vmul.f32 %v5252_v62, %v6195_v63 }
 0xfee   :  { %v1542_v27 = vpop.permute.xlu1 %1541 }
 0xfef   :  { %v6235_v25 = vadd.f32 %v1542_v27, %v1534_v26 }
 0xff1   :  { %5253 = vtanh.f32 %v6235_v25 }
 0xff2   :  { %v1513_v36 = vpop.permute.xlu1 %1512 }
 0xff3   :  { %v1515_v29 = vmul.f32 %v5252_v62, %v1513_v36 }
 0xff5   :  { %1517 = vrot.lane.b32.xlu1 %v1515_v29, %s5685_s26 }
 0xffe   :  { %v5254_v55 = vpop.eup %5253 }
 0xfff   :  { %1547 = vrot.lane.b32.xlu0 %v5254_v55, %s5685_s26 }
0x1067   :  { %v1518_v39 = vpop.permute.xlu1 %1517 }
0x1068   :  { %v6241_v40 = vadd.f32 %v1518_v39, %v1510_v38 }
0x106a   :  { %5255 = vtanh.f32 %v6241_v40 }
0x1071   :  { %v1548_v44 = vpop.permute.xlu0 %1547 }
0x1072   :  { %v6244_v52 = vmul.f32 %v5246_v20, %v1548_v44 }
0x1074   :  { %1636 = vrot.lane.b32.xlu0 %v6244_v52, %s5687_s5 }
0x1077   :  { %v5256_v54 = vpop.eup %5255 }
0x1078   :  { %1523 = vrot.lane.b32.xlu0 %v5256_v54, %s5685_s26 }
0x10e6   :  { %v1637_v58 = vpop.permute.xlu0 %1636 }
0x10e7   :  { %4928 = vmatmul.mubr.msk.f32.vlgmr.msra.gmra.mxu1 %vm197_vm0, %v1637_v58 }
0x10e8   :  { %4942 = vmatpush3.msra.mxu1 %v6024_v42  ;;  %4949 = vmatprep.mubr.msk.f32.mxu1 %vm5686_vm2, %v5684_v4 }
0x10e9   :  { %4943 = vmatprep.subr.mxu1 %v5684_v4 }
0x10ea   :  { %v1524_v56 = vpop.permute.xlu0 %1523  ;;  %4944 = vmatpush3.msra.mxu1 %v6028_v46 }
0x10eb   :  { %v1526_v60 = vmul.f32 %v5252_v62, %v1524_v56  ;;  %4945 = vmatprep.subr.mxu1 %v5684_v4 }
0x10ec   :  { %4946 = vmatpush3.msra.mxu1 %v6034_v48 }
0x10ed   :  { %1552 = vrot.lane.b32.xlu1 %v1526_v60, %s5687_s5  ;;  %4947 = vmatprep.subr.mxu1 %v5684_v4 }
0x10ee   :  { %4948 = vmatpush3.msra.mxu1 %v6038_v50 }
0x10ef   :  { %4952 = vmatprep.subr.mxu1 %v5684_v4 }
0x115f   :  { %v6261_v42 = vpop.permute.xlu1 %1552 }
0x1160   :  { %4917 = vmatmul.mubr.msk.f32.vlgmr.msra.gmra.mxu0 %vm197_vm0, %v6261_v42 }
0x1161   :  { %4931 = vmatpush3.msra.mxu0 %v5981_v30  ;;  %4938 = vmatprep.mubr.msk.f32.mxu0 %vm5686_vm2, %v5684_v4 }
0x1162   :  { %4932 = vmatprep.subr.mxu0 %v5684_v4 }
0x1163   :  { %4933 = vmatpush3.msra.mxu0 %v5986_v31 }
0x1164   :  { %4934 = vmatprep.subr.mxu0 %v5684_v4 }
0x1165   :  { %4935 = vmatpush3.msra.mxu0 %v5995_v32 }
0x1166   :  { %4936 = vmatprep.subr.mxu0 %v5684_v4 }
0x1167   :  { %4937 = vmatpush3.msra.mxu0 %v6004_v33 }
0x11a7   :  { %v1706_v46 = vpop.f32.mrf.mxu1 }
0x11a8   :  { %v1710_v48 = vadd.f32 %v1706_v46, %v5943_v47 }
0x11a9   :  { %v4929_v50 = vpop.f32.mrf.mxu1 }
0x11aa   :  { %5257 = vtanh.f32 %v1710_v48  ;;  %v4541_v57 = vmul.f32 -1.442695, %v1710_v48 }
0x11ac   :  { %5259 = vpow2.f32 %v4541_v57 }
0x11b7   :  { %v5258_v30 = vpop.eup %5257 }
0x11b8   :  { %1744 = vrot.lane.b32.xlu0 %v5258_v30, %s5685_s26 }
0x11b9   :  { %v5260_v59 = vpop.eup %5259 }
0x11ba   :  { %v1738_v31 = vadd.f32 1.0, %v5260_v59 }
0x11bc   :  { %5261 = vrcp.f32 %v1738_v31  ;;  %v2000_v31 = vld [vmem:[%s7391_s7 + $0x78] sm:$0xff] }
0x11bd   :  { %2054 = vmatprep.subr.mxu0 %v2000_v31 }
0x11c9   :  { %v5262_v1 = vpop.eup %5261 }
0x11ca   :  { %v1742_v9 = vmul.f32 %v5262_v1, %v6235_v25 }
0x1220   :  { %v1631_v61 = vpop.f32.mrf.mxu0 }
0x1221   :  { %v1635_v32 = vadd.f32 %v1631_v61, %v5962_v2  ;;  %v1999_v61 = vld [vmem:[%s7391_s7 + $0x70] sm:$0xff] }
0x1222   :  { %v4918_v63 = vpop.f32.mrf.mxu0 }
0x1223   :  { %5263 = vtanh.f32 %v1635_v32  ;;  %v4540_v49 = vmul.f32 -1.442695, %v1635_v32  ;;  %v1998_v32 = vld [vmem:[%s7391_s7 + $0x68] sm:$0xff]  ;;  %v1995_v63 = vld [vmem:[%s7391_s7 + $0x50] sm:$0xff] }
0x1225   :  { %5265 = vpow2.f32 %v4540_v49  ;;  %v1991_v49 = vld [vmem:[%s7391_s7 + $0x30] sm:$0xff] }
0x122a   :  { %v1745_v33 = vpop.permute.xlu0 %1744 }
0x122b   :  { %v1747_v53 = vmul.f32 %v5262_v1, %v1745_v33 }
0x122d   :  { %1749 = vrot.lane.b32.xlu1 %v1747_v53, %s5685_s26  ;;  %v1992_v53 = vld [vmem:[%s7391_s7 + $0x38] sm:$0xff] }
0x1230   :  { %v5264_v47 = vpop.eup %5263 }
0x1231   :  { %1720 = vrot.lane.b32.xlu1 %v5264_v47, %s5685_s26 }
0x1232   :  { %v5266_v0 = vpop.eup %5265 }
0x1233   :  { %v1714_v6 = vadd.f32 1.0, %v5266_v0  ;;  %v1990_v0 = vld [vmem:[%s7391_s7 + $0x28] sm:$0xff] }
0x1235   :  { %5267 = vrcp.f32 %v1714_v6  ;;  %v1989_v6 = vld [vmem:[%s7391_s7 + $0x20] sm:$0xff] }
0x1242   :  { %v5268_v2 = vpop.eup %5267 }
0x1243   :  { %v1718_v5 = vmul.f32 %v5268_v2, %v6241_v40 }
0x129f   :  { %v1750_v10 = vpop.permute.xlu1 %1749 }
0x12a0   :  { %v1752_v45 = vadd.f32 %v1750_v10, %v1742_v9  ;;  %v1988_v10 = vld [vmem:[%s7391_s7 + $0x18] sm:$0xff] }
0x12a2   :  { %5269 = vtanh.f32 %v1752_v45 }
0x12a3   :  { %v1721_v12 = vpop.permute.xlu1 %1720 }
0x12a4   :  { %v1723_v13 = vmul.f32 %v5268_v2, %v1721_v12  ;;  %v1986_v12 = vld [vmem:[%s7391_s7 + $0x8] sm:$0xff] }
0x12a6   :  { %1725 = vrot.lane.b32.xlu1 %v1723_v13, %s5685_s26  ;;  %v1985_v13 = vld [vmem:[%s7391_s7] sm:$0xff] }
0x12af   :  { %v5270_v14 = vpop.eup %5269 }
0x12b0   :  { %1755 = vrot.lane.b32.xlu0 %v5270_v14, %s5685_s26 }
0x1318   :  { %v1726_v15 = vpop.permute.xlu1 %1725 }
0x1319   :  { %v6283_v16 = vadd.f32 %v1726_v15, %v1718_v5 }
0x131b   :  { %5271 = vtanh.f32 %v6283_v16 }
0x1322   :  { %v1756_v17 = vpop.permute.xlu0 %1755 }
0x1323   :  { %v1758_v20 = vmul.f32 %v5262_v1, %v1756_v17  ;;  %v1993_v1 = vld [vmem:[%s7391_s7 + $0x40] sm:$0xff] }
0x1325   :  { %1844 = vrot.lane.b32.xlu0 %v1758_v20, %s5687_s5 }
0x1328   :  { %v5272_v21 = vpop.eup %5271 }
0x1329   :  { %1731 = vrot.lane.b32.xlu0 %v5272_v21, %s5685_s26  ;;  %v6387_v21 = vld [vmem:[%s7393_s9] ss:$0 sm:$0xff] }
0x1397   :  { %v1845_v19 = vpop.permute.xlu0 %1844 }
0x1398   :  { %4950 = vmatmul.mubr.msk.f32.vlgmr.msra.gmra.mxu1 %vm197_vm0, %v1845_v19 }
0x1399   :  { %4960 = vmatprep.mubr.msk.f32.mxu1 %vm5686_vm2, %v5684_v4 }
0x139b   :  { %v1732_v51 = vpop.permute.xlu0 %1731 }
0x139c   :  { %v1734_v22 = vmul.f32 %v5268_v2, %v1732_v51  ;;  %v1987_v2 = vld [vmem:[%s7391_s7 + $0x10] sm:$0xff] }
0x139e   :  { %1760 = vrot.lane.b32.xlu1 %v1734_v22, %s5687_s5 }
0x1410   :  { %v6292_v23 = vpop.permute.xlu1 %1760 }
0x1411   :  { %4939 = vmatmul.mubr.msk.f32.vlgmr.msra.gmra.mxu0 %vm197_vm0, %v6292_v23 }
0x1412   :  { %2102 = vmatprep.mubr.f32.mxu0 %v5684_v4  ;;  %2055 = vmatpush1.msra.mxu0 %v1999_v61 }
0x1413   :  { %2056 = vmatprep.subr.mxu0 %v1998_v32 }
0x1458   :  { %v1914_v24 = vpop.f32.mrf.mxu1 }
0x1459   :  { %v1918_v26 = vadd.f32 %v1914_v24, %v5939_v43 }
0x145a   :  { %v4951_v27 = vpop.f32.mrf.mxu1 }
0x145b   :  { %5273 = vtanh.f32 %v1918_v26  ;;  %v4545_v62 = vmul.f32 -1.442695, %v1918_v26 }
0x145d   :  { %5275 = vpow2.f32 %v4545_v62 }
0x1468   :  { %v5274_v25 = vpop.eup %5273 }
0x1469   :  { %1952 = vrot.lane.b32.xlu0 %v5274_v25, %s5685_s26 }
0x146a   :  { %v5276_v36 = vpop.eup %5275 }
0x146b   :  { %v1946_v29 = vadd.f32 1.0, %v5276_v36 }
0x146d   :  { %5277 = vrcp.f32 %v1946_v29 }
0x147a   :  { %v6300_v40 = vpop.eup %5277 }
0x147b   :  { %v1950_v46 = vmul.f32 %v6300_v40, %v1752_v45 }
0x14d1   :  { %v1839_v55 = vpop.f32.mrf.mxu0 }
0x14d2   :  { %v1843_v38 = vadd.f32 %v1839_v55, %v5966_v7  ;;  %v2001_v55 = vld [vmem:[#allocation16] sm:$0x3] }
0x14d3   :  { %v4940_v39 = vpop.f32.mrf.mxu0 }
0x14d4   :  { %5279 = vtanh.f32 %v1843_v38  ;;  %v4544_v58 = vmul.f32 -1.442695, %v1843_v38  ;;  %v2006_v38 = vrot.slane %v2001_v55, %v5932_v35  ;;  %v2010_v39 = vrot.slane %v2001_v55, %v5935_v37 }
0x14d6   :  { %5281 = vpow2.f32 %v4544_v58 }
0x14db   :  { %v1953_v44 = vpop.permute.xlu0 %1952 }
0x14dc   :  { %v1955_v43 = vmul.f32 %v6300_v40, %v1953_v44 }
0x14de   :  { %1957 = vrot.lane.b32.xlu1 %v1955_v43, %s5685_s26 }
0x14e1   :  { %v5280_v54 = vpop.eup %5279 }
0x14e2   :  { %1928 = vrot.lane.b32.xlu1 %v5280_v54, %s5685_s26 }
0x14e3   :  { %v5282_v56 = vpop.eup %5281 }
0x14e4   :  { %v1922_v60 = vadd.f32 1.0, %v5282_v56 }
0x14e6   :  { %5283 = vrcp.f32 %v1922_v60 }
0x14f3   :  { %v6306_v50 = vpop.eup %5283 }
0x14f4   :  { %v1926_v33 = vmul.f32 %v6306_v50, %v6283_v16 }
0x1550   :  { %v1958_v7 = vpop.permute.xlu1 %1957 }
0x1551   :  { %v1960_v48 = vadd.f32 %v1958_v7, %v1950_v46 }
0x1553   :  { %5285 = vtanh.f32 %v1960_v48 }
0x1554   :  { %v1929_v30 = vpop.permute.xlu1 %1928 }
0x1555   :  { %v1931_v57 = vmul.f32 %v6306_v50, %v1929_v30 }
0x1557   :  { %1933 = vrot.lane.b32.xlu1 %v1931_v57, %s5685_s26 }
0x155b   :  { %1765 = vrot.lane.b32.xlu1 %v1758_v20, %s5688_s20 }
0x155f   :  { %1349 = vrot.lane.b32.xlu1 %v6198_v3, %s5688_s20  ;;  %v1996_v3 = vld [vmem:[%s7391_s7 + $0x58] sm:$0xff] }
0x1560   :  { %v5286_v59 = vpop.eup %5285 }
0x1561   :  { %1963 = vrot.lane.b32.xlu0 %v5286_v59, %s5685_s26 }
0x1563   :  { %933 = vrot.lane.b32.xlu1 %v6110_v18, %s5688_s20  ;;  %v1997_v18 = vld [vmem:[%s7391_s7 + $0x60] sm:$0xff] }
0x1564   :  { %2057 = vmatpush1.msra.mxu0 %v1997_v18 }
0x1565   :  { %2058 = vmatprep.subr.mxu0 %v1996_v3 }
0x1566   :  { %2059 = vmatpush1.msra.mxu0 %v1995_v63 }
0x1567   :  { %516 = vrot.lane.b32.xlu1 %v6020_v41, %s5688_s20  ;;  %v1994_v41 = vld [vmem:[%s7391_s7 + $0x48] sm:$0xff]  ;;  %s4601_s7 = sld [smem:[#allocation11 + $0x380]] }
0x1568   :  { %2060 = vmatprep.subr.mxu0 %v1994_v41 }
0x1569   :  { %2061 = vmatpush1.msra.mxu0 %v1993_v1 }
0x156a   :  { %2062 = vmatprep.subr.mxu0 %v1992_v53 }
0x156b   :  { %2063 = vmatpush1.msra.mxu0 %v1991_v49  ;;  %2199 = vrot.lane.b32.xlu1 %v6387_v21, %s5687_s5 }
0x156c   :  { %2064 = vmatprep.subr.mxu0 %v1990_v0 }
0x156d   :  { %2065 = vmatpush1.msra.mxu0 %v1989_v6 }
0x156e   :  { %2066 = vmatprep.subr.mxu0 %v1988_v10 }
0x156f   :  { %2067 = vmatpush1.msra.mxu0 %v1987_v2 }
0x1570   :  { %2068 = vmatprep.subr.mxu0 %v1986_v12 }
0x1571   :  { %2069 = vmatpush1.msra.mxu0 %v1985_v13 }
0x1572   :  { %5007 = vmatprep.subr.mxu0 %v5684_v4 }
0x15c9   :  { %v1934_v47 = vpop.permute.xlu1 %1933 }
0x15ca   :  { %v1936_v9 = vadd.f32 %v1934_v47, %v1926_v33 }
0x15cc   :  { %5287 = vtanh.f32 %v1936_v9 }
0x15cd   :  { %v1766_v45 = vpop.permute.xlu1 %1765 }
0x15ce   :  { %1768 = vst.msk [vmem:[#allocation4 + $0x8] sm:$0xff] %vm519_vm3, %v1766_v45 }
0x15d1   :  { %v1350_v14 = vpop.permute.xlu1 %1349 }
0x15d2   :  { %1352 = vst.msk [vmem:[#allocation4 + $0x18] sm:$0xff] %vm519_vm3, %v1350_v14 }
0x15d3   :  { %v1964_v5 = vpop.permute.xlu0 %1963 }
0x15d4   :  { %v1966_v15 = vmul.f32 %v6300_v40, %v1964_v5 }
0x15d5   :  { %v934_v16 = vpop.permute.xlu1 %933  ;;  %v1978_v22 = vld [vmem:[#allocation4 + $0x8] sm:$0xff] }
0x15d6   :  { %936 = vst.msk [vmem:[#allocation4 + $0x28] sm:$0xff] %vm519_vm3, %v934_v16  ;;  %1973 = vrot.lane.b32.xlu0 %v1966_v15, %s5688_s20 }
0x15d7   :  { %1555 = vst.msk [vmem:[#allocation4 + $0x28] sm:$0xff] %vm197_vm0, %v6261_v42 }
0x15d9   :  { %v5288_v17 = vpop.eup %5287  ;;  %v517_v20 = vpop.permute.xlu1 %516  ;;  %v1980_v27 = vld [vmem:[#allocation4 + $0x18] sm:$0xff] }
0x15da   :  { %520 = vst.msk [vmem:[#allocation4 + $0x38] sm:$0xff] %vm519_vm3, %v517_v20  ;;  %1939 = vrot.lane.b32.xlu0 %v5288_v17, %s5685_s26 }
0x15dd   :  { %v2200_v12 = vpop.permute.xlu1 %2199 }
0x15de   :  { %1557 = vrot.lane.b32.xlu0 %v6244_v52, %s5688_s20 }
0x15e2   :  { %1141 = vrot.lane.b32.xlu0 %v6154_v11, %s5688_s20 }
0x15e6   :  { %725 = vrot.lane.b32.xlu0 %v6069_v28, %s5688_s20 }
0x1648   :  { %v1974_v42 = vpop.permute.xlu0 %1973 }
0x1649   :  { %1976 = vst.msk [vmem:[#allocation4] sm:$0xff] %vm519_vm3, %v1974_v42 }
0x164c   :  { %v1940_v19 = vpop.permute.xlu0 %1939 }
0x164d   :  { %v1942_v52 = vmul.f32 %v6306_v50, %v1940_v19 }
0x164f   :  { %1968 = vrot.lane.b32.xlu0 %v1942_v52, %s5687_s5 }
0x1650   :  { %v1558_v11 = vpop.permute.xlu0 %1557  ;;  %v1977_v51 = vld [vmem:[#allocation4] sm:$0xff] }
0x1651   :  { %1560 = vst.msk [vmem:[#allocation4 + $0x10] sm:$0xff] %vm519_vm3, %v1558_v11  ;;  %4546 = vmatmul.mubr.msk.f32.vlgmr.msra.gmra.mxu0 %vm2013_vm4, %v1977_v51 }
0x1652   :  { %2108 = vmatprep.mubr.f32.mxu0 %v5684_v4 }
0x1654   :  { %v1142_v28 = vpop.permute.xlu0 %1141 }
0x1655   :  { %1144 = vst.msk [vmem:[#allocation4 + $0x20] sm:$0xff] %vm519_vm3, %v1142_v28  ;;  %4547 = vmatmul.mubr.msk.f32.gmra.mxu0 %vm2013_vm4, %v1978_v22 }
0x1656   :  { %1347 = vst.msk [vmem:[#allocation4 + $0x20] sm:$0xff] %vm197_vm0, %v6215_v8  ;;  %2114 = vmatprep.mubr.f32.mxu0 %v5684_v4  ;;  %v1982_v8 = vld [vmem:[#allocation4 + $0x28] sm:$0xff] }
0x1658   :  { %v726_v24 = vpop.permute.xlu0 %725  ;;  %v1979_v26 = vld [vmem:[#allocation4 + $0x10] sm:$0xff] }
0x1659   :  { %728 = vst.msk [vmem:[#allocation4 + $0x30] sm:$0xff] %vm519_vm3, %v726_v24  ;;  %4548 = vmatmul.mubr.msk.f32.gmra.mxu0 %vm2013_vm4, %v1979_v26 }
0x165a   :  { %1763 = vst.msk [vmem:[#allocation4 + $0x30] sm:$0xff] %vm197_vm0, %v6292_v23  ;;  %2120 = vmatprep.mubr.f32.mxu0 %v5684_v4  ;;  %v6415_v23 = vld [vmem:[#allocation18] ss:$0 sm:$0xff] }
0x165b   :  { %2217 = vrot.lane.b32.xlu1 %v6415_v23, %s5688_s20 }
0x165d   :  { %4549 = vmatmul.mubr.msk.f32.gmra.mxu0 %vm2013_vm4, %v1980_v27  ;;  %v1981_v25 = vld [vmem:[#allocation4 + $0x20] sm:$0xff] }
0x165e   :  { %2126 = vmatprep.mubr.f32.mxu0 %v5684_v4  ;;  %v6452_v27 = vld [vmem:[#allocation19 + $0x18] sm:$0xff] }
0x165f   :  { %2234 = vrot.lane.b32.xlu1 %v6415_v23, %s5685_s26  ;;  %4953 = vmatpush3.msra.mxu1 %v6452_v27 }
0x1660   :  { %4954 = vmatprep.subr.mxu1 %v5684_v4 }
0x1661   :  { %4550 = vmatmul.mubr.msk.f32.gmra.mxu0 %vm2013_vm4, %v1981_v25  ;;  %v1983_v62 = vld [vmem:[#allocation4 + $0x30] sm:$0xff] }
0x1662   :  { %2132 = vmatprep.mubr.f32.mxu0 %v5684_v4  ;;  %v6454_v25 = vld [vmem:[#allocation19 + $0x10] sm:$0xff] }
0x1663   :  { %4955 = vmatpush3.msra.mxu1 %v6454_v25 }
0x1664   :  { %4956 = vmatprep.subr.mxu1 %v5684_v4 }
0x1665   :  { %4551 = vmatmul.mubr.msk.f32.gmra.mxu0 %vm2013_vm4, %v1982_v8  ;;  %v6458_v8 = vld [vmem:[#allocation19 + $0x8] sm:$0xff] }
0x1666   :  { %2138 = vmatprep.mubr.f32.mxu0 %v5684_v4  ;;  %4957 = vmatpush3.msra.mxu1 %v6458_v8 }
0x1667   :  { %4958 = vmatprep.subr.mxu1 %v5684_v4 }
0x1669   :  { %4552 = vmatmul.mubr.msk.f32.gmra.mxu0 %vm2013_vm4, %v1983_v62 }
0x166a   :  { %2144 = vmatprep.mubr.f32.mxu0 %v5684_v4 }
0x16c1   :  { %v1969_v36 = vpop.permute.xlu0 %1968 }
0x16c2   :  { %1971 = vst.msk [vmem:[#allocation4 + $0x38] sm:$0xff] %vm197_vm0, %v1969_v36  ;;  %v6462_v36 = vld [vmem:[#allocation19] sm:$0xff] }
0x16c3   :  { %4959 = vmatpush3.msra.mxu1 %v6462_v36 }
0x16c4   :  { %4963 = vmatprep.subr.mxu1 %v5684_v4 }
0x16c9   :  { %v1984_v29 = vld [vmem:[#allocation4 + $0x38] sm:$0xff] }
0x16ca   :  { %4553 = vmatmul.mubr.msk.f32.gmra.mxu0 %vm2013_vm4, %v1984_v29 }
0x16cb   :  { %5015 = vmatprep.mubr.msk.f32.mxu0 %vm5686_vm2, %v5684_v4 }
0x16cd   :  { %v2218_v15 = vpop.permute.xlu1 %2217 }
0x16d1   :  { %v2235_v22 = vpop.permute.xlu1 %2234 }
0x1711   :  { %v2104_v40 = vpop.f32.mrf.mxu0 }
0x1712   :  { %v2105_v44 = vadd.f32 %v2104_v40, %v2006_v38  ;;  %v6472_v40 = vld [vmem:[#allocation21 + $0x10] sm:$0xff] }
0x1713   :  { %v2106_v43 = vpop.f32.mrf.mxu0 }
0x1714   :  { %2151 = vst [vmem:[#allocation5] sm:$0xff] %v2105_v44  ;;  %v2192_v54 = vadd.f32 %v6387_v21, %v2105_v44  ;;  %v2107_v58 = vadd.f32 %v2106_v43, %v2010_v39  ;;  %v6480_v43 = vld [vmem:[#allocation21] sm:$0xff] }
0x1715   :  { %v2110_v56 = vpop.f32.mrf.mxu0 }
0x1716   :  { %v4556_v60 = vmul.f32 -1.442695, %v2192_v54  ;;  %2152 = vst.msk [vmem:[#allocation5 + $0x8] sm:$0xff] %vm2013_vm4, %v2107_v58  ;;  %v6429_v46 = vadd.f32 %v2110_v56, %v2006_v38 }
0x1717   :  { %v2112_v7 = vpop.f32.mrf.mxu0 }
0x1718   :  { %5289 = vpow2.f32 %v4556_v60  ;;  %2153 = vst [vmem:[#allocation5 + $0x10] sm:$0xff] %v6429_v46  ;;  %v2113_v48 = vadd.f32 %v2112_v7, %v2010_v39 }
0x1719   :  { %v2116_v50 = vpop.f32.mrf.mxu0 }
0x171a   :  { %2154 = vst.msk [vmem:[#allocation5 + $0x18] sm:$0xff] %vm2013_vm4, %v2113_v48  ;;  %v6433_v30 = vadd.f32 %v2116_v50, %v2006_v38 }
0x171b   :  { %v2118_v57 = vpop.f32.mrf.mxu0 }
0x171c   :  { %v2119_v59 = vadd.f32 %v2118_v57, %v2010_v39 }
0x171d   :  { %v2122_v31 = vpop.f32.mrf.mxu0 }
0x171e   :  { %2156 = vst.msk [vmem:[#allocation5 + $0x28] sm:$0xff] %vm2013_vm4, %v2119_v59  ;;  %v6436_v61 = vadd.f32 %v2122_v31, %v2006_v38 }
0x171f   :  { %v2124_v32 = vpop.f32.mrf.mxu0 }
0x1720   :  { %v2125_v18 = vadd.f32 %v2124_v32, %v2010_v39 }
0x1721   :  { %v2128_v3 = vpop.f32.mrf.mxu0 }
0x1722   :  { %2158 = vst.msk [vmem:[#allocation5 + $0x38] sm:$0xff] %vm2013_vm4, %v2125_v18  ;;  %v6439_v63 = vadd.f32 %v2128_v3, %v2006_v38 }
0x1723   :  { %v2130_v41 = vpop.f32.mrf.mxu0 }
0x1724   :  { %v2131_v1 = vadd.f32 %v2130_v41, %v2010_v39 }
0x1725   :  { %v5290_v33 = vpop.eup %5289  ;;  %v2134_v53 = vpop.f32.mrf.mxu0 }
0x1726   :  { %2160 = vst.msk [vmem:[#allocation5 + $0x48] sm:$0xff] %vm2013_vm4, %v2131_v1  ;;  %v6442_v47 = vadd.f32 %v2134_v53, %v2006_v38  ;;  %v2196_v49 = vadd.f32 1.0, %v5290_v33 }
0x1727   :  { %v2136_v0 = vpop.f32.mrf.mxu0 }
0x1728   :  { %v2137_v6 = vadd.f32 %v2136_v0, %v2010_v39  ;;  %5291 = vrcp.f32 %v2196_v49 }
0x1729   :  { %v2140_v9 = vpop.f32.mrf.mxu0 }
0x172a   :  { %2162 = vst.msk [vmem:[#allocation5 + $0x58] sm:$0xff] %vm2013_vm4, %v2137_v6  ;;  %v6445_v10 = vadd.f32 %v2140_v9, %v2006_v38 }
0x172b   :  { %v2142_v45 = vpop.f32.mrf.mxu0 }
0x172c   :  { %2163 = vst [vmem:[#allocation5 + $0x60] sm:$0xff] %v6445_v10  ;;  %v2143_v2 = vadd.f32 %v2142_v45, %v2010_v39 }
0x172e   :  { %2164 = vst.msk [vmem:[#allocation5 + $0x68] sm:$0xff] %vm2013_vm4, %v2143_v2 }
0x1735   :  { %v5292_v13 = vpop.eup %5291 }
0x1736   :  { %v2202_v14 = vmul.f32 %v5292_v13, %v2200_v12  ;;  %v2209_v54 = vsub.f32 1.0, %v5292_v13  ;;  %v2215_v56 = vmul.f32 0.0, %v5292_v13 }
0x1738   :  { %2204 = vrot.lane.b32.xlu0 %v2202_v14, %s5687_s5 }
0x178a   :  { %v2146_v5 = vpop.f32.mrf.mxu0 }
0x178b   :  { %v2147_v16 = vadd.f32 %v2146_v5, %v2006_v38 }
0x178c   :  { %v2148_v17 = vpop.f32.mrf.mxu0 }
0x178d   :  { %2165 = vst [vmem:[#allocation5 + $0x70] sm:$0xff] %v2147_v16  ;;  %v2149_v20 = vadd.f32 %v2148_v17, %v2010_v39  ;;  %v2220_v42 = vadd.f32 %v2218_v15, %v2147_v16  ;;  %v6469_v39 = vld [vmem:[#allocation21 + $0x18] sm:$0xff] }
0x178e   :  { %5008 = vmatpush3.msra.mxu0 %v6469_v39 }
0x178f   :  { %2166 = vst.msk [vmem:[#allocation5 + $0x78] sm:$0xff] %vm2013_vm4, %v2149_v20  ;;  %v4557_v19 = vmul.f32 -1.442695, %v2220_v42  ;;  %5009 = vmatprep.subr.mxu0 %v5684_v4 }
0x1790   :  { %5010 = vmatpush3.msra.mxu0 %v6472_v40 }
0x1791   :  { %5293 = vpow2.f32 %v4557_v19  ;;  %5011 = vmatprep.subr.mxu0 %v5684_v4 }
0x1796   :  { %v2191_v29 = vld [vmem:[#allocation5 + $0x78] sm:$0xff] }
0x1797   :  { %v2221_v50 = vadd.f32 %v2218_v15, %v2191_v29 }
0x1799   :  { %v4558_v57 = vmul.f32 -1.442695, %v2221_v50 }
0x179e   :  { %v5294_v52 = vpop.eup %5293 }
0x179f   :  { %v2228_v11 = vadd.f32 1.0, %v5294_v52 }
0x17a1   :  { %5295 = vrcp.f32 %v2228_v11 }
0x17aa   :  { %v2205_v51 = vpop.permute.xlu0 %2204 }
0x17ab   :  { %v2207_v28 = vadd.f32 %v2205_v51, %v2105_v44  ;;  %v6476_v44 = vld [vmem:[#allocation21 + $0x8] sm:$0xff] }
0x17ac   :  { %5012 = vmatpush3.msra.mxu0 %v6476_v44 }
0x17ad   :  { %5297 = vtanh.f32 %v2207_v28  ;;  %5013 = vmatprep.subr.mxu0 %v5684_v4 }
0x17ae   :  { %v5296_v24 = vpop.eup %5295  ;;  %5014 = vmatpush3.msra.mxu0 %v6480_v43 }
0x17af   :  { %v2237_v26 = vmul.f32 %v5296_v24, %v2235_v22  ;;  %5029 = vmatprep.subr.mxu0 %v5684_v4 }
0x17b1   :  { %2239 = vrot.lane.b32.xlu1 %v2237_v26, %s5687_s5 }
0x17ba   :  { %v5298_v62 = vpop.eup %5297 }
0x17bb   :  { %2211 = vrot.lane.b32.xlu0 %v5298_v62, %s5688_s20 }
0x1823   :  { %v2240_v55 = vpop.permute.xlu1 %2239 }
0x1824   :  { %v2242_v38 = vadd.f32 %v2240_v55, %v2191_v29  ;;  %v2264_v29 = vld [vmem:[#allocation5 + $0x68] sm:$0xff] }
0x1826   :  { %5299 = vtanh.f32 %v2242_v38 }
0x1827   :  { %5301 = vpow2.f32 %v4558_v57 }
0x182d   :  { %v2212_v58 = vpop.permute.xlu0 %2211 }
0x182e   :  { %v2214_v60 = vmul.f32 %v2212_v58, %v2209_v54 }
0x1830   :  { %v6485_v7 = vadd.f32 %v2215_v56, %v2214_v60 }
0x1832   :  { %2253 = vrot.lane.b32.xlu0 %v6485_v7, %s5688_s20 }
0x1833   :  { %v5300_v48 = vpop.eup %5299 }
0x1834   :  { %v5302_v59 = vpop.eup %5301 }
0x1835   :  { %v2229_v31 = vadd.f32 1.0, %v5302_v59 }
0x1836   :  { %2246 = vrot.lane.b32.xlu0 %v5300_v48, %s5688_s20 }
0x1837   :  { %5303 = vrcp.f32 %v2229_v31 }
0x1844   :  { %v5304_v32 = vpop.eup %5303 }
0x1845   :  { %v2244_v3 = vsub.f32 1.0, %v5304_v32  ;;  %v2250_v1 = vmul.f32 0.0, %v5304_v32 }
0x18a4   :  { %v2254_v18 = vpop.permute.xlu0 %2253 }
0x18a5   :  { %2256 = vst.msk [vmem:[#allocation6] sm:$0xff] %vm197_vm0, %v2254_v18  ;;  %4961 = vmatmul.mubr.msk.f32.vlgmr.msra.gmra.mxu1 %vm197_vm0, %v2254_v18 }
0x18a6   :  { %4964 = vmatpush3.msra.mxu1 %v6469_v39  ;;  %4971 = vmatprep.mubr.msk.f32.mxu1 %vm5686_vm2, %v5684_v4 }
0x18a7   :  { %4965 = vmatprep.subr.mxu1 %v5684_v4 }
0x18a8   :  { %4966 = vmatpush3.msra.mxu1 %v6472_v40  ;;  %v2247_v41 = vpop.permute.xlu0 %2246 }
0x18a9   :  { %v2249_v33 = vmul.f32 %v2247_v41, %v2244_v3  ;;  %4967 = vmatprep.subr.mxu1 %v5684_v4 }
0x18aa   :  { %4968 = vmatpush3.msra.mxu1 %v6476_v44 }
0x18ab   :  { %v6499_v53 = vadd.f32 %v2250_v1, %v2249_v33  ;;  %4969 = vmatprep.subr.mxu1 %v5684_v4 }
0x18ac   :  { %4970 = vmatpush3.msra.mxu1 %v6480_v43 }
0x18ad   :  { %4972 = vmatmul.mubr.msk.f32.vlgmr.msra.gmra.mxu1 %vm197_vm0, %v6499_v53  ;;  %4974 = vmatprep.subr.mxu1 %v5684_v4 }
0x18ae   :  { %4975 = vmatpush3.msra.mxu1 %v6452_v27  ;;  %4982 = vmatprep.mubr.msk.f32.mxu1 %vm5686_vm2, %v5684_v4 }
0x18af   :  { %4976 = vmatprep.subr.mxu1 %v5684_v4 }
0x18b0   :  { %4977 = vmatpush3.msra.mxu1 %v6454_v25 }
0x18b1   :  { %4978 = vmatprep.subr.mxu1 %v5684_v4 }
0x18b2   :  { %4979 = vmatpush3.msra.mxu1 %v6458_v8 }
0x18b3   :  { %4980 = vmatprep.subr.mxu1 %v5684_v4 }
0x18b4   :  { %4981 = vmatpush3.msra.mxu1 %v6462_v36 }
0x18b5   :  { %4985 = vmatprep.subr.mxu1 %v5684_v4 }
0x1965   :  { %v2333_v49 = vpop.f32.mrf.mxu1 }
0x1966   :  { %v2334_v0 = vadd.f32 %v6387_v21, %v2333_v49 }
0x1967   :  { %v4962_v6 = vpop.f32.mrf.mxu1 }
0x1968   :  { %2417 = vrot.lane.b32.xlu1 %v2334_v0, %s5687_s5  ;;  %v2409_v12 = vadd.f32 %v2334_v0, %v6429_v46 }
0x196a   :  { %v4561_v13 = vmul.f32 -1.442695, %v2409_v12 }
0x196c   :  { %5305 = vpow2.f32 %v4561_v13 }
0x196d   :  { %v2405_v9 = vpop.f32.mrf.mxu1 }
0x196e   :  { %v2406_v45 = vadd.f32 %v6415_v23, %v2405_v9 }
0x196f   :  { %v4973_v2 = vpop.f32.mrf.mxu1 }
0x1970   :  { %2436 = vrot.lane.b32.xlu1 %v2406_v45, %s5688_s20 }
0x1979   :  { %v5306_v14 = vpop.eup %5305 }
0x197a   :  { %v2413_v5 = vadd.f32 1.0, %v5306_v14 }
0x197c   :  { %5307 = vrcp.f32 %v2413_v5 }
0x1989   :  { %v5308_v15 = vpop.eup %5307 }
0x198a   :  { %v2427_v38 = vsub.f32 1.0, %v5308_v15  ;;  %v2433_v58 = vmul.f32 %v5308_v15, %v6485_v7 }
0x19da   :  { %v2418_v16 = vpop.permute.xlu1 %2417 }
0x19db   :  { %v2420_v17 = vmul.f32 %v5308_v15, %v2418_v16 }
0x19dd   :  { %2422 = vrot.lane.b32.xlu0 %v2420_v17, %s5687_s5 }
0x19e1   :  { %2453 = vrot.lane.b32.xlu0 %v2406_v45, %s5685_s26 }
0x19e2   :  { %v2437_v20 = vpop.permute.xlu1 %2436 }
0x19e3   :  { %v2439_v42 = vadd.f32 %v2437_v20, %v6445_v10  ;;  %v2440_v48 = vadd.f32 %v2437_v20, %v2264_v29 }
0x19e5   :  { %v4562_v19 = vmul.f32 -1.442695, %v2439_v42  ;;  %v4563_v50 = vmul.f32 -1.442695, %v2440_v48 }
0x19e7   :  { %5309 = vpow2.f32 %v4562_v19 }
0x19f4   :  { %v5310_v52 = vpop.eup %5309 }
0x19f5   :  { %v2447_v11 = vadd.f32 1.0, %v5310_v52 }
0x19f7   :  { %5311 = vrcp.f32 %v2447_v11 }
0x1a04   :  { %v5312_v22 = vpop.eup %5311 }
0x1a4f   :  { %v2423_v51 = vpop.permute.xlu0 %2422 }
0x1a50   :  { %v2425_v28 = vadd.f32 %v2423_v51, %v6429_v46 }
0x1a52   :  { %5313 = vtanh.f32 %v2425_v28 }
0x1a53   :  { %v2454_v24 = vpop.permute.xlu0 %2453 }
0x1a54   :  { %v2456_v26 = vmul.f32 %v5312_v22, %v2454_v24 }
0x1a56   :  { %2458 = vrot.lane.b32.xlu0 %v2456_v26, %s5687_s5 }
0x1a5f   :  { %v5314_v62 = vpop.eup %5313 }
0x1a60   :  { %2429 = vrot.lane.b32.xlu1 %v5314_v62, %s5688_s20  ;;  %v2483_v62 = vld [vmem:[#allocation5 + $0x58] sm:$0xff] }
0x1ac8   :  { %v2459_v55 = vpop.permute.xlu0 %2458 }
0x1ac9   :  { %v2461_v10 = vadd.f32 %v2459_v55, %v2264_v29 }
0x1acb   :  { %5315 = vtanh.f32 %v2461_v10 }
0x1acc   :  { %5317 = vpow2.f32 %v4563_v50 }
0x1ad2   :  { %v2430_v54 = vpop.permute.xlu1 %2429 }
0x1ad3   :  { %v2432_v56 = vmul.f32 %v2430_v54, %v2427_v38 }
0x1ad5   :  { %v6528_v60 = vadd.f32 %v2433_v58, %v2432_v56 }
0x1ad7   :  { %2472 = vrot.lane.b32.xlu1 %v6528_v60, %s5688_s20 }
0x1ad8   :  { %v5316_v46 = vpop.eup %5315 }
0x1ad9   :  { %2465 = vrot.lane.b32.xlu0 %v5316_v46, %s5688_s20  ;;  %v5318_v57 = vpop.eup %5317 }
0x1ada   :  { %v2448_v59 = vadd.f32 1.0, %v5318_v57 }
0x1adc   :  { %5319 = vrcp.f32 %v2448_v59 }
0x1ae9   :  { %v5320_v31 = vpop.eup %5319 }
0x1aea   :  { %v2463_v7 = vsub.f32 1.0, %v5320_v31  ;;  %v2469_v3 = vmul.f32 %v5320_v31, %v6499_v53 }
0x1b49   :  { %v2473_v32 = vpop.permute.xlu1 %2472 }
0x1b4a   :  { %2475 = vst.msk [vmem:[#allocation6 + $0x8] sm:$0xff] %vm197_vm0, %v2473_v32  ;;  %4983 = vmatmul.mubr.msk.f32.vlgmr.msra.gmra.mxu1 %vm197_vm0, %v2473_v32 }
0x1b4b   :  { %4986 = vmatpush3.msra.mxu1 %v6469_v39  ;;  %v2466_v18 = vpop.permute.xlu0 %2465  ;;  %4993 = vmatprep.mubr.msk.f32.mxu1 %vm5686_vm2, %v5684_v4 }
0x1b4c   :  { %4987 = vmatprep.subr.mxu1 %v5684_v4  ;;  %v2468_v41 = vmul.f32 %v2466_v18, %v2463_v7 }
0x1b4d   :  { %4988 = vmatpush3.msra.mxu1 %v6472_v40 }
0x1b4e   :  { %v6541_v1 = vadd.f32 %v2469_v3, %v2468_v41  ;;  %4989 = vmatprep.subr.mxu1 %v5684_v4 }
0x1b4f   :  { %4990 = vmatpush3.msra.mxu1 %v6476_v44 }
0x1b50   :  { %4991 = vmatprep.subr.mxu1 %v5684_v4 }
0x1b51   :  { %4992 = vmatpush3.msra.mxu1 %v6480_v43 }
0x1b52   :  { %4994 = vmatmul.mubr.msk.f32.vlgmr.msra.gmra.mxu1 %vm197_vm0, %v6541_v1  ;;  %4996 = vmatprep.subr.mxu1 %v5684_v4 }
0x1b53   :  { %4997 = vmatpush3.msra.mxu1 %v6452_v27  ;;  %5004 = vmatprep.mubr.msk.f32.mxu1 %vm5686_vm2, %v5684_v4 }
0x1b54   :  { %4998 = vmatprep.subr.mxu1 %v5684_v4 }
0x1b55   :  { %4999 = vmatpush3.msra.mxu1 %v6454_v25 }
0x1b56   :  { %5000 = vmatprep.subr.mxu1 %v5684_v4 }
0x1b57   :  { %5001 = vmatpush3.msra.mxu1 %v6458_v8 }
0x1b58   :  { %5002 = vmatprep.subr.mxu1 %v5684_v4 }
0x1b59   :  { %5003 = vmatpush3.msra.mxu1 %v6462_v36 }
0x1b5a   :  { %5018 = vmatprep.subr.mxu1 %v5684_v4 }
0x1c0a   :  { %v2552_v33 = vpop.f32.mrf.mxu1 }
0x1c0b   :  { %v2553_v49 = vadd.f32 %v6387_v21, %v2552_v33 }
0x1c0c   :  { %v4984_v0 = vpop.f32.mrf.mxu1 }
0x1c0d   :  { %2636 = vrot.lane.b32.xlu1 %v2553_v49, %s5687_s5  ;;  %v2628_v2 = vadd.f32 %v2553_v49, %v6433_v30 }
0x1c0f   :  { %v4566_v12 = vmul.f32 -1.442695, %v2628_v2 }
0x1c11   :  { %5321 = vpow2.f32 %v4566_v12 }
0x1c12   :  { %v2624_v6 = vpop.f32.mrf.mxu1 }
0x1c13   :  { %v2625_v9 = vadd.f32 %v6415_v23, %v2624_v6 }
0x1c14   :  { %v4995_v45 = vpop.f32.mrf.mxu1 }
0x1c15   :  { %2655 = vrot.lane.b32.xlu1 %v2625_v9, %s5688_s20 }
0x1c1e   :  { %v5322_v13 = vpop.eup %5321 }
0x1c1f   :  { %v2632_v14 = vadd.f32 1.0, %v5322_v13 }
0x1c21   :  { %5323 = vrcp.f32 %v2632_v14 }
0x1c2e   :  { %v5324_v5 = vpop.eup %5323 }
0x1c2f   :  { %v2646_v10 = vsub.f32 1.0, %v5324_v5  ;;  %v2652_v54 = vmul.f32 %v5324_v5, %v6528_v60 }
0x1c7f   :  { %v2637_v15 = vpop.permute.xlu1 %2636 }
0x1c80   :  { %v2639_v16 = vmul.f32 %v5324_v5, %v2637_v15 }
0x1c82   :  { %2641 = vrot.lane.b32.xlu0 %v2639_v16, %s5687_s5 }
0x1c86   :  { %2672 = vrot.lane.b32.xlu0 %v2625_v9, %s5685_s26 }
0x1c87   :  { %v2656_v17 = vpop.permute.xlu1 %2655 }
0x1c88   :  { %v2658_v20 = vadd.f32 %v2656_v17, %v6442_v47  ;;  %v2659_v48 = vadd.f32 %v2656_v17, %v2483_v62 }
0x1c8a   :  { %v4567_v42 = vmul.f32 -1.442695, %v2658_v20  ;;  %v4568_v50 = vmul.f32 -1.442695, %v2659_v48 }
0x1c8c   :  { %5325 = vpow2.f32 %v4567_v42 }
0x1c99   :  { %v5326_v19 = vpop.eup %5325 }
0x1c9a   :  { %v2666_v52 = vadd.f32 1.0, %v5326_v19 }
0x1c9c   :  { %5327 = vrcp.f32 %v2666_v52 }
0x1ca9   :  { %v5328_v28 = vpop.eup %5327 }
0x1cf4   :  { %v2642_v11 = vpop.permute.xlu0 %2641 }
0x1cf5   :  { %v2644_v51 = vadd.f32 %v2642_v11, %v6433_v30 }
0x1cf7   :  { %5329 = vtanh.f32 %v2644_v51 }
0x1cf8   :  { %v2673_v22 = vpop.permute.xlu0 %2672 }
0x1cf9   :  { %v2675_v24 = vmul.f32 %v5328_v28, %v2673_v22 }
0x1cfb   :  { %2677 = vrot.lane.b32.xlu0 %v2675_v24, %s5687_s5 }
0x1d04   :  { %v5330_v26 = vpop.eup %5329 }
0x1d05   :  { %2648 = vrot.lane.b32.xlu1 %v5330_v26, %s5688_s20 }
0x1d6d   :  { %v2678_v29 = vpop.permute.xlu0 %2677 }
0x1d6e   :  { %v2680_v55 = vadd.f32 %v2678_v29, %v2483_v62  ;;  %v2702_v62 = vld [vmem:[#allocation5 + $0x48] sm:$0xff] }
0x1d70   :  { %5331 = vtanh.f32 %v2680_v55 }
0x1d71   :  { %5333 = vpow2.f32 %v4568_v50 }
0x1d77   :  { %v2649_v38 = vpop.permute.xlu1 %2648 }
0x1d78   :  { %v2651_v58 = vmul.f32 %v2649_v38, %v2646_v10 }
0x1d7a   :  { %v6572_v56 = vadd.f32 %v2652_v54, %v2651_v58 }
0x1d7c   :  { %2691 = vrot.lane.b32.xlu1 %v6572_v56, %s5688_s20 }
0x1d7d   :  { %v5332_v46 = vpop.eup %5331 }
0x1d7e   :  { %2684 = vrot.lane.b32.xlu0 %v5332_v46, %s5688_s20  ;;  %v5334_v57 = vpop.eup %5333 }
0x1d7f   :  { %v2667_v59 = vadd.f32 1.0, %v5334_v57 }
0x1d81   :  { %5335 = vrcp.f32 %v2667_v59 }
0x1d8e   :  { %v5336_v31 = vpop.eup %5335 }
0x1d8f   :  { %v2682_v60 = vsub.f32 1.0, %v5336_v31  ;;  %v2688_v18 = vmul.f32 %v5336_v31, %v6541_v1 }
0x1dee   :  { %v2692_v32 = vpop.permute.xlu1 %2691 }
0x1def   :  { %2694 = vst.msk [vmem:[#allocation6 + $0x10] sm:$0xff] %vm197_vm0, %v2692_v32  ;;  %5005 = vmatmul.mubr.msk.f32.vlgmr.msra.gmra.mxu1 %vm197_vm0, %v2692_v32 }
0x1df0   :  { %v2685_v7 = vpop.permute.xlu0 %2684  ;;  %5019 = vmatpush3.msra.mxu1 %v6452_v27  ;;  %5026 = vmatprep.mubr.msk.f32.mxu1 %vm5686_vm2, %v5684_v4 }
0x1df1   :  { %v2687_v3 = vmul.f32 %v2685_v7, %v2682_v60  ;;  %5020 = vmatprep.subr.mxu1 %v5684_v4 }
0x1df2   :  { %5021 = vmatpush3.msra.mxu1 %v6454_v25 }
0x1df3   :  { %v6585_v41 = vadd.f32 %v2688_v18, %v2687_v3  ;;  %5022 = vmatprep.subr.mxu1 %v5684_v4 }
0x1df4   :  { %5023 = vmatpush3.msra.mxu1 %v6458_v8 }
0x1df5   :  { %5016 = vmatmul.mubr.msk.f32.vlgmr.msra.gmra.mxu0 %vm197_vm0, %v6585_v41  ;;  %5024 = vmatprep.subr.mxu1 %v5684_v4 }
0x1df6   :  { %5030 = vmatpush3.msra.mxu0 %v6469_v39  ;;  %5037 = vmatprep.mubr.msk.f32.mxu0 %vm5686_vm2, %v5684_v4 }
0x1df7   :  { %5031 = vmatprep.subr.mxu0 %v5684_v4  ;;  %5025 = vmatpush3.msra.mxu1 %v6462_v36 }
0x1df8   :  { %5032 = vmatpush3.msra.mxu0 %v6472_v40  ;;  %5040 = vmatprep.subr.mxu1 %v5684_v4 }
0x1df9   :  { %5033 = vmatprep.subr.mxu0 %v5684_v4 }
0x1dfa   :  { %5034 = vmatpush3.msra.mxu0 %v6476_v44 }
0x1dfb   :  { %5035 = vmatprep.subr.mxu0 %v5684_v4 }
0x1dfc   :  { %5036 = vmatpush3.msra.mxu0 %v6480_v43 }
0x1dfd   :  { %5051 = vmatprep.subr.mxu0 %v5684_v4 }
0x1eaf   :  { %v2771_v33 = vpop.f32.mrf.mxu1 }
0x1eb0   :  { %v2772_v49 = vadd.f32 %v6387_v21, %v2771_v33 }
0x1eb1   :  { %v5006_v0 = vpop.f32.mrf.mxu1 }
0x1eb2   :  { %2855 = vrot.lane.b32.xlu1 %v2772_v49, %s5687_s5  ;;  %v2847_v2 = vadd.f32 %v2772_v49, %v6436_v61 }
0x1eb4   :  { %v4571_v12 = vmul.f32 -1.442695, %v2847_v2 }
0x1eb5   :  { %v2843_v6 = vpop.f32.mrf.mxu0 }
0x1eb6   :  { %v2844_v9 = vadd.f32 %v6415_v23, %v2843_v6  ;;  %5337 = vpow2.f32 %v4571_v12 }
0x1eb7   :  { %v5017_v45 = vpop.f32.mrf.mxu0 }
0x1eb8   :  { %2874 = vrot.lane.b32.xlu0 %v2844_v9, %s5688_s20 }
0x1ebc   :  { %2891 = vrot.lane.b32.xlu0 %v2844_v9, %s5685_s26 }
0x1ec3   :  { %v5338_v13 = vpop.eup %5337 }
0x1ec4   :  { %v2851_v14 = vadd.f32 1.0, %v5338_v13 }
0x1ec6   :  { %5339 = vrcp.f32 %v2851_v14 }
0x1ed3   :  { %v5340_v5 = vpop.eup %5339 }
0x1ed4   :  { %v2865_v58 = vsub.f32 1.0, %v5340_v5  ;;  %v2871_v48 = vmul.f32 %v5340_v5, %v6572_v56 }
0x1f24   :  { %v2856_v15 = vpop.permute.xlu1 %2855 }
0x1f25   :  { %v2858_v16 = vmul.f32 %v5340_v5, %v2856_v15 }
0x1f27   :  { %2860 = vrot.lane.b32.xlu1 %v2858_v16, %s5687_s5 }
0x1f2a   :  { %v2875_v17 = vpop.permute.xlu0 %2874 }
0x1f2b   :  { %v2877_v20 = vadd.f32 %v2875_v17, %v6439_v63  ;;  %v2878_v38 = vadd.f32 %v2875_v17, %v2702_v62 }
0x1f2d   :  { %v4572_v42 = vmul.f32 -1.442695, %v2877_v20  ;;  %v4573_v54 = vmul.f32 -1.442695, %v2878_v38 }
0x1f2e   :  { %v2892_v51 = vpop.permute.xlu0 %2891 }
0x1f2f   :  { %5341 = vpow2.f32 %v4572_v42 }
0x1f3c   :  { %v5342_v19 = vpop.eup %5341 }
0x1f3d   :  { %v2885_v52 = vadd.f32 1.0, %v5342_v19 }
0x1f3f   :  { %5343 = vrcp.f32 %v2885_v52 }
0x1f4c   :  { %v5344_v11 = vpop.eup %5343 }
0x1f4d   :  { %v2894_v28 = vmul.f32 %v5344_v11, %v2892_v51 }
0x1f4f   :  { %2896 = vrot.lane.b32.xlu0 %v2894_v28, %s5687_s5 }
0x1f99   :  { %v2861_v22 = vpop.permute.xlu1 %2860 }
0x1f9a   :  { %v2863_v24 = vadd.f32 %v2861_v22, %v6436_v61 }
0x1f9c   :  { %5345 = vtanh.f32 %v2863_v24  ;;  %v2921_v24 = vld [vmem:[#allocation5 + $0x38] sm:$0xff] }
0x1fa9   :  { %v5346_v26 = vpop.eup %5345 }
0x1faa   :  { %2867 = vrot.lane.b32.xlu1 %v5346_v26, %s5688_s20 }
0x1fc1   :  { %v2897_v29 = vpop.permute.xlu0 %2896 }
0x1fc2   :  { %v2899_v55 = vadd.f32 %v2897_v29, %v2702_v62 }
0x1fc4   :  { %5347 = vtanh.f32 %v2899_v55 }
0x1fc5   :  { %5349 = vpow2.f32 %v4573_v54 }
0x1fd1   :  { %v5348_v10 = vpop.eup %5347 }
0x1fd2   :  { %2903 = vrot.lane.b32.xlu0 %v5348_v10, %s5688_s20  ;;  %v5350_v59 = vpop.eup %5349 }
0x1fd3   :  { %v2886_v31 = vadd.f32 1.0, %v5350_v59 }
0x1fd5   :  { %5351 = vrcp.f32 %v2886_v31 }
0x1fe2   :  { %v5352_v32 = vpop.eup %5351 }
0x1fe3   :  { %v2901_v60 = vsub.f32 1.0, %v5352_v32  ;;  %v2907_v18 = vmul.f32 %v5352_v32, %v6585_v41 }
0x201c   :  { %v2868_v46 = vpop.permute.xlu1 %2867 }
0x201d   :  { %v2870_v50 = vmul.f32 %v2868_v46, %v2865_v58 }
0x201f   :  { %v6617_v57 = vadd.f32 %v2871_v48, %v2870_v50 }
0x2021   :  { %2910 = vrot.lane.b32.xlu1 %v6617_v57, %s5688_s20 }
0x2044   :  { %v2904_v7 = vpop.permute.xlu0 %2903 }
0x2045   :  { %v2906_v3 = vmul.f32 %v2904_v7, %v2901_v60 }
0x2047   :  { %v6622_v33 = vadd.f32 %v2907_v18, %v2906_v3 }
0x2049   :  { %5038 = vmatmul.mubr.msk.f32.vlgmr.msra.gmra.mxu0 %vm197_vm0, %v6622_v33 }
0x204a   :  { %5052 = vmatpush3.msra.mxu0 %v6469_v39  ;;  %5059 = vmatprep.mubr.msk.f32.mxu0 %vm5686_vm2, %v5684_v4 }
0x204b   :  { %5053 = vmatprep.subr.mxu0 %v5684_v4 }
0x204c   :  { %5054 = vmatpush3.msra.mxu0 %v6472_v40 }
0x204d   :  { %5055 = vmatprep.subr.mxu0 %v5684_v4 }
0x204e   :  { %5056 = vmatpush3.msra.mxu0 %v6476_v44 }
0x204f   :  { %5057 = vmatprep.subr.mxu0 %v5684_v4 }
0x2050   :  { %5058 = vmatpush3.msra.mxu0 %v6480_v43 }
0x2051   :  { %5073 = vmatprep.subr.mxu0 %v5684_v4 }
0x2093   :  { %v2911_v56 = vpop.permute.xlu1 %2910 }
0x2094   :  { %2913 = vst.msk [vmem:[#allocation6 + $0x18] sm:$0xff] %vm197_vm0, %v2911_v56  ;;  %5027 = vmatmul.mubr.msk.f32.vlgmr.msra.gmra.mxu1 %vm197_vm0, %v2911_v56 }
0x2095   :  { %5041 = vmatpush3.msra.mxu1 %v6452_v27  ;;  %5048 = vmatprep.mubr.msk.f32.mxu1 %vm5686_vm2, %v5684_v4 }
0x2096   :  { %5042 = vmatprep.subr.mxu1 %v5684_v4 }
0x2097   :  { %5043 = vmatpush3.msra.mxu1 %v6454_v25 }
0x2098   :  { %5044 = vmatprep.subr.mxu1 %v5684_v4 }
0x2099   :  { %5045 = vmatpush3.msra.mxu1 %v6458_v8 }
0x209a   :  { %5046 = vmatprep.subr.mxu1 %v5684_v4 }
0x209b   :  { %5047 = vmatpush3.msra.mxu1 %v6462_v36 }
0x209c   :  { %5062 = vmatprep.subr.mxu1 %v5684_v4 }
0x2109   :  { %v3062_v49 = vpop.f32.mrf.mxu0 }
0x210a   :  { %v3063_v0 = vadd.f32 %v6415_v23, %v3062_v49 }
0x210b   :  { %v5039_v6 = vpop.f32.mrf.mxu0 }
0x210c   :  { %3093 = vrot.lane.b32.xlu0 %v3063_v0, %s5688_s20 }
0x2110   :  { %3110 = vrot.lane.b32.xlu0 %v3063_v0, %s5685_s26 }
0x2154   :  { %v2990_v9 = vpop.f32.mrf.mxu1 }
0x2155   :  { %v2991_v45 = vadd.f32 %v6387_v21, %v2990_v9  ;;  %v6699_v9 = vld [vmem:[%s7393_s9] ss:$0 sm:$0xff] }
0x2156   :  { %v5028_v2 = vpop.f32.mrf.mxu1 }
0x2157   :  { %3074 = vrot.lane.b32.xlu1 %v2991_v45, %s5687_s5  ;;  %v3066_v13 = vadd.f32 %v2991_v45, %v6439_v63 }
0x2159   :  { %v4576_v5 = vmul.f32 -1.442695, %v3066_v13 }
0x215b   :  { %5353 = vpow2.f32 %v4576_v5 }
0x2168   :  { %v5354_v16 = vpop.eup %5353 }
0x2169   :  { %v3070_v20 = vadd.f32 1.0, %v5354_v16 }
0x217e   :  { %v3094_v12 = vpop.permute.xlu0 %3093 }
0x217f   :  { %v3096_v14 = vadd.f32 %v3094_v12, %v6436_v61  ;;  %v3097_v10 = vadd.f32 %v3094_v12, %v2921_v24 }
0x2181   :  { %v4577_v15 = vmul.f32 -1.442695, %v3096_v14  ;;  %v4578_v38 = vmul.f32 -1.442695, %v3097_v10 }
0x2182   :  { %v3111_v51 = vpop.permute.xlu0 %3110 }
0x2183   :  { %5355 = vpow2.f32 %v4577_v15 }
0x2184   :  { %5357 = vrcp.f32 %v3070_v20 }
0x2190   :  { %v5356_v17 = vpop.eup %5355 }
0x2191   :  { %v3104_v42 = vadd.f32 1.0, %v5356_v17  ;;  %v5358_v19 = vpop.eup %5357 }
0x2192   :  { %v3084_v46 = vsub.f32 1.0, %v5358_v19  ;;  %v3090_v50 = vmul.f32 %v5358_v19, %v6617_v57 }
0x2193   :  { %5359 = vrcp.f32 %v3104_v42 }
0x21a0   :  { %v5360_v11 = vpop.eup %5359 }
0x21a1   :  { %v3113_v28 = vmul.f32 %v5360_v11, %v3111_v51 }
0x21c9   :  { %v3075_v21 = vpop.permute.xlu1 %3074 }
0x21ca   :  { %v3077_v52 = vmul.f32 %v5358_v19, %v3075_v21 }
0x21cc   :  { %3079 = vrot.lane.b32.xlu1 %v3077_v52, %s5687_s5 }
0x21d0   :  { %3115 = vrot.lane.b32.xlu1 %v3113_v28, %s5687_s5 }
0x223e   :  { %v3080_v61 = vpop.permute.xlu1 %3079 }
0x223f   :  { %v3082_v22 = vadd.f32 %v3080_v61, %v6439_v63  ;;  %v3140_v61 = vld [vmem:[#allocation5 + $0x28] sm:$0xff] }
0x2241   :  { %5361 = vtanh.f32 %v3082_v22 }
0x2242   :  { %v3116_v26 = vpop.permute.xlu1 %3115 }
0x2243   :  { %v3118_v62 = vadd.f32 %v3116_v26, %v2921_v24 }
0x2245   :  { %5363 = vtanh.f32 %v3118_v62 }
0x2246   :  { %5365 = vpow2.f32 %v4578_v38 }
0x224e   :  { %v5362_v29 = vpop.eup %5361 }
0x224f   :  { %3086 = vrot.lane.b32.xlu0 %v5362_v29, %s5688_s20 }
0x2252   :  { %v5364_v55 = vpop.eup %5363 }
0x2253   :  { %3122 = vrot.lane.b32.xlu1 %v5364_v55, %s5688_s20  ;;  %v5366_v54 = vpop.eup %5365 }
0x2254   :  { %v3105_v58 = vadd.f32 1.0, %v5366_v54 }
0x2256   :  { %5367 = vrcp.f32 %v3105_v58 }
0x2263   :  { %v5368_v48 = vpop.eup %5367 }
0x2264   :  { %v3120_v32 = vsub.f32 1.0, %v5368_v48  ;;  %v3126_v7 = vmul.f32 %v5368_v48, %v6622_v33 }
0x22c1   :  { %v3087_v63 = vpop.permute.xlu0 %3086 }
0x22c2   :  { %v3089_v59 = vmul.f32 %v3087_v63, %v3084_v46 }
0x22c4   :  { %v6661_v31 = vadd.f32 %v3090_v50, %v3089_v59 }
0x22c5   :  { %v3123_v60 = vpop.permute.xlu1 %3122 }
0x22c6   :  { %v3125_v18 = vmul.f32 %v3123_v60, %v3120_v32  ;;  %3129 = vrot.lane.b32.xlu0 %v6661_v31, %s5688_s20 }
0x22c8   :  { %v6666_v3 = vadd.f32 %v3126_v7, %v3125_v18 }
0x22ca   :  { %5060 = vmatmul.mubr.msk.f32.vlgmr.msra.gmra.mxu0 %vm197_vm0, %v6666_v3 }
0x22cb   :  { %5074 = vmatpush3.msra.mxu0 %v6469_v39  ;;  %5081 = vmatprep.mubr.msk.f32.mxu0 %vm5686_vm2, %v5684_v4 }
0x22cc   :  { %5075 = vmatprep.subr.mxu0 %v5684_v4 }
0x22cd   :  { %5076 = vmatpush3.msra.mxu0 %v6472_v40 }
0x22ce   :  { %5077 = vmatprep.subr.mxu0 %v5684_v4 }
0x22cf   :  { %5078 = vmatpush3.msra.mxu0 %v6476_v44 }
0x22d0   :  { %5079 = vmatprep.subr.mxu0 %v5684_v4 }
0x22d1   :  { %5080 = vmatpush3.msra.mxu0 %v6480_v43 }
0x22d2   :  { %5095 = vmatprep.subr.mxu0 %v5684_v4 }
0x2338   :  { %v6680_v57 = vpop.permute.xlu0 %3129 }
0x2339   :  { %5049 = vmatmul.mubr.msk.f32.vlgmr.msra.gmra.mxu1 %vm197_vm0, %v6680_v57 }
0x233a   :  { %5063 = vmatpush3.msra.mxu1 %v6452_v27  ;;  %5070 = vmatprep.mubr.msk.f32.mxu1 %vm5686_vm2, %v5684_v4 }
0x233b   :  { %5064 = vmatprep.subr.mxu1 %v5684_v4 }
0x233c   :  { %5065 = vmatpush3.msra.mxu1 %v6454_v25 }
0x233d   :  { %5066 = vmatprep.subr.mxu1 %v5684_v4 }
0x233e   :  { %5067 = vmatpush3.msra.mxu1 %v6458_v8 }
0x233f   :  { %5068 = vmatprep.subr.mxu1 %v5684_v4 }
0x2340   :  { %5069 = vmatpush3.msra.mxu1 %v6462_v36 }
0x2341   :  { %5084 = vmatprep.subr.mxu1 %v5684_v4 }
0x238a   :  { %v3281_v56 = vpop.f32.mrf.mxu0 }
0x238b   :  { %v3282_v49 = vadd.f32 %v6415_v23, %v3281_v56  ;;  %v5453_v56 = vld [vmem:[#allocation5 + $0x10] sm:$0xff] }
0x238c   :  { %v5061_v0 = vpop.f32.mrf.mxu0 }
0x238d   :  { %3312 = vrot.lane.b32.xlu0 %v3282_v49, %s5688_s20 }
0x23f9   :  { %v3209_v6 = vpop.f32.mrf.mxu1 }
0x23fa   :  { %v3210_v45 = vadd.f32 %v6699_v9, %v3209_v6 }
0x23fb   :  { %v5050_v2 = vpop.f32.mrf.mxu1 }
0x23fc   :  { %3293 = vrot.lane.b32.xlu1 %v3210_v45, %s5687_s5  ;;  %v3285_v12 = vadd.f32 %v3210_v45, %v6442_v47 }
0x23fe   :  { %v4581_v23 = vmul.f32 -1.442695, %v3285_v12 }
0x23ff   :  { %v3313_v13 = vpop.permute.xlu0 %3312 }
0x2400   :  { %3329 = vrot.lane.b32.xlu1 %v3282_v49, %s5685_s26  ;;  %v3315_v14 = vadd.f32 %v3313_v13, %v6433_v30  ;;  %5369 = vpow2.f32 %v4581_v23  ;;  %v3316_v29 = vadd.f32 %v3313_v13, %v3140_v61  ;;  %v5454_v13 = vld [vmem:[#allocation5 + $0x60] sm:$0xff] }
0x2402   :  { %v4582_v5 = vmul.f32 -1.442695, %v3315_v14  ;;  %v4583_v55 = vmul.f32 -1.442695, %v3316_v29 }
0x2404   :  { %5371 = vpow2.f32 %v4582_v5 }
0x240d   :  { %v5370_v15 = vpop.eup %5369 }
0x240e   :  { %v3289_v16 = vadd.f32 1.0, %v5370_v15 }
0x2410   :  { %5373 = vrcp.f32 %v3289_v16 }
0x2411   :  { %v5372_v17 = vpop.eup %5371 }
0x2412   :  { %v3323_v20 = vadd.f32 1.0, %v5372_v17 }
0x2414   :  { %5375 = vrcp.f32 %v3323_v20 }
0x241d   :  { %v5374_v42 = vpop.eup %5373 }
0x241e   :  { %v3303_v54 = vsub.f32 1.0, %v5374_v42  ;;  %v3309_v46 = vmul.f32 %v5374_v42, %v6661_v31 }
0x2421   :  { %v5376_v52 = vpop.eup %5375 }
0x246e   :  { %v3294_v19 = vpop.permute.xlu1 %3293 }
0x246f   :  { %v3296_v21 = vmul.f32 %v5374_v42, %v3294_v19  ;;  %v3359_v42 = vld [vmem:[#allocation5 + $0x18] sm:$0xff] }
0x2471   :  { %3298 = vrot.lane.b32.xlu0 %v3296_v21, %s5687_s5 }
0x2472   :  { %v3330_v11 = vpop.permute.xlu1 %3329 }
0x2473   :  { %v3332_v51 = vmul.f32 %v5376_v52, %v3330_v11 }
0x2475   :  { %3334 = vrot.lane.b32.xlu1 %v3332_v51, %s5687_s5 }
0x24e3   :  { %v3299_v30 = vpop.permute.xlu0 %3298 }
0x24e4   :  { %v3301_v28 = vadd.f32 %v3299_v30, %v6442_v47 }
0x24e6   :  { %5377 = vtanh.f32 %v3301_v28 }
0x24e7   :  { %v3335_v22 = vpop.permute.xlu1 %3334 }
0x24e8   :  { %v3337_v24 = vadd.f32 %v3335_v22, %v3140_v61 }
0x24ea   :  { %5379 = vtanh.f32 %v3337_v24 }
0x24eb   :  { %5381 = vpow2.f32 %v4583_v55 }
0x24f3   :  { %v5378_v26 = vpop.eup %5377 }
0x24f4   :  { %3305 = vrot.lane.b32.xlu0 %v5378_v26, %s5688_s20 }
0x24f7   :  { %v5380_v62 = vpop.eup %5379 }
0x24f8   :  { %3341 = vrot.lane.b32.xlu1 %v5380_v62, %s5688_s20  ;;  %v5382_v10 = vpop.eup %5381 }
0x24f9   :  { %v3324_v38 = vadd.f32 1.0, %v5382_v10 }
0x24fb   :  { %5383 = vrcp.f32 %v3324_v38 }
0x2508   :  { %v5384_v58 = vpop.eup %5383 }
0x2509   :  { %v3339_v50 = vsub.f32 1.0, %v5384_v58  ;;  %v3345_v32 = vmul.f32 %v5384_v58, %v6666_v3 }
0x2566   :  { %v3306_v47 = vpop.permute.xlu0 %3305 }
0x2567   :  { %v3308_v48 = vmul.f32 %v3306_v47, %v3303_v54 }
0x2569   :  { %v6712_v63 = vadd.f32 %v3309_v46, %v3308_v48 }
0x256a   :  { %v3342_v59 = vpop.permute.xlu1 %3341 }
0x256b   :  { %v3344_v60 = vmul.f32 %v3342_v59, %v3339_v50  ;;  %3348 = vrot.lane.b32.xlu0 %v6712_v63, %s5688_s20 }
0x256d   :  { %v6717_v7 = vadd.f32 %v3345_v32, %v3344_v60 }
0x256f   :  { %5082 = vmatmul.mubr.msk.f32.vlgmr.msra.gmra.mxu0 %vm197_vm0, %v6717_v7 }
0x2570   :  { %5096 = vmatpush3.msra.mxu0 %v6469_v39  ;;  %5103 = vmatprep.mubr.msk.f32.mxu0 %vm5686_vm2, %v5684_v4 }
0x2571   :  { %5097 = vmatprep.subr.mxu0 %v5684_v4 }
0x2572   :  { %5098 = vmatpush3.msra.mxu0 %v6472_v40  ;;  %v6744_v40 = vld [vmem:[#allocation18] ss:$0 sm:$0xff] }
0x2573   :  { %5099 = vmatprep.subr.mxu0 %v5684_v4 }
0x2574   :  { %5100 = vmatpush3.msra.mxu0 %v6476_v44 }
0x2575   :  { %5101 = vmatprep.subr.mxu0 %v5684_v4 }
0x2576   :  { %5102 = vmatpush3.msra.mxu0 %v6480_v43 }
0x2577   :  { %4101 = vmatprep.subr.mxu0 %v5684_v4 }
0x25dd   :  { %v6731_v31 = vpop.permute.xlu0 %3348 }
0x25de   :  { %5071 = vmatmul.mubr.msk.f32.vlgmr.msra.gmra.mxu1 %vm197_vm0, %v6731_v31 }
0x25df   :  { %5085 = vmatpush3.msra.mxu1 %v6452_v27  ;;  %5092 = vmatprep.mubr.msk.f32.mxu1 %vm5686_vm2, %v5684_v4 }
0x25e0   :  { %5086 = vmatprep.subr.mxu1 %v5684_v4 }
0x25e1   :  { %5087 = vmatpush3.msra.mxu1 %v6454_v25 }
0x25e2   :  { %5088 = vmatprep.subr.mxu1 %v5684_v4 }
0x25e3   :  { %5089 = vmatpush3.msra.mxu1 %v6458_v8 }
0x25e4   :  { %5090 = vmatprep.subr.mxu1 %v5684_v4 }
0x25e5   :  { %5091 = vmatpush3.msra.mxu1 %v6462_v36 }
0x262f   :  { %v3500_v39 = vpop.f32.mrf.mxu0 }
0x2630   :  { %v3501_v27 = vadd.f32 %v6744_v40, %v3500_v39  ;;  %v3577_v39 = vld [vmem:[#allocation5] sm:$0xff] }
0x2631   :  { %v5083_v44 = vpop.f32.mrf.mxu0 }
0x2632   :  { %3531 = vrot.lane.b32.xlu1 %v3501_v27, %s5688_s20 }
0x2636   :  { %3548 = vrot.lane.b32.xlu1 %v3501_v27, %s5685_s26 }
0x269e   :  { %v3428_v43 = vpop.f32.mrf.mxu1 }
0x269f   :  { %v3429_v25 = vadd.f32 %v6699_v9, %v3428_v43 }
0x26a0   :  { %v5072_v18 = vpop.f32.mrf.mxu1 }
0x26a1   :  { %3512 = vrot.lane.b32.xlu0 %v3429_v25, %s5687_s5  ;;  %v3504_v23 = vadd.f32 %v5454_v13, %v3429_v25 }
0x26a3   :  { %v4586_v14 = vmul.f32 -1.442695, %v3504_v23 }
0x26a4   :  { %v3532_v8 = vpop.permute.xlu1 %3531 }
0x26a5   :  { %v3534_v49 = vadd.f32 %v5453_v56, %v3532_v8  ;;  %v3535_v30 = vadd.f32 %v3532_v8, %v3359_v42 }
0x26a7   :  { %v4587_v36 = vmul.f32 -1.442695, %v3534_v49  ;;  %v4588_v28 = vmul.f32 -1.442695, %v3535_v30 }
0x26a8   :  { %v3549_v2 = vpop.permute.xlu1 %3548 }
0x26a9   :  { %5385 = vpow2.f32 %v4587_v36 }
0x26b6   :  { %v5386_v0 = vpop.eup %5385 }
0x26b7   :  { %v3542_v6 = vadd.f32 1.0, %v5386_v0  ;;  %v3576_v0 = vld [vmem:[#allocation5 + $0x70] sm:$0xff] }
0x26b9   :  { %5387 = vrcp.f32 %v3542_v6 }
0x26ba   :  { %5389 = vpow2.f32 %v4586_v14 }
0x26c6   :  { %v5388_v45 = vpop.eup %5387 }
0x26c7   :  { %v3551_v12 = vmul.f32 %v5388_v45, %v3549_v2  ;;  %v5390_v5 = vpop.eup %5389  ;;  %v3578_v45 = vld [vmem:[#allocation5 + $0x8] sm:$0xff] }
0x26c8   :  { %v3508_v15 = vadd.f32 1.0, %v5390_v5 }
0x26c9   :  { %3553 = vrot.lane.b32.xlu1 %v3551_v12, %s5687_s5 }
0x26ca   :  { %5391 = vrcp.f32 %v3508_v15 }
0x26d7   :  { %v5392_v16 = vpop.eup %5391 }
0x26d8   :  { %v3522_v54 = vsub.f32 1.0, %v5392_v16  ;;  %v3528_v47 = vmul.f32 %v5392_v16, %v6712_v63 }
0x2713   :  { %v3513_v17 = vpop.permute.xlu0 %3512 }
0x2714   :  { %v3515_v20 = vmul.f32 %v5392_v16, %v3513_v17 }
0x2716   :  { %3517 = vrot.lane.b32.xlu0 %v3515_v20, %s5687_s5 }
0x273b   :  { %v3554_v19 = vpop.permute.xlu1 %3553 }
0x273c   :  { %v3556_v21 = vadd.f32 %v3554_v19, %v3359_v42 }
0x273e   :  { %5393 = vtanh.f32 %v3556_v21 }
0x274b   :  { %v5394_v52 = vpop.eup %5393 }
0x274c   :  { %3560 = vrot.lane.b32.xlu1 %v5394_v52, %s5688_s20 }
0x2788   :  { %v3518_v11 = vpop.permute.xlu0 %3517 }
0x2789   :  { %v3520_v51 = vadd.f32 %v5454_v13, %v3518_v11 }
0x278b   :  { %5395 = vtanh.f32 %v3520_v51 }
0x278c   :  { %5397 = vpow2.f32 %v4588_v28 }
0x2798   :  { %v5396_v61 = vpop.eup %5395 }
0x2799   :  { %3524 = vrot.lane.b32.xlu0 %v5396_v61, %s5688_s20  ;;  %v5398_v22 = vpop.eup %5397 }
0x279a   :  { %v3543_v24 = vadd.f32 1.0, %v5398_v22 }
0x279c   :  { %5399 = vrcp.f32 %v3543_v24 }
0x27a9   :  { %v5400_v26 = vpop.eup %5399 }
0x27aa   :  { %v3558_v62 = vsub.f32 1.0, %v5400_v26  ;;  %v3564_v55 = vmul.f32 %v5400_v26, %v6717_v7 }
0x27be   :  { %v3561_v29 = vpop.permute.xlu1 %3560 }
0x27bf   :  { %v3563_v10 = vmul.f32 %v3561_v29, %v3558_v62 }
0x27c1   :  { %v6756_v38 = vadd.f32 %v3564_v55, %v3563_v10 }
0x27c3   :  { %5104 = vmatmul.mubr.msk.f32.vlgmr.msra.gmra.mxu0 %vm197_vm0, %v6756_v38 }
0x280b   :  { %v3525_v58 = vpop.permute.xlu0 %3524 }
0x280c   :  { %v3527_v46 = vmul.f32 %v3525_v58, %v3522_v54  ;;  %v4594_v58 = vld [vmem:[#allocation22] ss:$0 sm:$0xff] }
0x280e   :  { %v6761_v48 = vadd.f32 %v3528_v47, %v3527_v46 }
0x2810   :  { %3567 = vrot.lane.b32.xlu0 %v6761_v48, %s5688_s20 }
0x2882   :  { %v3568_v50 = vpop.permute.xlu0 %3567 }
0x2883   :  { %5093 = vmatmul.mubr.msk.f32.vlgmr.msra.gmra.mxu1 %vm197_vm0, %v3568_v50  ;;  %v3719_v59 = vpop.f32.mrf.mxu0 }
0x2884   :  { %v3720_v32 = vadd.f32 %v6744_v40, %v3719_v59 }
0x2885   :  { %v5105_v60 = vpop.f32.mrf.mxu0 }
0x2886   :  { %3767 = vrot.lane.b32.xlu0 %v3720_v32, %s5685_s26  ;;  %3750 = vrot.lane.b32.xlu1 %v3720_v32, %s5688_s20 }
0x28f8   :  { %v3751_v27 = vpop.permute.xlu1 %3750  ;;  %v3768_v8 = vpop.permute.xlu0 %3767 }
0x28f9   :  { %v3753_v63 = vadd.f32 %v3751_v27, %v3577_v39  ;;  %v3754_v17 = vadd.f32 %v3751_v27, %v3578_v45 }
0x28fb   :  { %v4592_v44 = vmul.f32 -1.442695, %v3753_v63  ;;  %v4593_v20 = vmul.f32 -1.442695, %v3754_v17  ;;  %v3984_v17 = vld [vmem:[%s7398_s14 + $0x170] sm:$0xff] }
0x28fc   :  { %4030 = vmatprep.subr.mxu1 %v3984_v17  ;;  %v4004_v17 = vld [vmem:[%s7398_s14 + $0x210] sm:$0xff] }
0x28fd   :  { %5401 = vpow2.f32 %v4592_v44 }
0x290a   :  { %v5402_v43 = vpop.eup %5401 }
0x290b   :  { %v3761_v25 = vadd.f32 1.0, %v5402_v43 }
0x290d   :  { %5403 = vrcp.f32 %v3761_v25 }
0x291a   :  { %v5404_v18 = vpop.eup %5403 }
0x291b   :  { %v3770_v56 = vmul.f32 %v5404_v18, %v3768_v8 }
0x291d   :  { %3772 = vrot.lane.b32.xlu0 %v3770_v56, %s5687_s5 }
0x2943   :  { %v3647_v49 = vpop.f32.mrf.mxu1 }
0x2944   :  { %v3648_v40 = vadd.f32 %v6699_v9, %v3647_v49 }
0x2945   :  { %v5094_v36 = vpop.f32.mrf.mxu1 }
0x2946   :  { %3731 = vrot.lane.b32.xlu1 %v3648_v40, %s5687_s5  ;;  %v3723_v6 = vadd.f32 %v3648_v40, %v3576_v0 }
0x2948   :  { %v4591_v13 = vmul.f32 -1.442695, %v3723_v6 }
0x298f   :  { %v3773_v2 = vpop.permute.xlu0 %3772 }
0x2990   :  { %v3775_v12 = vadd.f32 %v3773_v2, %v3578_v45 }
0x2992   :  { %5405 = vtanh.f32 %v3775_v12 }
0x2993   :  { %5407 = vpow2.f32 %v4591_v13 }
0x299f   :  { %v5406_v23 = vpop.eup %5405 }
0x29a0   :  { %3779 = vrot.lane.b32.xlu0 %v5406_v23, %s5688_s20  ;;  %v5408_v14 = vpop.eup %5407 }
0x29a1   :  { %v3727_v5 = vadd.f32 1.0, %v5408_v14 }
0x29a3   :  { %5409 = vrcp.f32 %v3727_v5 }
0x29a4   :  { %3572 = vrot.lane.b32.xlu0 %v6756_v38, %s5685_s26  ;;  %5411 = vpow2.f32 %v4593_v20  ;;  %v3983_v20 = vld [vmem:[%s7398_s14 + $0x168] sm:$0xff] }
0x29a5   :  { %4031 = vmatpush1.msra.mxu1 %v3983_v20  ;;  %v4006_v20 = vld [vmem:[%s7398_s14 + $0x220] sm:$0xff] }
0x29a8   :  { %3353 = vrot.lane.b32.xlu0 %v6717_v7, %s5685_s26 }
0x29ac   :  { %2915 = vrot.lane.b32.xlu0 %v6622_v33, %s5685_s26 }
0x29b0   :  { %2477 = vrot.lane.b32.xlu0 %v6541_v1, %s5685_s26  ;;  %v5410_v9 = vpop.eup %5409 }
0x29b1   :  { %v5412_v33 = vpop.eup %5411  ;;  %v3741_v26 = vsub.f32 1.0, %v5410_v9  ;;  %v3747_v29 = vmul.f32 %v5410_v9, %v6761_v48 }
0x29b2   :  { %v3762_v52 = vadd.f32 1.0, %v5412_v33  ;;  %v3977_v33 = vld [vmem:[%s7398_s14 + $0x138] sm:$0xff] }
0x29b4   :  { %5413 = vrcp.f32 %v3762_v52  ;;  %v3979_v52 = vld [vmem:[%s7398_s14 + $0x148] sm:$0xff] }
0x29b8   :  { %v3732_v15 = vpop.permute.xlu1 %3731 }
0x29b9   :  { %v3734_v16 = vmul.f32 %v5410_v9, %v3732_v15 }
0x29bb   :  { %3736 = vrot.lane.b32.xlu1 %v3734_v16, %s5687_s5 }
0x29c1   :  { %v5414_v30 = vpop.eup %5413 }
0x29c2   :  { %v3777_v28 = vsub.f32 1.0, %v5414_v30  ;;  %v3783_v24 = vmul.f32 %v5414_v30, %v6756_v38  ;;  %v3976_v30 = vld [vmem:[%s7398_s14 + $0x130] sm:$0xff] }
0x2a12   :  { %v3780_v42 = vpop.permute.xlu0 %3779 }
0x2a13   :  { %v3782_v61 = vmul.f32 %v3780_v42, %v3777_v28  ;;  %v3985_v42 = vld [vmem:[%s7398_s14 + $0x178] sm:$0xff]  ;;  %v3972_v28 = vld [vmem:[%s7398_s14 + $0x110] sm:$0xff] }
0x2a14   :  { %4102 = vmatpush1.msra.mxu0 %v3985_v42  ;;  %v4002_v42 = vld [vmem:[%s7398_s14 + $0x200] sm:$0xff] }
0x2a15   :  { %4103 = vmatprep.subr.mxu0 %v5684_v4 }
0x2a16   :  { %v3573_v19 = vpop.permute.xlu0 %3572 }
0x2a17   :  { %3575 = vst.msk [vmem:[#allocation6 + $0x8] sm:$0xff] %vm519_vm3, %v3573_v19  ;;  %v3981_v19 = vld [vmem:[%s7398_s14 + $0x158] sm:$0xff] }
0x2a18   :  { %4032 = vmatprep.subr.mxu1 %v3981_v19  ;;  %v4001_v19 = vld [vmem:[%s7398_s14 + $0x1f8] sm:$0xff] }
0x2a1a   :  { %v3354_v7 = vpop.permute.xlu0 %3353 }
0x2a1b   :  { %3356 = vst.msk [vmem:[#allocation6 + $0x10] sm:$0xff] %vm519_vm3, %v3354_v7  ;;  %v3980_v7 = vld [vmem:[%s7398_s14 + $0x150] sm:$0xff] }
0x2a1c   :  { %4033 = vmatpush1.msra.mxu1 %v3980_v7  ;;  %v4003_v7 = vld [vmem:[%s7398_s14 + $0x208] sm:$0xff] }
0x2a1e   :  { %v2916_v21 = vpop.permute.xlu0 %2915 }
0x2a1f   :  { %2918 = vst.msk [vmem:[#allocation6 + $0x20] sm:$0xff] %vm519_vm3, %v2916_v21  ;;  %v3982_v21 = vld [vmem:[%s7398_s14 + $0x160] sm:$0xff] }
0x2a20   :  { %3132 = vst.msk [vmem:[#allocation6 + $0x20] sm:$0xff] %vm197_vm0, %v6680_v57  ;;  %v3784_v57 = vadd.f32 %v3783_v24, %v3782_v61  ;;  %4104 = vmatpush1.msra.mxu0 %v3982_v21  ;;  %v3971_v61 = vld [vmem:[%s7398_s14 + $0x108] sm:$0xff]  ;;  %v3969_v24 = vld [vmem:[%s7398_s14 + $0xf8] sm:$0xff] }
0x2a21   :  { %4105 = vmatprep.subr.mxu0 %v5684_v4  ;;  %v3999_v21 = vld [vmem:[%s7398_s14 + $0x1e8] sm:$0xff] }
0x2a22   :  { %v2478_v1 = vpop.permute.xlu0 %2477  ;;  %v6821_v63 = vld [vmem:[#allocation6 + $0x10] sm:$0xff]  ;;  %4106 = vmatpush1.msra.mxu0 %v3979_v52 }
0x2a23   :  { %2480 = vst.msk [vmem:[#allocation6 + $0x30] sm:$0xff] %vm519_vm3, %v2478_v1  ;;  %v3836_v43 = vmul.f32 %v4594_v58, %v6821_v63  ;;  %v3978_v1 = vld [vmem:[%s7398_s14 + $0x140] sm:$0xff]  ;;  %4107 = vmatprep.subr.mxu0 %v5684_v4  ;;  %v3996_v52 = vld [vmem:[%s7398_s14 + $0x1d0] sm:$0xff] }
0x2a24   :  { %3570 = vst.msk [vmem:[#allocation6 + $0x30] sm:$0xff] %vm197_vm0, %v3568_v50  ;;  %4034 = vmatprep.subr.mxu1 %v3978_v1  ;;  %4108 = vmatpush1.msra.mxu0 %v3976_v30  ;;  %v3998_v1 = vld [vmem:[%s7398_s14 + $0x1e0] sm:$0xff]  ;;  %v3993_v30 = vld [vmem:[%s7398_s14 + $0x1b8] sm:$0xff] }
0x2a25   :  { %v3837_v18 = vsel %vm2013_vm4, %v3836_v43, 0.0  ;;  %4035 = vmatpush1.msra.mxu1 %v3977_v33  ;;  %4109 = vmatprep.subr.mxu0 %v5684_v4  ;;  %v3952_v43 = vld [vmem:[%s7398_s14 + $0x70] sm:$0xff] }
0x2a26   :  { %v4000_v33 = vld [vmem:[%s7398_s14 + $0x1f0] sm:$0xff] }
0x2a27   :  { %v6825_v25 = vld [vmem:[#allocation6 + $0x20] sm:$0xff] }
0x2a28   :  { %v3868_v8 = vmul.f32 %v4594_v58, %v6825_v25 }
0x2a2a   :  { %v3869_v49 = vsel %vm2013_vm4, %v3868_v8, 0.0  ;;  %v3947_v8 = vld [vmem:[%s7398_s14 + $0x48] sm:$0xff] }
0x2a2b   :  { %v6829_v56 = vld [vmem:[#allocation6 + $0x30] sm:$0xff] }
0x2a2c   :  { %v3900_v40 = vmul.f32 %v4594_v58, %v6829_v56 }
0x2a2d   :  { %v3737_v11 = vpop.permute.xlu1 %3736 }
0x2a2e   :  { %v3739_v51 = vadd.f32 %v3737_v11, %v3576_v0  ;;  %v3901_v36 = vsel %vm2013_vm4, %v3900_v40, 0.0  ;;  %v3975_v11 = vld [vmem:[%s7398_s14 + $0x128] sm:$0xff]  ;;  %v3945_v40 = vld [vmem:[%s7398_s14 + $0x38] sm:$0xff] }
0x2a2f   :  { %4036 = vmatprep.subr.mxu1 %v3975_v11  ;;  %v3995_v11 = vld [vmem:[%s7398_s14 + $0x1c8] sm:$0xff] }
0x2a30   :  { %5415 = vtanh.f32 %v3739_v51  ;;  %v3974_v51 = vld [vmem:[%s7398_s14 + $0x120] sm:$0xff] }
0x2a31   :  { %4037 = vmatpush1.msra.mxu1 %v3974_v51  ;;  %v3997_v51 = vld [vmem:[%s7398_s14 + $0x1d8] sm:$0xff] }
0x2a32   :  { %4038 = vmatprep.subr.mxu1 %v3972_v28  ;;  %v3992_v28 = vld [vmem:[%s7398_s14 + $0x1b0] sm:$0xff] }
0x2a33   :  { %4039 = vmatpush1.msra.mxu1 %v3971_v61  ;;  %v3994_v61 = vld [vmem:[%s7398_s14 + $0x1c0] sm:$0xff] }
0x2a34   :  { %4040 = vmatprep.subr.mxu1 %v3969_v24  ;;  %v3989_v24 = vld [vmem:[%s7398_s14 + $0x198] sm:$0xff] }
0x2a3d   :  { %v5416_v22 = vpop.eup %5415 }
0x2a3e   :  { %3743 = vrot.lane.b32.xlu1 %v5416_v22, %s5688_s20  ;;  %v3973_v22 = vld [vmem:[%s7398_s14 + $0x118] sm:$0xff] }
0x2a3f   :  { %4110 = vmatpush1.msra.mxu0 %v3973_v22  ;;  %v3990_v22 = vld [vmem:[%s7398_s14 + $0x1a0] sm:$0xff] }
0x2a40   :  { %4111 = vmatprep.subr.mxu0 %v5684_v4 }
0x2a42   :  { %3791 = vrot.lane.b32.xlu1 %v3784_v57, %s5685_s26  ;;  %v3968_v57 = vld [vmem:[%s7398_s14 + $0xf0] sm:$0xff] }
0x2a43   :  { %4041 = vmatpush1.msra.mxu1 %v3968_v57  ;;  %v3991_v57 = vld [vmem:[%s7398_s14 + $0x1a8] sm:$0xff] }
0x2a46   :  { %3134 = vrot.lane.b32.xlu1 %v6666_v3, %s5685_s26 }
0x2a4a   :  { %2696 = vrot.lane.b32.xlu1 %v6585_v41, %s5685_s26 }
0x2a4e   :  { %2258 = vrot.lane.b32.xlu1 %v6499_v53, %s5685_s26 }
0x2ab0   :  { %v3744_v62 = vpop.permute.xlu1 %3743 }
0x2ab1   :  { %v3746_v55 = vmul.f32 %v3744_v62, %v3741_v26  ;;  %v3970_v26 = vld [vmem:[%s7398_s14 + $0x100] sm:$0xff] }
0x2ab2   :  { %4112 = vmatpush1.msra.mxu0 %v3970_v26  ;;  %v3966_v62 = vld [vmem:[%s7398_s14 + $0xe0] sm:$0xff]  ;;  %v3987_v26 = vld [vmem:[%s7398_s14 + $0x188] sm:$0xff] }
0x2ab3   :  { %v3748_v10 = vadd.f32 %v3747_v29, %v3746_v55  ;;  %4042 = vmatprep.subr.mxu1 %v3966_v62  ;;  %4113 = vmatprep.subr.mxu0 %v5684_v4  ;;  %v3965_v29 = vld [vmem:[%s7398_s14 + $0xd8] sm:$0xff]  ;;  %v3967_v55 = vld [vmem:[%s7398_s14 + $0xe8] sm:$0xff]  ;;  %v3986_v62 = vld [vmem:[%s7398_s14 + $0x180] sm:$0xff] }
0x2ab4   :  { %v3792_v38 = vpop.permute.xlu1 %3791  ;;  %4043 = vmatpush1.msra.mxu1 %v3965_v29  ;;  %4114 = vmatpush1.msra.mxu0 %v3967_v55  ;;  %v3988_v29 = vld [vmem:[%s7398_s14 + $0x190] sm:$0xff]  ;;  %v4229_v55 = vld [vmem:[%s7401_s17 + $0xf8] sm:$0xff] }
0x2ab5   :  { %3794 = vst.msk [vmem:[#allocation6] sm:$0xff] %vm519_vm3, %v3792_v38  ;;  %3786 = vrot.lane.b32.xlu0 %v3748_v10, %s5688_s20  ;;  %v3963_v10 = vld [vmem:[%s7398_s14 + $0xc8] sm:$0xff]  ;;  %4115 = vmatprep.subr.mxu0 %v5684_v4  ;;  %v3962_v38 = vld [vmem:[%s7398_s14 + $0xc0] sm:$0xff] }
0x2ab6   :  { %4044 = vmatprep.subr.mxu1 %v3963_v10 }
0x2ab7   :  { %4045 = vmatpush1.msra.mxu1 %v3962_v38  ;;  %v3825_v38 = vstv %s4595_s10 }
0x2ab8   :  { %v3135_v54 = vpop.permute.xlu1 %3134 }
0x2ab9   :  { %3137 = vst.msk [vmem:[#allocation6 + $0x18] sm:$0xff] %vm519_vm3, %v3135_v54  ;;  %v3964_v54 = vld [vmem:[%s7398_s14 + $0xd0] sm:$0xff] }
0x2aba   :  { %4116 = vmatpush1.msra.mxu0 %v3964_v54  ;;  %v3809_v54 = vstv %s3808_s27 }
0x2abb   :  { %4117 = vmatprep.subr.mxu0 %v5684_v4 }
0x2abc   :  { %v2697_v3 = vpop.permute.xlu1 %2696  ;;  %v6802_v41 = vld [vmem:[#allocation6] sm:$0xff] }
0x2abd   :  { %2699 = vst.msk [vmem:[#allocation6 + $0x28] sm:$0xff] %vm519_vm3, %v2697_v3  ;;  %v3804_v53 = vmul.f32 %v4594_v58, %v6802_v41  ;;  %v3960_v3 = vld [vmem:[%s7398_s14 + $0xb0] sm:$0xff] }
0x2abe   :  { %3351 = vst.msk [vmem:[#allocation6 + $0x28] sm:$0xff] %vm197_vm0, %v6731_v31  ;;  %v6818_v31 = vld [vmem:[#allocation6 + $0x8] sm:$0xff]  ;;  %4046 = vmatprep.subr.mxu1 %v3960_v3 }
0x2abf   :  { %v3805_v47 = vsel %vm2013_vm4, %v3804_v53, 0.0  ;;  %v3820_v27 = vmul.f32 %v4594_v58, %v6818_v31  ;;  %v3818_v0 = vadd.f32 %v6818_v31, %v6802_v41  ;;  %v3961_v53 = vld [vmem:[%s7398_s14 + $0xb8] sm:$0xff] }
0x2ac0   :  { %3806 = vadd.xlane.f32.xlu1 %v3805_v47  ;;  %v2259_v46 = vpop.permute.xlu1 %2258  ;;  %v6809_v48 = vld [vmem:[#allocation6 + $0x18] sm:$0xff]  ;;  %4118 = vmatpush1.msra.mxu0 %v3961_v53 }
0x2ac1   :  { %2261 = vst.msk [vmem:[#allocation6 + $0x38] sm:$0xff] %vm519_vm3, %v2259_v46  ;;  %v3852_v50 = vmul.f32 %v4594_v58, %v6809_v48  ;;  %v3821_v44 = vsel %vm2013_vm4, %v3820_v27, 0.0  ;;  %v3834_v6 = vadd.f32 %v6821_v63, %v3818_v0  ;;  %v3957_v47 = vld [vmem:[%s7398_s14 + $0x98] sm:$0xff]  ;;  %4119 = vmatprep.subr.mxu0 %v5684_v4  ;;  %v3956_v46 = vld [vmem:[%s7398_s14 + $0x90] sm:$0xff]  ;;  %v3951_v27 = vld [vmem:[%s7398_s14 + $0x68] sm:$0xff] }
0x2ac2   :  { %v3946_v0 = vld [vmem:[%s7398_s14 + $0x40] sm:$0xff] }
0x2ac3   :  { %v3853_v59 = vsel %vm2013_vm4, %v3852_v50, 0.0  ;;  %v3850_v45 = vadd.f32 %v6809_v48, %v3834_v6  ;;  %v3958_v50 = vld [vmem:[%s7398_s14 + $0xa0] sm:$0xff] }
0x2ac4   :  { %3854 = vadd.xlane.f32.xlu1 %v3853_v59  ;;  %4120 = vmatpush1.msra.mxu0 %v3958_v50  ;;  %v3954_v59 = vld [vmem:[%s7398_s14 + $0x80] sm:$0xff] }
0x2ac5   :  { %v6814_v32 = vld [vmem:[#allocation6 + $0x28] sm:$0xff]  ;;  %v3866_v2 = vadd.f32 %v6825_v25, %v3850_v45  ;;  %4121 = vmatprep.subr.mxu0 %v5684_v4  ;;  %v3942_v6 = vld [vmem:[%s7398_s14 + $0x20] sm:$0xff]  ;;  %v3941_v45 = vld [vmem:[%s7398_s14 + $0x18] sm:$0xff] }
0x2ac6   :  { %v3884_v60 = vmul.f32 %v4594_v58, %v6814_v32 }
0x2ac7   :  { %v3882_v13 = vadd.f32 %v6814_v32, %v3866_v2  ;;  %v3943_v2 = vld [vmem:[%s7398_s14 + $0x28] sm:$0xff] }
0x2ac8   :  { %v3885_v39 = vsel %vm2013_vm4, %v3884_v60, 0.0  ;;  %v3953_v60 = vld [vmem:[%s7398_s14 + $0x78] sm:$0xff] }
0x2ac9   :  { %3886 = vadd.xlane.f32.xlu1 %v3885_v39  ;;  %v3898_v23 = vadd.f32 %v6829_v56, %v3882_v13  ;;  %v3955_v39 = vld [vmem:[%s7398_s14 + $0x88] sm:$0xff]  ;;  %v3938_v13 = vld [vmem:[%s7398_s14] sm:$0xff] }
0x2aca   :  { %4122 = vmatpush1.msra.mxu0 %v3955_v39 }
0x2acb   :  { %4123 = vmatprep.subr.mxu0 %v5684_v4 }
0x2acc   :  { %4124 = vmatpush1.msra.mxu0 %v3952_v43 }
0x2acd   :  { %4125 = vmatprep.subr.mxu0 %v5684_v4 }
0x2ad4   :  { %3822 = vadd.xlane.f32.xlu0 %v3821_v44  ;;  %v3950_v44 = vld [vmem:[%s7398_s14 + $0x60] sm:$0xff] }
0x2ad8   :  { %3838 = vadd.xlane.f32.xlu0 %v3837_v18  ;;  %v3948_v18 = vld [vmem:[%s7398_s14 + $0x50] sm:$0xff] }
0x2adc   :  { %3870 = vadd.xlane.f32.xlu0 %v3869_v49  ;;  %v3949_v49 = vld [vmem:[%s7398_s14 + $0x58] sm:$0xff] }
0x2add   :  { %4126 = vmatpush1.msra.mxu0 %v3949_v49  ;;  %v3905_v49 = vstv %s4600_s22 }
0x2ade   :  { %4127 = vmatprep.subr.mxu0 %v5684_v4 }
0x2adf   :  { %4128 = vmatpush1.msra.mxu0 %v3946_v0 }
0x2ae0   :  { %3902 = vadd.xlane.f32.xlu0 %v3901_v36  ;;  %v3944_v36 = vld [vmem:[%s7398_s14 + $0x30] sm:$0xff]  ;;  %4129 = vmatprep.subr.mxu0 %v5684_v4 }
0x2ae1   :  { %4130 = vmatpush1.msra.mxu0 %v3943_v2 }
0x2ae2   :  { %4131 = vmatprep.subr.mxu0 %v5684_v4 }
0x2b27   :  { %v3787_v12 = vpop.permute.xlu0 %3786 }
0x2b28   :  { %3789 = vst.msk [vmem:[#allocation6 + $0x38] sm:$0xff] %vm197_vm0, %v3787_v12  ;;  %v3939_v12 = vld [vmem:[%s7398_s14 + $0x8] sm:$0xff] }
0x2b2f   :  { %v6842_v14 = vld [vmem:[#allocation6 + $0x38] sm:$0xff] }
0x2b30   :  { %v3916_v5 = vmul.f32 %v4594_v58, %v6842_v14  ;;  %v3914_v9 = vadd.f32 %v6842_v14, %v3898_v23  ;;  %v3959_v58 = vld [vmem:[%s7398_s14 + $0xa8] sm:$0xff]  ;;  %v3940_v23 = vld [vmem:[%s7398_s14 + $0x10] sm:$0xff] }
0x2b31   :  { %4047 = vmatpush1.msra.mxu1 %v3959_v58  ;;  %4132 = vmatpush1.msra.mxu0 %v3940_v23  ;;  %v3841_v58 = vstv %s4596_s8 }
0x2b32   :  { %v3917_v15 = vsel %vm2013_vm4, %v3916_v5, 0.0  ;;  %v3932_v16 = vmul.f32 0.125, %v3914_v9  ;;  %4048 = vmatprep.subr.mxu1 %v3957_v47  ;;  %v4008_v5 = vld [vmem:[%s7398_s14 + $0x230] sm:$0xff]  ;;  %v4007_v9 = vld [vmem:[%s7398_s14 + $0x228] sm:$0xff]  ;;  %4149 = vmatprep.subr.mxu0 %v5684_v4 }
0x2b33   :  { %3918 = vadd.xlane.f32.xlu1 %v3917_v15  ;;  %4049 = vmatpush1.msra.mxu1 %v3956_v46  ;;  %v4009_v15 = vld [vmem:[%s7398_s14 + $0x238] sm:$0xff] }
0x2b34   :  { %3934 = vrot.lane.b32.xlu0 %v3932_v16, %s5687_s5  ;;  %4050 = vmatprep.subr.mxu1 %v3954_v59  ;;  %v4005_v16 = vld [vmem:[%s7398_s14 + $0x218] sm:$0xff]  ;;  %s4598_s14 = sld [smem:[#allocation11 + $0x200]]  ;;  %v3857_v59 = vstv %s4597_s24 }
0x2b35   :  { %4051 = vmatpush1.msra.mxu1 %v3953_v60  ;;  %4150 = vmatpush2.msra.mxu0 %v4009_v15 }
0x2b36   :  { %4052 = vmatprep.subr.mxu1 %v3951_v27  ;;  %4151 = vmatprep.subr.mxu0 %v5684_v4 }
0x2b37   :  { %4053 = vmatpush1.msra.mxu1 %v3950_v44  ;;  %4152 = vmatpush2.msra.mxu0 %v4006_v20 }
0x2b38   :  { %4054 = vmatprep.subr.mxu1 %v3948_v18  ;;  %4153 = vmatprep.subr.mxu0 %v5684_v4  ;;  %v3889_v18 = vstv %s4599_s12 }
0x2b39   :  { %4055 = vmatpush1.msra.mxu1 %v3947_v8  ;;  %4154 = vmatpush2.msra.mxu0 %v4003_v7 }
0x2b3a   :  { %4056 = vmatprep.subr.mxu1 %v3945_v40  ;;  %4155 = vmatprep.subr.mxu0 %v5684_v4  ;;  %v3873_v39 = vstv %s4598_s14 }
0x2b3b   :  { %4057 = vmatpush1.msra.mxu1 %v3944_v36  ;;  %4156 = vmatpush2.msra.mxu0 %v4000_v33 }
0x2b3c   :  { %4058 = vmatprep.subr.mxu1 %v3942_v6  ;;  %4157 = vmatprep.subr.mxu0 %v5684_v4 }
0x2b3d   :  { %4059 = vmatpush1.msra.mxu1 %v3941_v45  ;;  %4158 = vmatpush2.msra.mxu0 %v3997_v51 }
0x2b3e   :  { %4060 = vmatprep.subr.mxu1 %v3939_v12  ;;  %4159 = vmatprep.subr.mxu0 %v5684_v4 }
0x2b3f   :  { %4061 = vmatpush1.msra.mxu1 %v3938_v13  ;;  %4160 = vmatpush2.msra.mxu0 %v3994_v61 }
0x2b40   :  { %4078 = vmatprep.subr.mxu1 %v4008_v5  ;;  %4161 = vmatprep.subr.mxu0 %v5684_v4 }
0x2b41   :  { %4079 = vmatpush2.msra.mxu1 %v4007_v9  ;;  %4162 = vmatpush2.msra.mxu0 %v3991_v57  ;;  %v3921_v9 = vstv %s4601_s7 }
0x2b42   :  { %4080 = vmatprep.subr.mxu1 %v4005_v16  ;;  %4163 = vmatprep.subr.mxu0 %v5684_v4 }
0x2b43   :  { %4081 = vmatpush2.msra.mxu1 %v4004_v17  ;;  %4164 = vmatpush2.msra.mxu0 %v3988_v29 }
0x2b44   :  { %4082 = vmatprep.subr.mxu1 %v4002_v42  ;;  %5106 = vmatprep.subr.mxu0 %v5684_v4 }
0x2b45   :  { %4083 = vmatpush2.msra.mxu1 %v4001_v19 }
0x2b46   :  { %4084 = vmatprep.subr.mxu1 %v3999_v21 }
0x2b47   :  { %4085 = vmatpush2.msra.mxu1 %v3998_v1 }
0x2b48   :  { %4086 = vmatprep.subr.mxu1 %v3996_v52 }
0x2b49   :  { %4087 = vmatpush2.msra.mxu1 %v3995_v11  ;;  %v3807_v3 = vpop.xlane.xlu1 %3806 }
0x2b4a   :  { %4088 = vmatprep.subr.mxu1 %v3993_v30  ;;  %v3810_v46 = vadd.f32 %v3809_v54, %v3807_v3  ;;  %v3819_v3 = vmax.f32 %v6802_v41, %v6818_v31 }
0x2b4b   :  { %4089 = vmatpush2.msra.mxu1 %v3992_v28 }
0x2b4c   :  { %4090 = vmatprep.subr.mxu1 %v3990_v22 }
0x2b4d   :  { %4091 = vmatpush2.msra.mxu1 %v3989_v24  ;;  %v3855_v60 = vpop.xlane.xlu1 %3854 }
0x2b4e   :  { %4092 = vmatprep.subr.mxu1 %v3987_v26  ;;  %v3858_v44 = vadd.f32 %v3857_v59, %v3855_v60 }
0x2b4f   :  { %4093 = vmatpush2.msra.mxu1 %v3986_v62 }
0x2b50   :  { %4746 = vmatprep.subr.mxu1 %v4229_v55 }
0x2b52   :  { %v3887_v8 = vpop.xlane.xlu1 %3886 }
0x2b53   :  { %v3890_v36 = vadd.f32 %v3889_v18, %v3887_v8 }
0x2b5d   :  { %v3823_v10 = vpop.xlane.xlu0 %3822 }
0x2b5e   :  { %v3826_v47 = vadd.f32 %v3825_v38, %v3823_v10 }
0x2b60   :  { %5417 = vtanh.f32 %v3826_v47 }
0x2b61   :  { %v3839_v53 = vpop.xlane.xlu0 %3838  ;;  %5419 = vtanh.f32 %v3810_v46 }
0x2b62   :  { %v3842_v50 = vadd.f32 %v3841_v58, %v3839_v53 }
0x2b64   :  { %5421 = vtanh.f32 %v3842_v50  ;;  %v3835_v50 = vmax.f32 %v3819_v3, %v6821_v63  ;;  %v4234_v3 = vld [vmem:[%s7401_s17 + $0x120] sm:$0xff] }
0x2b65   :  { %v3871_v27 = vpop.xlane.xlu0 %3870  ;;  %5423 = vtanh.f32 %v3858_v44 }
0x2b66   :  { %v3874_v43 = vadd.f32 %v3873_v39, %v3871_v27 }
0x2b68   :  { %5425 = vtanh.f32 %v3874_v43  ;;  %v3851_v43 = vmax.f32 %v3835_v50, %v6809_v48  ;;  %v4232_v50 = vld [vmem:[%s7401_s17 + $0x110] sm:$0xff] }
0x2b69   :  { %v3903_v40 = vpop.xlane.xlu0 %3902  ;;  %5427 = vtanh.f32 %v3890_v36 }
0x2b6a   :  { %v3906_v45 = vadd.f32 %v3905_v49, %v3903_v40  ;;  %v3867_v8 = vmax.f32 %v3851_v43, %v6825_v25  ;;  %v4230_v43 = vld [vmem:[%s7401_s17 + $0x100] sm:$0xff] }
0x2b6c   :  { %5429 = vtanh.f32 %v3906_v45 }
0x2b6d   :  { %v5418_v0 = vpop.eup %5417 }
0x2b6e   :  { %v5420_v6 = vpop.eup %5419  ;;  %v3828_v12 = vmul.f32 1.442695, %v5418_v0 }
0x2b6f   :  { %v3812_v13 = vmul.f32 1.442695, %v5420_v6 }
0x2b70   :  { %5431 = vpow2.f32 %v3828_v12 }
0x2b71   :  { %v5422_v2 = vpop.eup %5421  ;;  %5433 = vpow2.f32 %v3812_v13 }
0x2b72   :  { %v3844_v23 = vmul.f32 1.442695, %v5422_v2  ;;  %v5424_v5 = vpop.eup %5423 }
0x2b73   :  { %v3860_v17 = vmul.f32 1.442695, %v5424_v5  ;;  %v4227_v5 = vld [vmem:[%s7401_s17 + $0xe8] sm:$0xff] }
0x2b74   :  { %5435 = vpow2.f32 %v3844_v23  ;;  %v4212_v23 = vld [vmem:[%s7401_s17 + $0x70] sm:$0xff] }
0x2b75   :  { %v5426_v15 = vpop.eup %5425 }
0x2b76   :  { %v3876_v42 = vmul.f32 1.442695, %v5426_v15  ;;  %v5428_v19 = vpop.eup %5427  ;;  %v4211_v15 = vld [vmem:[%s7401_s17 + $0x68] sm:$0xff] }
0x2b77   :  { %v3892_v21 = vmul.f32 1.442695, %v5428_v19  ;;  %v4241_v19 = vld [vmem:[%s7401_s17 + $0x158] sm:$0xff] }
0x2b79   :  { %v5430_v7 = vpop.eup %5429 }
0x2b7a   :  { %v3908_v52 = vmul.f32 1.442695, %v5430_v7  ;;  %v4209_v7 = vld [vmem:[%s7401_s17 + $0x58] sm:$0xff] }
0x2b7d   :  { %v5432_v1 = vpop.eup %5431 }
0x2b7e   :  { %v5434_v33 = vpop.eup %5433  ;;  %v3831_v62 = vmul.f32 %v5432_v1, %v6818_v31 }
0x2b7f   :  { %v3830_v51 = vadd.f32 %v5434_v33, %v5432_v1  ;;  %v3815_v55 = vmul.f32 %v5434_v33, %v6802_v41  ;;  %v4240_v1 = vld [vmem:[%s7401_s17 + $0x150] sm:$0xff] }
0x2b80   :  { %v4208_v33 = vld [vmem:[%s7401_s17 + $0x50] sm:$0xff] }
0x2b81   :  { %v5436_v11 = vpop.eup %5435  ;;  %v3832_v58 = vadd.f32 %v3831_v62, %v3815_v55  ;;  %v4236_v62 = vld [vmem:[%s7401_s17 + $0x130] sm:$0xff]  ;;  %v4219_v55 = vld [vmem:[%s7401_s17 + $0xa8] sm:$0xff] }
0x2b82   :  { %v3846_v30 = vadd.f32 %v5436_v11, %v3830_v51  ;;  %v3847_v10 = vmul.f32 %v5436_v11, %v6821_v63  ;;  %v3883_v63 = vmax.f32 %v3867_v8, %v6814_v32  ;;  %v4239_v11 = vld [vmem:[%s7401_s17 + $0x148] sm:$0xff]  ;;  %v4198_v8 = vld [vmem:[%s7401_s17] sm:$0xff] }
0x2b83   :  { %v4207_v51 = vld [vmem:[%s7401_s17 + $0x48] sm:$0xff] }
0x2b84   :  { %v3848_v47 = vadd.f32 %v3847_v10, %v3832_v58  ;;  %v3899_v0 = vmax.f32 %v3883_v63, %v6829_v56  ;;  %v4235_v10 = vld [vmem:[%s7401_s17 + $0x128] sm:$0xff]  ;;  %v4202_v58 = vld [vmem:[%s7401_s17 + $0x20] sm:$0xff] }
0x2ba6   :  { %v3935_v2 = vpop.permute.xlu0 %3934 }
0x2bbc   :  { %v3919_v16 = vpop.xlane.xlu1 %3918 }
0x2bbd   :  { %v3922_v20 = vadd.f32 %v3921_v9, %v3919_v16  ;;  %v4243_v9 = vld [vmem:[%s7401_s17 + $0x168] sm:$0xff]  ;;  %v4226_v16 = vld [vmem:[%s7401_s17 + $0xe0] sm:$0xff] }
0x2bbf   :  { %5437 = vtanh.f32 %v3922_v20  ;;  %v4210_v20 = vld [vmem:[%s7401_s17 + $0x60] sm:$0xff] }
0x2bc0   :  { %5439 = vpow2.f32 %v3860_v17  ;;  %v4242_v17 = vld [vmem:[%s7401_s17 + $0x160] sm:$0xff] }
0x2bc1   :  { %5441 = vpow2.f32 %v3876_v42  ;;  %v4225_v42 = vld [vmem:[%s7401_s17 + $0xd8] sm:$0xff] }
0x2bc2   :  { %5443 = vpow2.f32 %v3892_v21  ;;  %v4224_v21 = vld [vmem:[%s7401_s17 + $0xd0] sm:$0xff] }
0x2bc3   :  { %5445 = vpow2.f32 %v3908_v52  ;;  %v4223_v52 = vld [vmem:[%s7401_s17 + $0xc8] sm:$0xff] }
0x2bcc   :  { %v5438_v28 = vpop.eup %5437 }
0x2bcd   :  { %v3924_v61 = vmul.f32 1.442695, %v5438_v28  ;;  %v5440_v22 = vpop.eup %5439  ;;  %v4238_v28 = vld [vmem:[%s7401_s17 + $0x140] sm:$0xff] }
0x2bce   :  { %v3862_v24 = vadd.f32 %v5440_v22, %v3846_v30  ;;  %v5442_v57 = vpop.eup %5441  ;;  %v3863_v59 = vmul.f32 %v5440_v22, %v6809_v48  ;;  %v3915_v48 = vmax.f32 %v3899_v0, %v6842_v14  ;;  %v4222_v30 = vld [vmem:[%s7401_s17 + $0xc0] sm:$0xff]  ;;  %v4221_v22 = vld [vmem:[%s7401_s17 + $0xb8] sm:$0xff] }
0x2bcf   :  { %5447 = vpow2.f32 %v3924_v61  ;;  %v5444_v29 = vpop.eup %5443  ;;  %v3879_v44 = vmul.f32 %v5442_v57, %v6825_v25  ;;  %v4245_v25 = vld [vmem:[%s7401_s17 + $0x178] sm:$0xff]  ;;  %v4206_v61 = vld [vmem:[%s7401_s17 + $0x40] sm:$0xff] }
0x2bd0   :  { %v3878_v26 = vadd.f32 %v5442_v57, %v3862_v24  ;;  %v5446_v54 = vpop.eup %5445  ;;  %v3864_v27 = vadd.f32 %v3863_v59, %v3848_v47  ;;  %v3895_v41 = vmul.f32 %v5444_v29, %v6814_v32  ;;  %v4213_v32 = vld [vmem:[%s7401_s17 + $0x78] sm:$0xff]  ;;  %v7116_v13 = vsel %vm2013_vm4, %v3915_v48, %v3935_v2  ;;  %v4216_v59 = vld [vmem:[%s7401_s17 + $0x90] sm:$0xff] }
0x2bd1   :  { %v3911_v49 = vmul.f32 %v5446_v54, %v6829_v56  ;;  %v4228_v56 = vld [vmem:[%s7401_s17 + $0xf0] sm:$0xff]  ;;  %v4237_v24 = vld [vmem:[%s7401_s17 + $0x138] sm:$0xff] }
0x2bd2   :  { %v3894_v38 = vadd.f32 %v5444_v29, %v3878_v26  ;;  %v3880_v18 = vadd.f32 %v3879_v44, %v3864_v27  ;;  %v4205_v57 = vld [vmem:[%s7401_s17 + $0x38] sm:$0xff]  ;;  %v4220_v26 = vld [vmem:[%s7401_s17 + $0xb0] sm:$0xff]  ;;  %v4215_v27 = vld [vmem:[%s7401_s17 + $0x88] sm:$0xff] }
0x2bd3   :  { %v4204_v29 = vld [vmem:[%s7401_s17 + $0x30] sm:$0xff]  ;;  %v4233_v47 = vld [vmem:[%s7401_s17 + $0x118] sm:$0xff]  ;;  %v4199_v44 = vld [vmem:[%s7401_s17 + $0x8] sm:$0xff] }
0x2bd4   :  { %v3910_v53 = vadd.f32 %v5446_v54, %v3894_v38  ;;  %v3896_v31 = vadd.f32 %v3895_v41, %v3880_v18  ;;  %v4203_v38 = vld [vmem:[%s7401_s17 + $0x28] sm:$0xff]  ;;  %v4218_v54 = vld [vmem:[%s7401_s17 + $0xa0] sm:$0xff]  ;;  %v4022_v41 = vsub.s32 2, %v5929_v34 }
0x2bd5   :  { %v4214_v18 = vld [vmem:[%s7401_s17 + $0x80] sm:$0xff] }
0x2bd6   :  { %v3912_v36 = vadd.f32 %v3911_v49, %v3896_v31  ;;  %v4010_v31 = vld [vmem:[%s7399_s15] sm:$0x7] }
0x2bd7   :  { %v4023_v49 = vrot.slane %v4010_v31, %v4022_v41  ;;  %v4015_v63 = vrot.slane %v4010_v31, %v5932_v35  ;;  %v4188_v35 = vld [vmem:[%s7400_s16 + $0x70] sm:$0xff] }
0x2bdc   :  { %v5448_v46 = vpop.eup %5447 }
0x2bdd   :  { %v3926_v60 = vadd.f32 %v5448_v46, %v3910_v53  ;;  %v3927_v40 = vmul.f32 %v5448_v46, %v6842_v14  ;;  %v4244_v14 = vld [vmem:[%s7401_s17 + $0x170] sm:$0xff]  ;;  %v4217_v53 = vld [vmem:[%s7401_s17 + $0x98] sm:$0xff] }
0x2bde   :  { %v4201_v46 = vld [vmem:[%s7401_s17 + $0x18] sm:$0xff] }
0x2bdf   :  { %v3929_v39 = vadd.f32 1e-10, %v3926_v60  ;;  %v3928_v6 = vadd.f32 %v3927_v40, %v3912_v36  ;;  %v4200_v60 = vld [vmem:[%s7401_s17 + $0x10] sm:$0xff]  ;;  %v4019_v40 = vrot.slane %v4010_v31, %v5935_v37  ;;  %v4187_v37 = vld [vmem:[%s7400_s16 + $0x68] sm:$0xff] }
0x2be1   :  { %5449 = vrcp.f32 %v3929_v39  ;;  %v4231_v39 = vld [vmem:[%s7401_s17 + $0x108] sm:$0xff] }
0x2bee   :  { %v5450_v45 = vpop.eup %5449 }
0x2bef   :  { %v7107_v12 = vmul.f32 %v5450_v45, %v3928_v6 }
0x2bf1   :  { %4602 = vmatprep.mubr.msk.f32.mxu1 %vm2013_vm4, %v7107_v12  ;;  %4603 = vmatprep.mubr.msk.f32.mxu0 %vm2013_vm4, %v7107_v12 }
0x2bf2   :  { %4095 = vmatmul.mubr.f32.vlgmr.msra.gmra.mxu1 %v7116_v13  ;;  %4166 = vmatmul.mubr.f32.vlgmr.msra.gmra.mxu0 %v7116_v13 }
0x2bf3   :  { %5107 = vmatpush3.msra.mxu0 %v4245_v25  ;;  %4747 = vmatpush3.msra.mxu1 %v4213_v32 }
0x2bf4   :  { %5108 = vmatprep.subr.mxu0 %v5684_v4  ;;  %4748 = vmatprep.subr.mxu1 %v4228_v56 }
0x2bf5   :  { %5109 = vmatpush3.msra.mxu0 %v4244_v14  ;;  %4749 = vmatpush3.msra.mxu1 %v4212_v23  ;;  %v4189_v14 = vld [vmem:[%s7400_s16 + $0x78] sm:$0xff]  ;;  %v4186_v23 = vld [vmem:[%s7400_s16 + $0x60] sm:$0xff] }
0x2bf6   :  { %5110 = vmatprep.subr.mxu0 %v5684_v4  ;;  %4750 = vmatprep.subr.mxu1 %v4227_v5  ;;  %v4184_v5 = vld [vmem:[%s7400_s16 + $0x50] sm:$0xff] }
0x2bf7   :  { %5111 = vmatpush3.msra.mxu0 %v4243_v9  ;;  %4751 = vmatpush3.msra.mxu1 %v4211_v15  ;;  %v4183_v9 = vld [vmem:[%s7400_s16 + $0x48] sm:$0xff]  ;;  %v4182_v15 = vld [vmem:[%s7400_s16 + $0x40] sm:$0xff] }
0x2bf8   :  { %5112 = vmatprep.subr.mxu0 %v5684_v4  ;;  %4752 = vmatprep.subr.mxu1 %v4226_v16  ;;  %v4181_v16 = vld [vmem:[%s7400_s16 + $0x38] sm:$0xff] }
0x2bf9   :  { %5113 = vmatpush3.msra.mxu0 %v4242_v17  ;;  %4753 = vmatpush3.msra.mxu1 %v4210_v20  ;;  %v4180_v17 = vld [vmem:[%s7400_s16 + $0x30] sm:$0xff]  ;;  %v4179_v20 = vld [vmem:[%s7400_s16 + $0x28] sm:$0xff] }
0x2bfa   :  { %5114 = vmatprep.subr.mxu0 %v5684_v4  ;;  %4754 = vmatprep.subr.mxu1 %v4225_v42  ;;  %v4178_v42 = vld [vmem:[%s7400_s16 + $0x20] sm:$0xff] }
0x2bfb   :  { %5115 = vmatpush3.msra.mxu0 %v4241_v19  ;;  %4755 = vmatpush3.msra.mxu1 %v4209_v7  ;;  %v4177_v19 = vld [vmem:[%s7400_s16 + $0x18] sm:$0xff]  ;;  %v4176_v7 = vld [vmem:[%s7400_s16 + $0x10] sm:$0xff] }
0x2bfc   :  { %5116 = vmatprep.subr.mxu0 %v5684_v4  ;;  %4756 = vmatprep.subr.mxu1 %v4224_v21  ;;  %v4175_v21 = vld [vmem:[%s7400_s16 + $0x8] sm:$0xff] }
0x2bfd   :  { %5117 = vmatpush3.msra.mxu0 %v4240_v1  ;;  %4757 = vmatpush3.msra.mxu1 %v4208_v33  ;;  %v4174_v1 = vld [vmem:[%s7400_s16] sm:$0xff]  ;;  %v4197_v33 = vld [vmem:[%s7400_s16 + $0xb8] sm:$0xff] }
0x2bfe   :  { %5118 = vmatprep.subr.mxu0 %v5684_v4  ;;  %4758 = vmatprep.subr.mxu1 %v4223_v52  ;;  %v4196_v52 = vld [vmem:[%s7400_s16 + $0xb0] sm:$0xff] }
0x2bff   :  { %5119 = vmatpush3.msra.mxu0 %v4239_v11  ;;  %4759 = vmatpush3.msra.mxu1 %v4207_v51  ;;  %v4195_v11 = vld [vmem:[%s7400_s16 + $0xa8] sm:$0xff]  ;;  %v4194_v51 = vld [vmem:[%s7400_s16 + $0xa0] sm:$0xff] }
0x2c00   :  { %5120 = vmatprep.subr.mxu0 %v5684_v4  ;;  %4760 = vmatprep.subr.mxu1 %v4222_v30  ;;  %v4193_v30 = vld [vmem:[%s7400_s16 + $0x98] sm:$0xff] }
0x2c01   :  { %5121 = vmatpush3.msra.mxu0 %v4238_v28  ;;  %4761 = vmatpush3.msra.mxu1 %v4206_v61  ;;  %v4192_v28 = vld [vmem:[%s7400_s16 + $0x90] sm:$0xff]  ;;  %v4191_v61 = vld [vmem:[%s7400_s16 + $0x88] sm:$0xff] }
0x2c02   :  { %5122 = vmatprep.subr.mxu0 %v5684_v4  ;;  %4762 = vmatprep.subr.mxu1 %v4221_v22  ;;  %v4190_v22 = vld [vmem:[%s7400_s16 + $0x80] sm:$0xff] }
0x2c03   :  { %5123 = vmatpush3.msra.mxu0 %v4237_v24  ;;  %4763 = vmatpush3.msra.mxu1 %v4205_v57 }
0x2c04   :  { %5124 = vmatprep.subr.mxu0 %v5684_v4  ;;  %4764 = vmatprep.subr.mxu1 %v4220_v26 }
0x2c05   :  { %5125 = vmatpush3.msra.mxu0 %v4236_v62  ;;  %4765 = vmatpush3.msra.mxu1 %v4204_v29 }
0x2c06   :  { %5126 = vmatprep.subr.mxu0 %v5684_v4  ;;  %4766 = vmatprep.subr.mxu1 %v4219_v55 }
0x2c07   :  { %5127 = vmatpush3.msra.mxu0 %v4235_v10  ;;  %4767 = vmatpush3.msra.mxu1 %v4203_v38  ;;  %v4605_v38 = vld [vmem:[#allocation24] ss:$0 sm:$0xff] }
0x2c08   :  { %5128 = vmatprep.subr.mxu0 %v5684_v4  ;;  %4768 = vmatprep.subr.mxu1 %v4218_v54 }
0x2c09   :  { %5129 = vmatpush3.msra.mxu0 %v4234_v3  ;;  %4769 = vmatpush3.msra.mxu1 %v4202_v58 }
0x2c0a   :  { %5130 = vmatprep.subr.mxu0 %v5684_v4  ;;  %4770 = vmatprep.subr.mxu1 %v4217_v53 }
0x2c0b   :  { %5131 = vmatpush3.msra.mxu0 %v4233_v47  ;;  %5138 = vmatprep.mubr.msk.f32.mxu0 %vm5686_vm2, %v5684_v4 }
0x2c0c   :  { %5132 = vmatprep.subr.mxu0 %v5684_v4  ;;  %4771 = vmatpush3.msra.mxu1 %v4201_v46 }
0x2c0d   :  { %5133 = vmatpush3.msra.mxu0 %v4232_v50  ;;  %4772 = vmatprep.subr.mxu1 %v4216_v59 }
0x2c0e   :  { %5134 = vmatprep.subr.mxu0 %v5684_v4  ;;  %4773 = vmatpush3.msra.mxu1 %v4200_v60 }
0x2c0f   :  { %5135 = vmatpush3.msra.mxu0 %v4231_v39  ;;  %4774 = vmatprep.subr.mxu1 %v4215_v27 }
0x2c10   :  { %5136 = vmatprep.subr.mxu0 %v5684_v4  ;;  %4775 = vmatpush3.msra.mxu1 %v4199_v44 }
0x2c11   :  { %5137 = vmatpush3.msra.mxu0 %v4230_v43  ;;  %4776 = vmatprep.subr.mxu1 %v4214_v18 }
0x2c12   :  { %4777 = vmatpush3.msra.mxu1 %v4198_v8 }
0x2c13   :  { %4386 = vmatprep.subr.mxu1 %v5684_v4 }
0x2cb2   :  { %v4096_v36 = vpop.f32.mrf.mxu1  ;;  %v4167_v0 = vpop.f32.mrf.mxu0 }
0x2cb3   :  { %v4168_v6 = vadd.f32 %v4167_v0, %v4023_v49  ;;  %v4097_v45 = vadd.f32 %v4096_v36, %v4015_v63 }
0x2cb4   :  { %v4098_v2 = vpop.f32.mrf.mxu1  ;;  %v4169_v48 = vpop.f32.mrf.mxu0 }
0x2cb5   :  { %v4173_v25 = vmax.f32 %v4168_v6, 0.0  ;;  %v4099_v32 = vadd.f32 %v4098_v2, %v4019_v40  ;;  %v4171_v34 = vmax.f32 %v4097_v45, 0.0 }
0x2cb7   :  { %v4172_v56 = vmax.f32 %v4099_v32, 0.0  ;;  %5139 = vmatmul.mubr.f32.vlgmr.msra.gmra.mxu0 %v4173_v25 }
0x2cb9   :  { %4310 = vmatprep.mubr.f32.mxu1 %v4172_v56 }
0x2cba   :  { %4311 = vmatmul.mubr.f32.vlgmr.msra.gmra.mxu1 %v4171_v34 }
0x2cbb   :  { %4387 = vmatpush1.msra.mxu1 %v4189_v14  ;;  %4604 = vmatprep.mubr.msk.f32.mxu1 %vm2013_vm4, %v7107_v12  ;;  %v4185_v12 = vld [vmem:[%s7400_s16 + $0x58] sm:$0xff] }
0x2cbc   :  { %4388 = vmatprep.subr.mxu1 %v5684_v4 }
0x2cbd   :  { %4389 = vmatpush1.msra.mxu1 %v4188_v35 }
0x2cbe   :  { %4390 = vmatprep.subr.mxu1 %v5684_v4 }
0x2cbf   :  { %4391 = vmatpush1.msra.mxu1 %v4187_v37 }
0x2cc0   :  { %4392 = vmatprep.subr.mxu1 %v5684_v4 }
0x2cc1   :  { %4393 = vmatpush1.msra.mxu1 %v4186_v23 }
0x2cc2   :  { %4394 = vmatprep.subr.mxu1 %v5684_v4 }
0x2cc3   :  { %4395 = vmatpush1.msra.mxu1 %v4185_v12 }
0x2cc4   :  { %4396 = vmatprep.subr.mxu1 %v5684_v4 }
0x2cc5   :  { %4397 = vmatpush1.msra.mxu1 %v4184_v5 }
0x2cc6   :  { %4398 = vmatprep.subr.mxu1 %v5684_v4 }
0x2cc7   :  { %4399 = vmatpush1.msra.mxu1 %v4183_v9 }
0x2cc8   :  { %4400 = vmatprep.subr.mxu1 %v5684_v4 }
0x2cc9   :  { %4401 = vmatpush1.msra.mxu1 %v4182_v15 }
0x2cca   :  { %4402 = vmatprep.subr.mxu1 %v5684_v4 }
0x2ccb   :  { %4403 = vmatpush1.msra.mxu1 %v4181_v16 }
0x2ccc   :  { %4404 = vmatprep.subr.mxu1 %v5684_v4 }
0x2ccd   :  { %4405 = vmatpush1.msra.mxu1 %v4180_v17 }
0x2cce   :  { %4406 = vmatprep.subr.mxu1 %v5684_v4 }
0x2ccf   :  { %4407 = vmatpush1.msra.mxu1 %v4179_v20 }
0x2cd0   :  { %4408 = vmatprep.subr.mxu1 %v5684_v4 }
0x2cd1   :  { %4409 = vmatpush1.msra.mxu1 %v4178_v42 }
0x2cd2   :  { %4410 = vmatprep.subr.mxu1 %v5684_v4 }
0x2cd3   :  { %4411 = vmatpush1.msra.mxu1 %v4177_v19 }
0x2cd4   :  { %4412 = vmatprep.subr.mxu1 %v5684_v4 }
0x2cd5   :  { %4413 = vmatpush1.msra.mxu1 %v4176_v7 }
0x2cd6   :  { %4414 = vmatprep.subr.mxu1 %v5684_v4 }
0x2cd7   :  { %4415 = vmatpush1.msra.mxu1 %v4175_v21 }
0x2cd8   :  { %4416 = vmatprep.subr.mxu1 %v5684_v4 }
0x2cd9   :  { %4417 = vmatpush1.msra.mxu1 %v4174_v1 }
0x2cda   :  { %4434 = vmatprep.subr.mxu1 %v5684_v4 }
0x2cdb   :  { %4435 = vmatpush2.msra.mxu1 %v4197_v33 }
0x2cdc   :  { %4436 = vmatprep.subr.mxu1 %v5684_v4 }
0x2cdd   :  { %4437 = vmatpush2.msra.mxu1 %v4196_v52 }
0x2cde   :  { %4438 = vmatprep.subr.mxu1 %v5684_v4 }
0x2cdf   :  { %4439 = vmatpush2.msra.mxu1 %v4195_v11 }
0x2ce0   :  { %4440 = vmatprep.subr.mxu1 %v5684_v4 }
0x2ce1   :  { %4441 = vmatpush2.msra.mxu1 %v4194_v51 }
0x2ce2   :  { %4442 = vmatprep.subr.mxu1 %v5684_v4 }
0x2ce3   :  { %4443 = vmatpush2.msra.mxu1 %v4193_v30 }
0x2ce4   :  { %4444 = vmatprep.subr.mxu1 %v5684_v4 }
0x2ce5   :  { %4445 = vmatpush2.msra.mxu1 %v4192_v28 }
0x2ce6   :  { %4446 = vmatprep.subr.mxu1 %v5684_v4 }
0x2ce7   :  { %4447 = vmatpush2.msra.mxu1 %v4191_v61 }
0x2ce8   :  { %4448 = vmatprep.subr.mxu1 %v5684_v4 }
0x2ce9   :  { %4449 = vmatpush2.msra.mxu1 %v4190_v22 }
0x2cea   :  { %4451 = vmatmul.mubr.f32.vlgmr.msra.gmra.mxu1 %v7116_v13 }
0x2d77   :  { %v4382_v24 = vpop.f32.mrf.mxu0 }
0x2d79   :  { %v5140_v57 = vpop.f32.mrf.mxu0 }
0x2d7a   :  { %v4778_v26 = vpop.f32.mrf.mxu1 }
0x2d7c   :  { %v4779_v62 = vpop.f32.mrf.mxu1 }
0x2d7d   :  { %v4780_v29 = vadd.f32 %v4779_v62, %v4778_v26 }
0x2d7f   :  { %v4383_v55 = vadd.f32 %v4780_v29, %v4382_v24 }
0x2daa   :  { %v4452_v10 = vpop.f32.mrf.mxu1 }
0x2dab   :  { %v4453_v54 = vadd.f32 %v4452_v10, %v4383_v55 }
0x2dac   :  { %v4454_v3 = vpop.f32.mrf.mxu1 }
0x2dad   :  { %v4463_v58 = vadd.f32 %v4605_v38, %v4453_v54 }
0x2daf   :  { %4465 = vst.msk [vmem:[%s7403_s19] sm:$0xff] %vm4464_vm5, %v4463_v58 }
0x2db0   :  { %4470 = vsyncpa [#allocation8], 1 }
0x2db1   :  { %4471 = vsyncpa [#allocation14], 1 }
0x2db2   :  { %4472 = vsyncpa [#allocation17], 1 }
0x2db3   :  { %4473 = vsyncpa [#allocation20], 1 }
0x2db4   :  { %4474 = vsyncpa [#allocation23], 1 }
0x2db5   :  { %4475 = vsyncpa [#allocation9], 1 }
0x2db6   :  { %4476 = vsyncpa [#allocation10], 1 }

</bundles_post_ra>
